<compile_context>
chip_gen: v5e
topology: v5e:2x2
jax: 0.10.0
libtpu: 0.0.40
codegen_flags: <defaults>
</compile_context>

<pallas_src>
import jax
import jax.numpy as jnp
from jax import lax
from jax.experimental import pallas as pl
from jax.experimental.pallas import tpu as pltpu


def _round_up(x, m):
    return (x + m - 1) // m * m


# ---------------------------------------------------------------------------
# Fused whole-neck Pallas kernel (one batch element per grid step)
# ---------------------------------------------------------------------------
def _make_neck_kernel(H, W, in_c, out_c, lead, Lp_total, blocks_meta, n_bufs):
    assert n_bufs >= 3
    Wp, Hp = W + 2, H + 2
    o0 = lead + Wp + 1              # flat index of output pixel (0,0); o0 % 128 == 0
    Lo = (H - 1) * Wp + W           # contiguous interior segment length
    n_out = len(blocks_meta)

    def kernel(x_ref, w_ref, b_ref, m_ref, *rest):
        out_refs = rest[:n_out]
        bufs = rest[n_out:]
        c_max = bufs[0].shape[0]

        # Re-zero only the halo slabs (taps read at most Wp+1 lanes past the
        # interior on either side; both slabs cover that).  Left slab is
        # lane-aligned (width o0, a multiple of 128); right slab is tiny.
        zl = jnp.zeros((c_max, o0), jnp.float32)
        zr = jnp.zeros((c_max, Lp_total - (o0 + Lo)), jnp.float32)
        for bf in bufs:
            bf[:, 0:o0] = zl
            bf[:, o0 + Lo:] = zr

        # Host-precomputed interior mask (1 on image pixels, 0 on the gap
        # columns between rows) -- hoisted out of the per-step body.
        mask = m_ref[:, o0:o0 + Lo]                       # (1, Lo)

        def conv_seg(src, cin, li, kh, kw):
            """One conv layer as kh*kw accumulating MXU dots of depth cin.

            No materialized im2col: per-tap dots avoid the sublane-misaligned
            concat at small cin and the giant (kh*kw*cin, Lo) temporary at
            production channel counts (v7x VMEM fit)."""
            acc = None
            t = 0
            for ky in range(kh):
                for kx in range(kw):
                    off = o0 + (ky - kh // 2) * Wp + (kx - kw // 2)
                    piece = src[0:cin, off:off + Lo].astype(w_ref.dtype)
                    wt = w_ref[li, :, t * cin:(t + 1) * cin]      # (out_c, cin)
                    d = jnp.dot(wt, piece,
                                preferred_element_type=jnp.float32)
                    acc = d if acc is None else acc + d
                    t += 1
            return acc + b_ref[li]                        # (out_c, Lo) + (out_c, 1)

        cur = None                  # None -> block input is x_ref (padded-flat)
        for bi, bm in enumerate(blocks_meta):
            convs = bm["convs"]
            src = x_ref if cur is None else bufs[cur]
            if cur is None:
                pingpong, out_buf = (0, 1), 2
            else:
                pingpong = tuple(i for i in range(n_bufs) if i != cur)
                out_buf = cur       # block input buffer is reused for output

            # Hidden conv layers: conv -> bias -> ReLU, stay in VMEM.
            h = src
            for i, (li, cin, kh, kw) in enumerate(convs[:-1]):
                seg = jnp.maximum(conv_seg(h, cin, li, kh, kw), 0.0) * mask
                dst = pingpong[i % 2]
                bufs[dst][0:out_c, o0:o0 + Lo] = seg       # aligned segment store
                h = bufs[dst]

            # Shortcut branch (identity, or 1x1 conv + folded BN).
            if bm["shortcut"] is None:
                blk_in_c = convs[0][1]
                sc = src[0:blk_in_c, o0:o0 + Lo]
            else:
                li_s, cin_s, kh_s, kw_s = bm["shortcut"]
                sc = conv_seg(src, cin_s, li_s, kh_s, kw_s)

            # Last conv + residual add + ReLU.
            li, cin, kh, kw = convs[-1]
            seg = jnp.maximum(conv_seg(h, cin, li, kh, kw) + sc, 0.0) * mask
            bufs[out_buf][0:out_c, o0:o0 + Lo] = seg
            cur = out_buf

            # Block output: ONE full-width unmasked copy in the padded-flat
            # layout (halo lanes are zero); the wrapper strips the padding.
            out_refs[bi][...] = bufs[out_buf][0:out_c, :].astype(out_refs[bi].dtype)

    return kernel


# ---------------------------------------------------------------------------
# Parameter prep: fold BN into weights, flatten to (Cout, K) tap-major, pack
# ---------------------------------------------------------------------------
def _prepare_param_tables(params, mxu_dtype):
    w2d, biases, blocks_meta = [], [], []

    def add_layer(w, s, b):
        kh, kw, cin, co = w.shape
        # Tap-major K layout: [tap(ky,kx) 0: cin][tap 1: cin]... matches the
        # kernel's per-tap weight slices.
        wf = (w * s[None, None, None, :]).reshape(kh * kw * cin, co).T
        li = len(w2d)
        w2d.append(wf)
        biases.append(b)
        return li, cin, kh, kw

    for bp in params["blocks"]:
        convs_meta = [add_layer(w, s, b) for (w, s, b) in bp["convs"]]
        sc_meta = None
        if bp["shortcut"] is not None:
            sc_meta = add_layer(*bp["shortcut"])
        blocks_meta.append({"convs": convs_meta, "shortcut": sc_meta})

    k_max = max(w.shape[1] for w in w2d)
    w_all = jnp.stack(
        [jnp.pad(w, ((0, 0), (0, k_max - w.shape[1]))) for w in w2d])
    w_all = w_all.astype(mxu_dtype)                          # (n_layers, Cout, Kmax)
    b_all = jnp.stack(biases).astype(jnp.float32)[:, :, None]  # (n_layers, Cout, 1)
    return w_all, b_all, blocks_meta


# ---------------------------------------------------------------------------
# ClassicNeck parameters (deterministic, synthetic)
# ---------------------------------------------------------------------------
def _fold_bn(gamma, beta, mean, var, eps=1e-5):
    scale = gamma / jnp.sqrt(var + eps)
    bias = beta - mean * scale
    return scale, bias


def make_residual_block_params(key, in_c, out_c, num_conv_layers):
    convs = []
    for i in range(num_conv_layers):
        key, k1, k2, k3 = jax.random.split(key, 4)
        ci = in_c if i == 0 else out_c
        w = jax.random.normal(k1, (3, 3, ci, out_c), jnp.float32) * 0.1
        gamma = 1.0 + 0.1 * jax.random.normal(k2, (out_c,), jnp.float32)
        beta = 0.1 * jax.random.normal(k3, (out_c,), jnp.float32)
        s, b = _fold_bn(gamma, beta, jnp.zeros((out_c,)), jnp.ones((out_c,)))
        convs.append((w, s, b))
    shortcut = None
    if in_c != out_c:
        key, k1, k2, k3 = jax.random.split(key, 4)
        ws = jax.random.normal(k1, (1, 1, in_c, out_c), jnp.float32) * 0.1
        gamma = 1.0 + 0.1 * jax.random.normal(k2, (out_c,), jnp.float32)
        beta = 0.1 * jax.random.normal(k3, (out_c,), jnp.float32)
        ss, bs = _fold_bn(gamma, beta, jnp.zeros((out_c,)), jnp.ones((out_c,)))
        shortcut = (ws, ss, bs)
    return {"convs": convs, "shortcut": shortcut}


def make_classic_neck_params(key, in_channel, out_channel,
                             num_conv_layers=2, block_stack=2):
    keys = jax.random.split(key, block_stack)
    blocks = [make_residual_block_params(keys[0], in_channel, out_channel,
                                         num_conv_layers)]
    for i in range(1, block_stack):
        blocks.append(make_residual_block_params(keys[i], out_channel,
                                                 out_channel, num_conv_layers))
    return {"blocks": blocks, "in_channel": in_channel,
            "out_channel": out_channel}


# ---------------------------------------------------------------------------
# ClassicNeck forward (single fused pallas_call)
# ---------------------------------------------------------------------------
def classic_neck_forward(params, x_nchw, mxu_dtype=jnp.bfloat16):
    """Matches ClassicNeck.forward (atten_name=None). x is NCHW or tuple of NCHW."""
    if isinstance(x_nchw, tuple):
        x_nchw = jnp.concatenate(list(x_nchw), axis=1)
    in_c, out_c = params["in_channel"], params["out_channel"]
    assert x_nchw.shape[1] == in_c
    N, _, H, W = x_nchw.shape
    Hp, Wp = H + 2, W + 2
    lead = (-(Wp + 1)) % 128                 # makes interior origin 128-aligned
    Lp_total = _round_up(lead + Hp * Wp, 128)  # aligned flat row length
    c_max = max(in_c, out_c)
    n_bufs = 3                               # supports any num_conv_layers

    w_all, b_all, blocks_meta = _prepare_param_tables(params, mxu_dtype)
    n_layers, _, k_max = w_all.shape
    n_blocks = len(blocks_meta)

    # Input in zero-padded flat layout: one XLA pad amortized over the neck
    # (replaces the per-step H-row scatter inside the kernel).
    x_pad = jnp.pad(x_nchw, ((0, 0), (0, 0), (1, 1), (1, 1)))
    x_flat = x_pad.reshape(N, in_c, Hp * Wp)
    x_flat = jnp.pad(x_flat, ((0, 0), (0, 0), (lead, Lp_total - lead - Hp * Wp)))

    # Interior/gap mask in the same flat layout (hoisted out of the kernel).
    m2 = jnp.zeros((Hp, Wp), jnp.float32).at[1:H + 1, 1:W + 1].set(1.0)
    mask_flat = jnp.pad(m2.reshape(1, Hp * Wp),
                        ((0, 0), (lead, Lp_total - lead - Hp * Wp)))

    kernel = _make_neck_kernel(H, W, in_c, out_c, lead, Lp_total,
                               blocks_meta, n_bufs)

    outs = pl.pallas_call(
        kernel,
        out_shape=tuple(jax.ShapeDtypeStruct((N, out_c, Lp_total), x_nchw.dtype)
                        for _ in range(n_blocks)),
        grid=(N,),
        in_specs=[
            pl.BlockSpec((None, in_c, Lp_total), lambda b: (b, 0, 0)),
            pl.BlockSpec((n_layers, out_c, k_max), lambda b: (0, 0, 0)),
            pl.BlockSpec((n_layers, out_c, 1), lambda b: (0, 0, 0)),
            pl.BlockSpec((1, Lp_total), lambda b: (0, 0)),
        ],
        out_specs=tuple(pl.BlockSpec((None, out_c, Lp_total), lambda b: (b, 0, 0))
                        for _ in range(n_blocks)),
        scratch_shapes=[pltpu.VMEM((c_max, Lp_total), jnp.float32)
                        for _ in range(n_bufs)],
        compiler_params=pltpu.CompilerParams(
            dimension_semantics=("parallel",),
            vmem_limit_bytes=64 * 1024 * 1024),
    )(x_flat, w_all, b_all, mask_flat)

    out_list = [x_nchw]
    for o in outs:
        o = o[:, :, lead:lead + Hp * Wp].reshape(N, out_c, Hp, Wp)
        out_list.append(o[:, :, 1:H + 1, 1:W + 1])
    return out_list


# ---------------------------------------------------------------------------
# Pure-JAX reference (lax.conv, same folded-BN + bf16-weight math)
# ---------------------------------------------------------------------------
def _ref_conv_bn(x, w, s, b, mxu_dtype, res=None, relu=True):
    wf = (w * s[None, None, None, :]).astype(mxu_dtype)      # same BN fold + cast
    y = lax.conv_general_dilated(
        x.astype(mxu_dtype), wf, window_strides=(1, 1), padding="SAME",
        dimension_numbers=("NHWC", "HWIO", "NHWC"),
        preferred_element_type=jnp.float32)
    y = y + b
    if res is not None:
        y = y + res
    if relu:
        y = jnp.maximum(y, 0.0)
    return y


def _ref_block(x, p, mxu_dtype):
    h = x
    for (w, s, b) in p["convs"][:-1]:
        h = _ref_conv_bn(h, w, s, b, mxu_dtype, relu=True)
    if p["shortcut"] is None:
        sc = x
    else:
        ws, ss, bs = p["shortcut"]
        sc = _ref_conv_bn(x, ws, ss, bs, mxu_dtype, relu=False)
    w, s, b = p["convs"][-1]
    return _ref_conv_bn(h, w, s, b, mxu_dtype, res=sc, relu=True)


def _ref_neck(params, x_nchw, mxu_dtype):
    out_list = [x_nchw]
    x = jnp.transpose(x_nchw, (0, 2, 3, 1))
    for bp in params["blocks"]:
        x = _ref_block(x, bp, mxu_dtype)
        out_list.append(jnp.transpose(x, (0, 3, 1, 2)))
    return out_list


if __name__ == "__main__":
    key = jax.random.PRNGKey(0)
    kx, kp = jax.random.split(key)

    N, Cin, Cout, H, W = 2, 4, 8, 16, 16
    x = jax.random.normal(kx, (N, Cin, H, W), jnp.float32)   # NCHW, like PyTorch

    params = make_classic_neck_params(kp, Cin, Cout,
                                      num_conv_layers=2, block_stack=2)

    outs = classic_neck_forward(params, x, mxu_dtype=jnp.bfloat16)
    outs = [jax.block_until_ready(o) for o in outs]

    refs = _ref_neck(params, x, mxu_dtype=jnp.bfloat16)
    assert len(outs) == len(refs) == 3
    for o, r in zip(outs, refs):
        assert o.shape == r.shape
        # Both paths use bf16 weights/activation inputs with f32 accumulation;
        # residual tolerance covers accumulation-order / rounding differences.
        assert jnp.allclose(o, r, atol=1e-2, rtol=1e-2), \
            float(jnp.max(jnp.abs(o - r)))

    print("KERNEL_OK")
</pallas_src>

<mosaic_0001>
module attributes {stable_mosaic.version = 11 : i64} {
  func.func @kernel(%arg0: i32, %arg1: memref<1x4x512xf32, #tpu.memory_space<vmem>>, %arg2: memref<5x8x72xbf16, #tpu.memory_space<vmem>>, %arg3: memref<5x8x1xf32, #tpu.memory_space<vmem>>, %arg4: memref<1x512xf32, #tpu.memory_space<vmem>>, %arg5: memref<1x8x512xf32, #tpu.memory_space<vmem>>, %arg6: memref<1x8x512xf32, #tpu.memory_space<vmem>>, %arg7: memref<8x512xf32, #tpu.memory_space<vmem>>, %arg8: memref<8x512xf32, #tpu.memory_space<vmem>>, %arg9: memref<8x512xf32, #tpu.memory_space<vmem>>) attributes {dimension_semantics = [#tpu.dimension_semantics<parallel>], iteration_bounds = array<i64: 2>, scalar_prefetch = 0 : i64, scratch_operands = 3 : i64, tpu.core_type = #tpu.core_type<tc>, window_params = [{transform_indices = @transform_0, window_bounds = array<i64: 1, 4, 512>}, {pipeline_mode = #tpu.pipeline_mode<synchronous>, transform_indices = @transform_1, window_bounds = array<i64: 5, 8, 72>}, {pipeline_mode = #tpu.pipeline_mode<synchronous>, transform_indices = @transform_2, window_bounds = array<i64: 5, 8, 1>}, {pipeline_mode = #tpu.pipeline_mode<synchronous>, transform_indices = @transform_3, window_bounds = array<i64: 1, 512>}, {transform_indices = @transform_4, window_bounds = array<i64: 1, 8, 512>}, {transform_indices = @transform_5, window_bounds = array<i64: 1, 8, 512>}]} {
    %cst = arith.constant 0.000000e+00 : f32
    %0 = vector.broadcast %cst : f32 to vector<8x128xf32>
    %cst_0 = arith.constant 0.000000e+00 : f32
    %1 = vector.broadcast %cst_0 : f32 to vector<8x98xf32>
    %c0 = arith.constant 0 : index
    %c0_1 = arith.constant 0 : index
    %2 = vector.load %arg7[%c0, %c0_1] : memref<8x512xf32, #tpu.memory_space<vmem>>, vector<8x128xf32>
    tpu.vector_store %arg7[%c0, %c0_1], %0 {strides = array<i32>} : memref<8x512xf32, #tpu.memory_space<vmem>>, vector<8x128xf32>,
    %c0_2 = arith.constant 0 : index
    %c414 = arith.constant 414 : index
    %3 = vector.load %arg7[%c0_2, %c414] : memref<8x512xf32, #tpu.memory_space<vmem>>, vector<8x98xf32>
    tpu.vector_store %arg7[%c0_2, %c414], %1 {strides = array<i32>} : memref<8x512xf32, #tpu.memory_space<vmem>>, vector<8x98xf32>,
    %c0_3 = arith.constant 0 : index
    %c0_4 = arith.constant 0 : index
    %4 = vector.load %arg8[%c0_3, %c0_4] : memref<8x512xf32, #tpu.memory_space<vmem>>, vector<8x128xf32>
    tpu.vector_store %arg8[%c0_3, %c0_4], %0 {strides = array<i32>} : memref<8x512xf32, #tpu.memory_space<vmem>>, vector<8x128xf32>,
    %c0_5 = arith.constant 0 : index
    %c414_6 = arith.constant 414 : index
    %5 = vector.load %arg8[%c0_5, %c414_6] : memref<8x512xf32, #tpu.memory_space<vmem>>, vector<8x98xf32>
    tpu.vector_store %arg8[%c0_5, %c414_6], %1 {strides = array<i32>} : memref<8x512xf32, #tpu.memory_space<vmem>>, vector<8x98xf32>,
    %c0_7 = arith.constant 0 : index
    %c0_8 = arith.constant 0 : index
    %6 = vector.load %arg9[%c0_7, %c0_8] : memref<8x512xf32, #tpu.memory_space<vmem>>, vector<8x128xf32>
    tpu.vector_store %arg9[%c0_7, %c0_8], %0 {strides = array<i32>} : memref<8x512xf32, #tpu.memory_space<vmem>>, vector<8x128xf32>,
    %c0_9 = arith.constant 0 : index
    %c414_10 = arith.constant 414 : index
    %7 = vector.load %arg9[%c0_9, %c414_10] : memref<8x512xf32, #tpu.memory_space<vmem>>, vector<8x98xf32>
    tpu.vector_store %arg9[%c0_9, %c414_10], %1 {strides = array<i32>} : memref<8x512xf32, #tpu.memory_space<vmem>>, vector<8x98xf32>,
    %c0_11 = arith.constant 0 : index
    %c128 = arith.constant 128 : index
    %8 = vector.load %arg4[%c0_11, %c128] : memref<1x512xf32, #tpu.memory_space<vmem>>, vector<1x286xf32>
    %c0_12 = arith.constant 0 : index
    %c0_13 = arith.constant 0 : index
    %c109 = arith.constant 109 : index
    %9 = vector.load %arg1[%c0_12, %c0_13, %c109] : memref<1x4x512xf32, #tpu.memory_space<vmem>>, vector<1x4x286xf32>
    %10 = vector.shape_cast %9 : vector<1x4x286xf32> to vector<4x286xf32>
    %11 = arith.truncf %10 : vector<4x286xf32> to vector<4x286xbf16>
    %c0_14 = arith.constant 0 : index
    %c0_15 = arith.constant 0 : index
    %c0_16 = arith.constant 0 : index
    %12 = vector.load %arg2[%c0_14, %c0_15, %c0_16] : memref<5x8x72xbf16, #tpu.memory_space<vmem>>, vector<1x8x4xbf16>
    %13 = vector.shape_cast %12 : vector<1x8x4xbf16> to vector<8x4xbf16>
    %cst_17 = arith.constant dense<0.000000e+00> : vector<8x286xf32>
    %14 = tpu.matmul %13, %11, %cst_17 {dimension_numbers = #tpu.dot_dimension_numbers<[1], [0], [0], [1], [0, 0, 1, 1], [], []>} : vector<8x4xbf16>, vector<4x286xbf16>, vector<8x286xf32> -> vector<8x286xf32>
    %c0_18 = arith.constant 0 : index
    %c0_19 = arith.constant 0 : index
    %c110 = arith.constant 110 : index
    %15 = vector.load %arg1[%c0_18, %c0_19, %c110] : memref<1x4x512xf32, #tpu.memory_space<vmem>>, vector<1x4x286xf32>
    %16 = vector.shape_cast %15 : vector<1x4x286xf32> to vector<4x286xf32>
    %17 = arith.truncf %16 : vector<4x286xf32> to vector<4x286xbf16>
    %c0_20 = arith.constant 0 : index
    %c0_21 = arith.constant 0 : index
    %c4 = arith.constant 4 : index
    %18 = vector.load %arg2[%c0_20, %c0_21, %c4] : memref<5x8x72xbf16, #tpu.memory_space<vmem>>, vector<1x8x4xbf16>
    %19 = vector.shape_cast %18 : vector<1x8x4xbf16> to vector<8x4xbf16>
    %cst_22 = arith.constant dense<0.000000e+00> : vector<8x286xf32>
    %20 = tpu.matmul %19, %17, %cst_22 {dimension_numbers = #tpu.dot_dimension_numbers<[1], [0], [0], [1], [0, 0, 1, 1], [], []>} : vector<8x4xbf16>, vector<4x286xbf16>, vector<8x286xf32> -> vector<8x286xf32>
    %21 = arith.addf %14, %20 : vector<8x286xf32>
    %c0_23 = arith.constant 0 : index
    %c0_24 = arith.constant 0 : index
    %c111 = arith.constant 111 : index
    %22 = vector.load %arg1[%c0_23, %c0_24, %c111] : memref<1x4x512xf32, #tpu.memory_space<vmem>>, vector<1x4x286xf32>
    %23 = vector.shape_cast %22 : vector<1x4x286xf32> to vector<4x286xf32>
    %24 = arith.truncf %23 : vector<4x286xf32> to vector<4x286xbf16>
    %c0_25 = arith.constant 0 : index
    %c0_26 = arith.constant 0 : index
    %c8 = arith.constant 8 : index
    %25 = vector.load %arg2[%c0_25, %c0_26, %c8] : memref<5x8x72xbf16, #tpu.memory_space<vmem>>, vector<1x8x4xbf16>
    %26 = vector.shape_cast %25 : vector<1x8x4xbf16> to vector<8x4xbf16>
    %cst_27 = arith.constant dense<0.000000e+00> : vector<8x286xf32>
    %27 = tpu.matmul %26, %24, %cst_27 {dimension_numbers = #tpu.dot_dimension_numbers<[1], [0], [0], [1], [0, 0, 1, 1], [], []>} : vector<8x4xbf16>, vector<4x286xbf16>, vector<8x286xf32> -> vector<8x286xf32>
    %28 = arith.addf %21, %27 : vector<8x286xf32>
    %c0_28 = arith.constant 0 : index
    %c0_29 = arith.constant 0 : index
    %c127 = arith.constant 127 : index
    %29 = vector.load %arg1[%c0_28, %c0_29, %c127] : memref<1x4x512xf32, #tpu.memory_space<vmem>>, vector<1x4x286xf32>
    %30 = vector.shape_cast %29 : vector<1x4x286xf32> to vector<4x286xf32>
    %31 = arith.truncf %30 : vector<4x286xf32> to vector<4x286xbf16>
    %c0_30 = arith.constant 0 : index
    %c0_31 = arith.constant 0 : index
    %c12 = arith.constant 12 : index
    %32 = vector.load %arg2[%c0_30, %c0_31, %c12] : memref<5x8x72xbf16, #tpu.memory_space<vmem>>, vector<1x8x4xbf16>
    %33 = vector.shape_cast %32 : vector<1x8x4xbf16> to vector<8x4xbf16>
    %cst_32 = arith.constant dense<0.000000e+00> : vector<8x286xf32>
    %34 = tpu.matmul %33, %31, %cst_32 {dimension_numbers = #tpu.dot_dimension_numbers<[1], [0], [0], [1], [0, 0, 1, 1], [], []>} : vector<8x4xbf16>, vector<4x286xbf16>, vector<8x286xf32> -> vector<8x286xf32>
    %35 = arith.addf %28, %34 : vector<8x286xf32>
    %c0_33 = arith.constant 0 : index
    %c0_34 = arith.constant 0 : index
    %c128_35 = arith.constant 128 : index
    %36 = vector.load %arg1[%c0_33, %c0_34, %c128_35] : memref<1x4x512xf32, #tpu.memory_space<vmem>>, vector<1x4x286xf32>
    %37 = vector.shape_cast %36 : vector<1x4x286xf32> to vector<4x286xf32>
    %38 = arith.truncf %37 : vector<4x286xf32> to vector<4x286xbf16>
    %c0_36 = arith.constant 0 : index
    %c0_37 = arith.constant 0 : index
    %c16 = arith.constant 16 : index
    %39 = vector.load %arg2[%c0_36, %c0_37, %c16] : memref<5x8x72xbf16, #tpu.memory_space<vmem>>, vector<1x8x4xbf16>
    %40 = vector.shape_cast %39 : vector<1x8x4xbf16> to vector<8x4xbf16>
    %cst_38 = arith.constant dense<0.000000e+00> : vector<8x286xf32>
    %41 = tpu.matmul %40, %38, %cst_38 {dimension_numbers = #tpu.dot_dimension_numbers<[1], [0], [0], [1], [0, 0, 1, 1], [], []>} : vector<8x4xbf16>, vector<4x286xbf16>, vector<8x286xf32> -> vector<8x286xf32>
    %42 = arith.addf %35, %41 : vector<8x286xf32>
    %c0_39 = arith.constant 0 : index
    %c0_40 = arith.constant 0 : index
    %c129 = arith.constant 129 : index
    %43 = vector.load %arg1[%c0_39, %c0_40, %c129] : memref<1x4x512xf32, #tpu.memory_space<vmem>>, vector<1x4x286xf32>
    %44 = vector.shape_cast %43 : vector<1x4x286xf32> to vector<4x286xf32>
    %45 = arith.truncf %44 : vector<4x286xf32> to vector<4x286xbf16>
    %c0_41 = arith.constant 0 : index
    %c0_42 = arith.constant 0 : index
    %c20 = arith.constant 20 : index
    %46 = vector.load %arg2[%c0_41, %c0_42, %c20] : memref<5x8x72xbf16, #tpu.memory_space<vmem>>, vector<1x8x4xbf16>
    %47 = vector.shape_cast %46 : vector<1x8x4xbf16> to vector<8x4xbf16>
    %cst_43 = arith.constant dense<0.000000e+00> : vector<8x286xf32>
    %48 = tpu.matmul %47, %45, %cst_43 {dimension_numbers = #tpu.dot_dimension_numbers<[1], [0], [0], [1], [0, 0, 1, 1], [], []>} : vector<8x4xbf16>, vector<4x286xbf16>, vector<8x286xf32> -> vector<8x286xf32>
    %49 = arith.addf %42, %48 : vector<8x286xf32>
    %c0_44 = arith.constant 0 : index
    %c0_45 = arith.constant 0 : index
    %c145 = arith.constant 145 : index
    %50 = vector.load %arg1[%c0_44, %c0_45, %c145] : memref<1x4x512xf32, #tpu.memory_space<vmem>>, vector<1x4x286xf32>
    %51 = vector.shape_cast %50 : vector<1x4x286xf32> to vector<4x286xf32>
    %52 = arith.truncf %51 : vector<4x286xf32> to vector<4x286xbf16>
    %c0_46 = arith.constant 0 : index
    %c0_47 = arith.constant 0 : index
    %c24 = arith.constant 24 : index
    %53 = vector.load %arg2[%c0_46, %c0_47, %c24] : memref<5x8x72xbf16, #tpu.memory_space<vmem>>, vector<1x8x4xbf16>
    %54 = vector.shape_cast %53 : vector<1x8x4xbf16> to vector<8x4xbf16>
    %cst_48 = arith.constant dense<0.000000e+00> : vector<8x286xf32>
    %55 = tpu.matmul %54, %52, %cst_48 {dimension_numbers = #tpu.dot_dimension_numbers<[1], [0], [0], [1], [0, 0, 1, 1], [], []>} : vector<8x4xbf16>, vector<4x286xbf16>, vector<8x286xf32> -> vector<8x286xf32>
    %56 = arith.addf %49, %55 : vector<8x286xf32>
    %c0_49 = arith.constant 0 : index
    %c0_50 = arith.constant 0 : index
    %c146 = arith.constant 146 : index
    %57 = vector.load %arg1[%c0_49, %c0_50, %c146] : memref<1x4x512xf32, #tpu.memory_space<vmem>>, vector<1x4x286xf32>
    %58 = vector.shape_cast %57 : vector<1x4x286xf32> to vector<4x286xf32>
    %59 = arith.truncf %58 : vector<4x286xf32> to vector<4x286xbf16>
    %c0_51 = arith.constant 0 : index
    %c0_52 = arith.constant 0 : index
    %c28 = arith.constant 28 : index
    %60 = vector.load %arg2[%c0_51, %c0_52, %c28] : memref<5x8x72xbf16, #tpu.memory_space<vmem>>, vector<1x8x4xbf16>
    %61 = vector.shape_cast %60 : vector<1x8x4xbf16> to vector<8x4xbf16>
    %cst_53 = arith.constant dense<0.000000e+00> : vector<8x286xf32>
    %62 = tpu.matmul %61, %59, %cst_53 {dimension_numbers = #tpu.dot_dimension_numbers<[1], [0], [0], [1], [0, 0, 1, 1], [], []>} : vector<8x4xbf16>, vector<4x286xbf16>, vector<8x286xf32> -> vector<8x286xf32>
    %63 = arith.addf %56, %62 : vector<8x286xf32>
    %c0_54 = arith.constant 0 : index
    %c0_55 = arith.constant 0 : index
    %c147 = arith.constant 147 : index
    %64 = vector.load %arg1[%c0_54, %c0_55, %c147] : memref<1x4x512xf32, #tpu.memory_space<vmem>>, vector<1x4x286xf32>
    %65 = vector.shape_cast %64 : vector<1x4x286xf32> to vector<4x286xf32>
    %66 = arith.truncf %65 : vector<4x286xf32> to vector<4x286xbf16>
    %c0_56 = arith.constant 0 : index
    %c0_57 = arith.constant 0 : index
    %c32 = arith.constant 32 : index
    %67 = vector.load %arg2[%c0_56, %c0_57, %c32] : memref<5x8x72xbf16, #tpu.memory_space<vmem>>, vector<1x8x4xbf16>
    %68 = vector.shape_cast %67 : vector<1x8x4xbf16> to vector<8x4xbf16>
    %cst_58 = arith.constant dense<0.000000e+00> : vector<8x286xf32>
    %69 = tpu.matmul %68, %66, %cst_58 {dimension_numbers = #tpu.dot_dimension_numbers<[1], [0], [0], [1], [0, 0, 1, 1], [], []>} : vector<8x4xbf16>, vector<4x286xbf16>, vector<8x286xf32> -> vector<8x286xf32>
    %70 = arith.addf %63, %69 : vector<8x286xf32>
    %c0_59 = arith.constant 0 : index
    %c0_60 = arith.constant 0 : index
    %c0_61 = arith.constant 0 : index
    %71 = vector.load %arg3[%c0_59, %c0_60, %c0_61] : memref<5x8x1xf32, #tpu.memory_space<vmem>>, vector<1x8x1xf32>
    %72 = vector.shape_cast %71 : vector<1x8x1xf32> to vector<8x1xf32>
    %73 = vector.broadcast %72 : vector<8x1xf32> to vector<8x286xf32>
    %74 = arith.addf %70, %73 : vector<8x286xf32>
    %cst_62 = arith.constant 0.000000e+00 : f32
    %75 = vector.broadcast %cst_62 : f32 to vector<8x286xf32>
    %76 = arith.maximumf %74, %75 : vector<8x286xf32>
    %77 = vector.broadcast %8 : vector<1x286xf32> to vector<8x286xf32>
    %78 = arith.mulf %76, %77 : vector<8x286xf32>
    %c0_63 = arith.constant 0 : index
    %c128_64 = arith.constant 128 : index
    %79 = vector.load %arg7[%c0_63, %c128_64] : memref<8x512xf32, #tpu.memory_space<vmem>>, vector<8x286xf32>
    tpu.vector_store %arg7[%c0_63, %c128_64], %78 {strides = array<i32>} : memref<8x512xf32, #tpu.memory_space<vmem>>, vector<8x286xf32>,
    %c0_65 = arith.constant 0 : index
    %c0_66 = arith.constant 0 : index
    %c128_67 = arith.constant 128 : index
    %80 = vector.load %arg1[%c0_65, %c0_66, %c128_67] : memref<1x4x512xf32, #tpu.memory_space<vmem>>, vector<1x4x286xf32>
    %81 = vector.shape_cast %80 : vector<1x4x286xf32> to vector<4x286xf32>
    %82 = arith.truncf %81 : vector<4x286xf32> to vector<4x286xbf16>
    %c2 = arith.constant 2 : index
    %c0_68 = arith.constant 0 : index
    %c0_69 = arith.constant 0 : index
    %83 = vector.load %arg2[%c2, %c0_68, %c0_69] : memref<5x8x72xbf16, #tpu.memory_space<vmem>>, vector<1x8x4xbf16>
    %84 = vector.shape_cast %83 : vector<1x8x4xbf16> to vector<8x4xbf16>
    %cst_70 = arith.constant dense<0.000000e+00> : vector<8x286xf32>
    %85 = tpu.matmul %84, %82, %cst_70 {dimension_numbers = #tpu.dot_dimension_numbers<[1], [0], [0], [1], [0, 0, 1, 1], [], []>} : vector<8x4xbf16>, vector<4x286xbf16>, vector<8x286xf32> -> vector<8x286xf32>
    %c2_71 = arith.constant 2 : index
    %c0_72 = arith.constant 0 : index
    %c0_73 = arith.constant 0 : index
    %86 = vector.load %arg3[%c2_71, %c0_72, %c0_73] : memref<5x8x1xf32, #tpu.memory_space<vmem>>, vector<1x8x1xf32>
    %87 = vector.shape_cast %86 : vector<1x8x1xf32> to vector<8x1xf32>
    %88 = vector.broadcast %87 : vector<8x1xf32> to vector<8x286xf32>
    %89 = arith.addf %85, %88 : vector<8x286xf32>
    %c0_74 = arith.constant 0 : index
    %c109_75 = arith.constant 109 : index
    %90 = vector.load %arg7[%c0_74, %c109_75] : memref<8x512xf32, #tpu.memory_space<vmem>>, vector<8x286xf32>
    %91 = arith.truncf %90 : vector<8x286xf32> to vector<8x286xbf16>
    %c1 = arith.constant 1 : index
    %c0_76 = arith.constant 0 : index
    %c0_77 = arith.constant 0 : index
    %92 = vector.load %arg2[%c1, %c0_76, %c0_77] : memref<5x8x72xbf16, #tpu.memory_space<vmem>>, vector<1x8x8xbf16>
    %93 = vector.shape_cast %92 : vector<1x8x8xbf16> to vector<8x8xbf16>
    %cst_78 = arith.constant dense<0.000000e+00> : vector<8x286xf32>
    %94 = tpu.matmul %93, %91, %cst_78 {dimension_numbers = #tpu.dot_dimension_numbers<[1], [0], [0], [1], [0, 0, 1, 1], [], []>} : vector<8x8xbf16>, vector<8x286xbf16>, vector<8x286xf32> -> vector<8x286xf32>
    %c0_79 = arith.constant 0 : index
    %c110_80 = arith.constant 110 : index
    %95 = vector.load %arg7[%c0_79, %c110_80] : memref<8x512xf32, #tpu.memory_space<vmem>>, vector<8x286xf32>
    %96 = arith.truncf %95 : vector<8x286xf32> to vector<8x286xbf16>
    %c1_81 = arith.constant 1 : index
    %c0_82 = arith.constant 0 : index
    %c8_83 = arith.constant 8 : index
    %97 = vector.load %arg2[%c1_81, %c0_82, %c8_83] : memref<5x8x72xbf16, #tpu.memory_space<vmem>>, vector<1x8x8xbf16>
    %98 = vector.shape_cast %97 : vector<1x8x8xbf16> to vector<8x8xbf16>
    %cst_84 = arith.constant dense<0.000000e+00> : vector<8x286xf32>
    %99 = tpu.matmul %98, %96, %cst_84 {dimension_numbers = #tpu.dot_dimension_numbers<[1], [0], [0], [1], [0, 0, 1, 1], [], []>} : vector<8x8xbf16>, vector<8x286xbf16>, vector<8x286xf32> -> vector<8x286xf32>
    %100 = arith.addf %94, %99 : vector<8x286xf32>
    %c0_85 = arith.constant 0 : index
    %c111_86 = arith.constant 111 : index
    %101 = vector.load %arg7[%c0_85, %c111_86] : memref<8x512xf32, #tpu.memory_space<vmem>>, vector<8x286xf32>
    %102 = arith.truncf %101 : vector<8x286xf32> to vector<8x286xbf16>
    %c1_87 = arith.constant 1 : index
    %c0_88 = arith.constant 0 : index
    %c16_89 = arith.constant 16 : index
    %103 = vector.load %arg2[%c1_87, %c0_88, %c16_89] : memref<5x8x72xbf16, #tpu.memory_space<vmem>>, vector<1x8x8xbf16>
    %104 = vector.shape_cast %103 : vector<1x8x8xbf16> to vector<8x8xbf16>
    %cst_90 = arith.constant dense<0.000000e+00> : vector<8x286xf32>
    %105 = tpu.matmul %104, %102, %cst_90 {dimension_numbers = #tpu.dot_dimension_numbers<[1], [0], [0], [1], [0, 0, 1, 1], [], []>} : vector<8x8xbf16>, vector<8x286xbf16>, vector<8x286xf32> -> vector<8x286xf32>
    %106 = arith.addf %100, %105 : vector<8x286xf32>
    %c0_91 = arith.constant 0 : index
    %c127_92 = arith.constant 127 : index
    %107 = vector.load %arg7[%c0_91, %c127_92] : memref<8x512xf32, #tpu.memory_space<vmem>>, vector<8x286xf32>
    %108 = arith.truncf %107 : vector<8x286xf32> to vector<8x286xbf16>
    %c1_93 = arith.constant 1 : index
    %c0_94 = arith.constant 0 : index
    %c24_95 = arith.constant 24 : index
    %109 = vector.load %arg2[%c1_93, %c0_94, %c24_95] : memref<5x8x72xbf16, #tpu.memory_space<vmem>>, vector<1x8x8xbf16>
    %110 = vector.shape_cast %109 : vector<1x8x8xbf16> to vector<8x8xbf16>
    %cst_96 = arith.constant dense<0.000000e+00> : vector<8x286xf32>
    %111 = tpu.matmul %110, %108, %cst_96 {dimension_numbers = #tpu.dot_dimension_numbers<[1], [0], [0], [1], [0, 0, 1, 1], [], []>} : vector<8x8xbf16>, vector<8x286xbf16>, vector<8x286xf32> -> vector<8x286xf32>
    %112 = arith.addf %106, %111 : vector<8x286xf32>
    %c0_97 = arith.constant 0 : index
    %c128_98 = arith.constant 128 : index
    %113 = vector.load %arg7[%c0_97, %c128_98] : memref<8x512xf32, #tpu.memory_space<vmem>>, vector<8x286xf32>
    %114 = arith.truncf %113 : vector<8x286xf32> to vector<8x286xbf16>
    %c1_99 = arith.constant 1 : index
    %c0_100 = arith.constant 0 : index
    %c32_101 = arith.constant 32 : index
    %115 = vector.load %arg2[%c1_99, %c0_100, %c32_101] : memref<5x8x72xbf16, #tpu.memory_space<vmem>>, vector<1x8x8xbf16>
    %116 = vector.shape_cast %115 : vector<1x8x8xbf16> to vector<8x8xbf16>
    %cst_102 = arith.constant dense<0.000000e+00> : vector<8x286xf32>
    %117 = tpu.matmul %116, %114, %cst_102 {dimension_numbers = #tpu.dot_dimension_numbers<[1], [0], [0], [1], [0, 0, 1, 1], [], []>} : vector<8x8xbf16>, vector<8x286xbf16>, vector<8x286xf32> -> vector<8x286xf32>
    %118 = arith.addf %112, %117 : vector<8x286xf32>
    %c0_103 = arith.constant 0 : index
    %c129_104 = arith.constant 129 : index
    %119 = vector.load %arg7[%c0_103, %c129_104] : memref<8x512xf32, #tpu.memory_space<vmem>>, vector<8x286xf32>
    %120 = arith.truncf %119 : vector<8x286xf32> to vector<8x286xbf16>
    %c1_105 = arith.constant 1 : index
    %c0_106 = arith.constant 0 : index
    %c40 = arith.constant 40 : index
    %121 = vector.load %arg2[%c1_105, %c0_106, %c40] : memref<5x8x72xbf16, #tpu.memory_space<vmem>>, vector<1x8x8xbf16>
    %122 = vector.shape_cast %121 : vector<1x8x8xbf16> to vector<8x8xbf16>
    %cst_107 = arith.constant dense<0.000000e+00> : vector<8x286xf32>
    %123 = tpu.matmul %122, %120, %cst_107 {dimension_numbers = #tpu.dot_dimension_numbers<[1], [0], [0], [1], [0, 0, 1, 1], [], []>} : vector<8x8xbf16>, vector<8x286xbf16>, vector<8x286xf32> -> vector<8x286xf32>
    %124 = arith.addf %118, %123 : vector<8x286xf32>
    %c0_108 = arith.constant 0 : index
    %c145_109 = arith.constant 145 : index
    %125 = vector.load %arg7[%c0_108, %c145_109] : memref<8x512xf32, #tpu.memory_space<vmem>>, vector<8x286xf32>
    %126 = arith.truncf %125 : vector<8x286xf32> to vector<8x286xbf16>
    %c1_110 = arith.constant 1 : index
    %c0_111 = arith.constant 0 : index
    %c48 = arith.constant 48 : index
    %127 = vector.load %arg2[%c1_110, %c0_111, %c48] : memref<5x8x72xbf16, #tpu.memory_space<vmem>>, vector<1x8x8xbf16>
    %128 = vector.shape_cast %127 : vector<1x8x8xbf16> to vector<8x8xbf16>
    %cst_112 = arith.constant dense<0.000000e+00> : vector<8x286xf32>
    %129 = tpu.matmul %128, %126, %cst_112 {dimension_numbers = #tpu.dot_dimension_numbers<[1], [0], [0], [1], [0, 0, 1, 1], [], []>} : vector<8x8xbf16>, vector<8x286xbf16>, vector<8x286xf32> -> vector<8x286xf32>
    %130 = arith.addf %124, %129 : vector<8x286xf32>
    %c0_113 = arith.constant 0 : index
    %c146_114 = arith.constant 146 : index
    %131 = vector.load %arg7[%c0_113, %c146_114] : memref<8x512xf32, #tpu.memory_space<vmem>>, vector<8x286xf32>
    %132 = arith.truncf %131 : vector<8x286xf32> to vector<8x286xbf16>
    %c1_115 = arith.constant 1 : index
    %c0_116 = arith.constant 0 : index
    %c56 = arith.constant 56 : index
    %133 = vector.load %arg2[%c1_115, %c0_116, %c56] : memref<5x8x72xbf16, #tpu.memory_space<vmem>>, vector<1x8x8xbf16>
    %134 = vector.shape_cast %133 : vector<1x8x8xbf16> to vector<8x8xbf16>
    %cst_117 = arith.constant dense<0.000000e+00> : vector<8x286xf32>
    %135 = tpu.matmul %134, %132, %cst_117 {dimension_numbers = #tpu.dot_dimension_numbers<[1], [0], [0], [1], [0, 0, 1, 1], [], []>} : vector<8x8xbf16>, vector<8x286xbf16>, vector<8x286xf32> -> vector<8x286xf32>
    %136 = arith.addf %130, %135 : vector<8x286xf32>
    %c0_118 = arith.constant 0 : index
    %c147_119 = arith.constant 147 : index
    %137 = vector.load %arg7[%c0_118, %c147_119] : memref<8x512xf32, #tpu.memory_space<vmem>>, vector<8x286xf32>
    %138 = arith.truncf %137 : vector<8x286xf32> to vector<8x286xbf16>
    %c1_120 = arith.constant 1 : index
    %c0_121 = arith.constant 0 : index
    %c64 = arith.constant 64 : index
    %139 = vector.load %arg2[%c1_120, %c0_121, %c64] : memref<5x8x72xbf16, #tpu.memory_space<vmem>>, vector<1x8x8xbf16>
    %140 = vector.shape_cast %139 : vector<1x8x8xbf16> to vector<8x8xbf16>
    %cst_122 = arith.constant dense<0.000000e+00> : vector<8x286xf32>
    %141 = tpu.matmul %140, %138, %cst_122 {dimension_numbers = #tpu.dot_dimension_numbers<[1], [0], [0], [1], [0, 0, 1, 1], [], []>} : vector<8x8xbf16>, vector<8x286xbf16>, vector<8x286xf32> -> vector<8x286xf32>
    %142 = arith.addf %136, %141 : vector<8x286xf32>
    %c1_123 = arith.constant 1 : index
    %c0_124 = arith.constant 0 : index
    %c0_125 = arith.constant 0 : index
    %143 = vector.load %arg3[%c1_123, %c0_124, %c0_125] : memref<5x8x1xf32, #tpu.memory_space<vmem>>, vector<1x8x1xf32>
    %144 = vector.shape_cast %143 : vector<1x8x1xf32> to vector<8x1xf32>
    %145 = vector.broadcast %144 : vector<8x1xf32> to vector<8x286xf32>
    %146 = arith.addf %142, %145 : vector<8x286xf32>
    %147 = arith.addf %146, %89 : vector<8x286xf32>
    %cst_126 = arith.constant 0.000000e+00 : f32
    %148 = vector.broadcast %cst_126 : f32 to vector<8x286xf32>
    %149 = arith.maximumf %147, %148 : vector<8x286xf32>
    %150 = vector.broadcast %8 : vector<1x286xf32> to vector<8x286xf32>
    %151 = arith.mulf %149, %150 : vector<8x286xf32>
    %c0_127 = arith.constant 0 : index
    %c128_128 = arith.constant 128 : index
    %152 = vector.load %arg9[%c0_127, %c128_128] : memref<8x512xf32, #tpu.memory_space<vmem>>, vector<8x286xf32>
    tpu.vector_store %arg9[%c0_127, %c128_128], %151 {strides = array<i32>} : memref<8x512xf32, #tpu.memory_space<vmem>>, vector<8x286xf32>,
    %c0_129 = arith.constant 0 : index
    %c0_130 = arith.constant 0 : index
    %153 = vector.load %arg9[%c0_129, %c0_130] : memref<8x512xf32, #tpu.memory_space<vmem>>, vector<8x512xf32>
    %c0_131 = arith.constant 0 : index
    %c0_132 = arith.constant 0 : index
    %c0_133 = arith.constant 0 : index
    %154 = vector.load %arg5[%c0_131, %c0_132, %c0_133] : memref<1x8x512xf32, #tpu.memory_space<vmem>>, vector<1x8x512xf32>
    %155 = vector.shape_cast %154 : vector<1x8x512xf32> to vector<8x512xf32>
    %156 = vector.shape_cast %153 : vector<8x512xf32> to vector<1x8x512xf32>
    tpu.vector_store %arg5[%c0_131, %c0_132, %c0_133], %156 {strides = array<i32>} : memref<1x8x512xf32, #tpu.memory_space<vmem>>, vector<1x8x512xf32>,
    %c0_134 = arith.constant 0 : index
    %c109_135 = arith.constant 109 : index
    %157 = vector.load %arg9[%c0_134, %c109_135] : memref<8x512xf32, #tpu.memory_space<vmem>>, vector<8x286xf32>
    %158 = arith.truncf %157 : vector<8x286xf32> to vector<8x286xbf16>
    %c3 = arith.constant 3 : index
    %c0_136 = arith.constant 0 : index
    %c0_137 = arith.constant 0 : index
    %159 = vector.load %arg2[%c3, %c0_136, %c0_137] : memref<5x8x72xbf16, #tpu.memory_space<vmem>>, vector<1x8x8xbf16>
    %160 = vector.shape_cast %159 : vector<1x8x8xbf16> to vector<8x8xbf16>
    %cst_138 = arith.constant dense<0.000000e+00> : vector<8x286xf32>
    %161 = tpu.matmul %160, %158, %cst_138 {dimension_numbers = #tpu.dot_dimension_numbers<[1], [0], [0], [1], [0, 0, 1, 1], [], []>} : vector<8x8xbf16>, vector<8x286xbf16>, vector<8x286xf32> -> vector<8x286xf32>
    %c0_139 = arith.constant 0 : index
    %c110_140 = arith.constant 110 : index
    %162 = vector.load %arg9[%c0_139, %c110_140] : memref<8x512xf32, #tpu.memory_space<vmem>>, vector<8x286xf32>
    %163 = arith.truncf %162 : vector<8x286xf32> to vector<8x286xbf16>
    %c3_141 = arith.constant 3 : index
    %c0_142 = arith.constant 0 : index
    %c8_143 = arith.constant 8 : index
    %164 = vector.load %arg2[%c3_141, %c0_142, %c8_143] : memref<5x8x72xbf16, #tpu.memory_space<vmem>>, vector<1x8x8xbf16>
    %165 = vector.shape_cast %164 : vector<1x8x8xbf16> to vector<8x8xbf16>
    %cst_144 = arith.constant dense<0.000000e+00> : vector<8x286xf32>
    %166 = tpu.matmul %165, %163, %cst_144 {dimension_numbers = #tpu.dot_dimension_numbers<[1], [0], [0], [1], [0, 0, 1, 1], [], []>} : vector<8x8xbf16>, vector<8x286xbf16>, vector<8x286xf32> -> vector<8x286xf32>
    %167 = arith.addf %161, %166 : vector<8x286xf32>
    %c0_145 = arith.constant 0 : index
    %c111_146 = arith.constant 111 : index
    %168 = vector.load %arg9[%c0_145, %c111_146] : memref<8x512xf32, #tpu.memory_space<vmem>>, vector<8x286xf32>
    %169 = arith.truncf %168 : vector<8x286xf32> to vector<8x286xbf16>
    %c3_147 = arith.constant 3 : index
    %c0_148 = arith.constant 0 : index
    %c16_149 = arith.constant 16 : index
    %170 = vector.load %arg2[%c3_147, %c0_148, %c16_149] : memref<5x8x72xbf16, #tpu.memory_space<vmem>>, vector<1x8x8xbf16>
    %171 = vector.shape_cast %170 : vector<1x8x8xbf16> to vector<8x8xbf16>
    %cst_150 = arith.constant dense<0.000000e+00> : vector<8x286xf32>
    %172 = tpu.matmul %171, %169, %cst_150 {dimension_numbers = #tpu.dot_dimension_numbers<[1], [0], [0], [1], [0, 0, 1, 1], [], []>} : vector<8x8xbf16>, vector<8x286xbf16>, vector<8x286xf32> -> vector<8x286xf32>
    %173 = arith.addf %167, %172 : vector<8x286xf32>
    %c0_151 = arith.constant 0 : index
    %c127_152 = arith.constant 127 : index
    %174 = vector.load %arg9[%c0_151, %c127_152] : memref<8x512xf32, #tpu.memory_space<vmem>>, vector<8x286xf32>
    %175 = arith.truncf %174 : vector<8x286xf32> to vector<8x286xbf16>
    %c3_153 = arith.constant 3 : index
    %c0_154 = arith.constant 0 : index
    %c24_155 = arith.constant 24 : index
    %176 = vector.load %arg2[%c3_153, %c0_154, %c24_155] : memref<5x8x72xbf16, #tpu.memory_space<vmem>>, vector<1x8x8xbf16>
    %177 = vector.shape_cast %176 : vector<1x8x8xbf16> to vector<8x8xbf16>
    %cst_156 = arith.constant dense<0.000000e+00> : vector<8x286xf32>
    %178 = tpu.matmul %177, %175, %cst_156 {dimension_numbers = #tpu.dot_dimension_numbers<[1], [0], [0], [1], [0, 0, 1, 1], [], []>} : vector<8x8xbf16>, vector<8x286xbf16>, vector<8x286xf32> -> vector<8x286xf32>
    %179 = arith.addf %173, %178 : vector<8x286xf32>
    %c0_157 = arith.constant 0 : index
    %c128_158 = arith.constant 128 : index
    %180 = vector.load %arg9[%c0_157, %c128_158] : memref<8x512xf32, #tpu.memory_space<vmem>>, vector<8x286xf32>
    %181 = arith.truncf %180 : vector<8x286xf32> to vector<8x286xbf16>
    %c3_159 = arith.constant 3 : index
    %c0_160 = arith.constant 0 : index
    %c32_161 = arith.constant 32 : index
    %182 = vector.load %arg2[%c3_159, %c0_160, %c32_161] : memref<5x8x72xbf16, #tpu.memory_space<vmem>>, vector<1x8x8xbf16>
    %183 = vector.shape_cast %182 : vector<1x8x8xbf16> to vector<8x8xbf16>
    %cst_162 = arith.constant dense<0.000000e+00> : vector<8x286xf32>
    %184 = tpu.matmul %183, %181, %cst_162 {dimension_numbers = #tpu.dot_dimension_numbers<[1], [0], [0], [1], [0, 0, 1, 1], [], []>} : vector<8x8xbf16>, vector<8x286xbf16>, vector<8x286xf32> -> vector<8x286xf32>
    %185 = arith.addf %179, %184 : vector<8x286xf32>
    %c0_163 = arith.constant 0 : index
    %c129_164 = arith.constant 129 : index
    %186 = vector.load %arg9[%c0_163, %c129_164] : memref<8x512xf32, #tpu.memory_space<vmem>>, vector<8x286xf32>
    %187 = arith.truncf %186 : vector<8x286xf32> to vector<8x286xbf16>
    %c3_165 = arith.constant 3 : index
    %c0_166 = arith.constant 0 : index
    %c40_167 = arith.constant 40 : index
    %188 = vector.load %arg2[%c3_165, %c0_166, %c40_167] : memref<5x8x72xbf16, #tpu.memory_space<vmem>>, vector<1x8x8xbf16>
    %189 = vector.shape_cast %188 : vector<1x8x8xbf16> to vector<8x8xbf16>
    %cst_168 = arith.constant dense<0.000000e+00> : vector<8x286xf32>
    %190 = tpu.matmul %189, %187, %cst_168 {dimension_numbers = #tpu.dot_dimension_numbers<[1], [0], [0], [1], [0, 0, 1, 1], [], []>} : vector<8x8xbf16>, vector<8x286xbf16>, vector<8x286xf32> -> vector<8x286xf32>
    %191 = arith.addf %185, %190 : vector<8x286xf32>
    %c0_169 = arith.constant 0 : index
    %c145_170 = arith.constant 145 : index
    %192 = vector.load %arg9[%c0_169, %c145_170] : memref<8x512xf32, #tpu.memory_space<vmem>>, vector<8x286xf32>
    %193 = arith.truncf %192 : vector<8x286xf32> to vector<8x286xbf16>
    %c3_171 = arith.constant 3 : index
    %c0_172 = arith.constant 0 : index
    %c48_173 = arith.constant 48 : index
    %194 = vector.load %arg2[%c3_171, %c0_172, %c48_173] : memref<5x8x72xbf16, #tpu.memory_space<vmem>>, vector<1x8x8xbf16>
    %195 = vector.shape_cast %194 : vector<1x8x8xbf16> to vector<8x8xbf16>
    %cst_174 = arith.constant dense<0.000000e+00> : vector<8x286xf32>
    %196 = tpu.matmul %195, %193, %cst_174 {dimension_numbers = #tpu.dot_dimension_numbers<[1], [0], [0], [1], [0, 0, 1, 1], [], []>} : vector<8x8xbf16>, vector<8x286xbf16>, vector<8x286xf32> -> vector<8x286xf32>
    %197 = arith.addf %191, %196 : vector<8x286xf32>
    %c0_175 = arith.constant 0 : index
    %c146_176 = arith.constant 146 : index
    %198 = vector.load %arg9[%c0_175, %c146_176] : memref<8x512xf32, #tpu.memory_space<vmem>>, vector<8x286xf32>
    %199 = arith.truncf %198 : vector<8x286xf32> to vector<8x286xbf16>
    %c3_177 = arith.constant 3 : index
    %c0_178 = arith.constant 0 : index
    %c56_179 = arith.constant 56 : index
    %200 = vector.load %arg2[%c3_177, %c0_178, %c56_179] : memref<5x8x72xbf16, #tpu.memory_space<vmem>>, vector<1x8x8xbf16>
    %201 = vector.shape_cast %200 : vector<1x8x8xbf16> to vector<8x8xbf16>
    %cst_180 = arith.constant dense<0.000000e+00> : vector<8x286xf32>
    %202 = tpu.matmul %201, %199, %cst_180 {dimension_numbers = #tpu.dot_dimension_numbers<[1], [0], [0], [1], [0, 0, 1, 1], [], []>} : vector<8x8xbf16>, vector<8x286xbf16>, vector<8x286xf32> -> vector<8x286xf32>
    %203 = arith.addf %197, %202 : vector<8x286xf32>
    %c0_181 = arith.constant 0 : index
    %c147_182 = arith.constant 147 : index
    %204 = vector.load %arg9[%c0_181, %c147_182] : memref<8x512xf32, #tpu.memory_space<vmem>>, vector<8x286xf32>
    %205 = arith.truncf %204 : vector<8x286xf32> to vector<8x286xbf16>
    %c3_183 = arith.constant 3 : index
    %c0_184 = arith.constant 0 : index
    %c64_185 = arith.constant 64 : index
    %206 = vector.load %arg2[%c3_183, %c0_184, %c64_185] : memref<5x8x72xbf16, #tpu.memory_space<vmem>>, vector<1x8x8xbf16>
    %207 = vector.shape_cast %206 : vector<1x8x8xbf16> to vector<8x8xbf16>
    %cst_186 = arith.constant dense<0.000000e+00> : vector<8x286xf32>
    %208 = tpu.matmul %207, %205, %cst_186 {dimension_numbers = #tpu.dot_dimension_numbers<[1], [0], [0], [1], [0, 0, 1, 1], [], []>} : vector<8x8xbf16>, vector<8x286xbf16>, vector<8x286xf32> -> vector<8x286xf32>
    %209 = arith.addf %203, %208 : vector<8x286xf32>
    %c3_187 = arith.constant 3 : index
    %c0_188 = arith.constant 0 : index
    %c0_189 = arith.constant 0 : index
    %210 = vector.load %arg3[%c3_187, %c0_188, %c0_189] : memref<5x8x1xf32, #tpu.memory_space<vmem>>, vector<1x8x1xf32>
    %211 = vector.shape_cast %210 : vector<1x8x1xf32> to vector<8x1xf32>
    %212 = vector.broadcast %211 : vector<8x1xf32> to vector<8x286xf32>
    %213 = arith.addf %209, %212 : vector<8x286xf32>
    %cst_190 = arith.constant 0.000000e+00 : f32
    %214 = vector.broadcast %cst_190 : f32 to vector<8x286xf32>
    %215 = arith.maximumf %213, %214 : vector<8x286xf32>
    %216 = vector.broadcast %8 : vector<1x286xf32> to vector<8x286xf32>
    %217 = arith.mulf %215, %216 : vector<8x286xf32>
    %c0_191 = arith.constant 0 : index
    %c128_192 = arith.constant 128 : index
    %218 = vector.load %arg7[%c0_191, %c128_192] : memref<8x512xf32, #tpu.memory_space<vmem>>, vector<8x286xf32>
    tpu.vector_store %arg7[%c0_191, %c128_192], %217 {strides = array<i32>} : memref<8x512xf32, #tpu.memory_space<vmem>>, vector<8x286xf32>,
    %c0_193 = arith.constant 0 : index
    %c128_194 = arith.constant 128 : index
    %219 = vector.load %arg9[%c0_193, %c128_194] : memref<8x512xf32, #tpu.memory_space<vmem>>, vector<8x286xf32>
    %c0_195 = arith.constant 0 : index
    %c109_196 = arith.constant 109 : index
    %220 = vector.load %arg7[%c0_195, %c109_196] : memref<8x512xf32, #tpu.memory_space<vmem>>, vector<8x286xf32>
    %221 = arith.truncf %220 : vector<8x286xf32> to vector<8x286xbf16>
    %c4_197 = arith.constant 4 : index
    %c0_198 = arith.constant 0 : index
    %c0_199 = arith.constant 0 : index
    %222 = vector.load %arg2[%c4_197, %c0_198, %c0_199] : memref<5x8x72xbf16, #tpu.memory_space<vmem>>, vector<1x8x8xbf16>
    %223 = vector.shape_cast %222 : vector<1x8x8xbf16> to vector<8x8xbf16>
    %cst_200 = arith.constant dense<0.000000e+00> : vector<8x286xf32>
    %224 = tpu.matmul %223, %221, %cst_200 {dimension_numbers = #tpu.dot_dimension_numbers<[1], [0], [0], [1], [0, 0, 1, 1], [], []>} : vector<8x8xbf16>, vector<8x286xbf16>, vector<8x286xf32> -> vector<8x286xf32>
    %c0_201 = arith.constant 0 : index
    %c110_202 = arith.constant 110 : index
    %225 = vector.load %arg7[%c0_201, %c110_202] : memref<8x512xf32, #tpu.memory_space<vmem>>, vector<8x286xf32>
    %226 = arith.truncf %225 : vector<8x286xf32> to vector<8x286xbf16>
    %c4_203 = arith.constant 4 : index
    %c0_204 = arith.constant 0 : index
    %c8_205 = arith.constant 8 : index
    %227 = vector.load %arg2[%c4_203, %c0_204, %c8_205] : memref<5x8x72xbf16, #tpu.memory_space<vmem>>, vector<1x8x8xbf16>
    %228 = vector.shape_cast %227 : vector<1x8x8xbf16> to vector<8x8xbf16>
    %cst_206 = arith.constant dense<0.000000e+00> : vector<8x286xf32>
    %229 = tpu.matmul %228, %226, %cst_206 {dimension_numbers = #tpu.dot_dimension_numbers<[1], [0], [0], [1], [0, 0, 1, 1], [], []>} : vector<8x8xbf16>, vector<8x286xbf16>, vector<8x286xf32> -> vector<8x286xf32>
    %230 = arith.addf %224, %229 : vector<8x286xf32>
    %c0_207 = arith.constant 0 : index
    %c111_208 = arith.constant 111 : index
    %231 = vector.load %arg7[%c0_207, %c111_208] : memref<8x512xf32, #tpu.memory_space<vmem>>, vector<8x286xf32>
    %232 = arith.truncf %231 : vector<8x286xf32> to vector<8x286xbf16>
    %c4_209 = arith.constant 4 : index
    %c0_210 = arith.constant 0 : index
    %c16_211 = arith.constant 16 : index
    %233 = vector.load %arg2[%c4_209, %c0_210, %c16_211] : memref<5x8x72xbf16, #tpu.memory_space<vmem>>, vector<1x8x8xbf16>
    %234 = vector.shape_cast %233 : vector<1x8x8xbf16> to vector<8x8xbf16>
    %cst_212 = arith.constant dense<0.000000e+00> : vector<8x286xf32>
    %235 = tpu.matmul %234, %232, %cst_212 {dimension_numbers = #tpu.dot_dimension_numbers<[1], [0], [0], [1], [0, 0, 1, 1], [], []>} : vector<8x8xbf16>, vector<8x286xbf16>, vector<8x286xf32> -> vector<8x286xf32>
    %236 = arith.addf %230, %235 : vector<8x286xf32>
    %c0_213 = arith.constant 0 : index
    %c127_214 = arith.constant 127 : index
    %237 = vector.load %arg7[%c0_213, %c127_214] : memref<8x512xf32, #tpu.memory_space<vmem>>, vector<8x286xf32>
    %238 = arith.truncf %237 : vector<8x286xf32> to vector<8x286xbf16>
    %c4_215 = arith.constant 4 : index
    %c0_216 = arith.constant 0 : index
    %c24_217 = arith.constant 24 : index
    %239 = vector.load %arg2[%c4_215, %c0_216, %c24_217] : memref<5x8x72xbf16, #tpu.memory_space<vmem>>, vector<1x8x8xbf16>
    %240 = vector.shape_cast %239 : vector<1x8x8xbf16> to vector<8x8xbf16>
    %cst_218 = arith.constant dense<0.000000e+00> : vector<8x286xf32>
    %241 = tpu.matmul %240, %238, %cst_218 {dimension_numbers = #tpu.dot_dimension_numbers<[1], [0], [0], [1], [0, 0, 1, 1], [], []>} : vector<8x8xbf16>, vector<8x286xbf16>, vector<8x286xf32> -> vector<8x286xf32>
    %242 = arith.addf %236, %241 : vector<8x286xf32>
    %c0_219 = arith.constant 0 : index
    %c128_220 = arith.constant 128 : index
    %243 = vector.load %arg7[%c0_219, %c128_220] : memref<8x512xf32, #tpu.memory_space<vmem>>, vector<8x286xf32>
    %244 = arith.truncf %243 : vector<8x286xf32> to vector<8x286xbf16>
    %c4_221 = arith.constant 4 : index
    %c0_222 = arith.constant 0 : index
    %c32_223 = arith.constant 32 : index
    %245 = vector.load %arg2[%c4_221, %c0_222, %c32_223] : memref<5x8x72xbf16, #tpu.memory_space<vmem>>, vector<1x8x8xbf16>
    %246 = vector.shape_cast %245 : vector<1x8x8xbf16> to vector<8x8xbf16>
    %cst_224 = arith.constant dense<0.000000e+00> : vector<8x286xf32>
    %247 = tpu.matmul %246, %244, %cst_224 {dimension_numbers = #tpu.dot_dimension_numbers<[1], [0], [0], [1], [0, 0, 1, 1], [], []>} : vector<8x8xbf16>, vector<8x286xbf16>, vector<8x286xf32> -> vector<8x286xf32>
    %248 = arith.addf %242, %247 : vector<8x286xf32>
    %c0_225 = arith.constant 0 : index
    %c129_226 = arith.constant 129 : index
    %249 = vector.load %arg7[%c0_225, %c129_226] : memref<8x512xf32, #tpu.memory_space<vmem>>, vector<8x286xf32>
    %250 = arith.truncf %249 : vector<8x286xf32> to vector<8x286xbf16>
    %c4_227 = arith.constant 4 : index
    %c0_228 = arith.constant 0 : index
    %c40_229 = arith.constant 40 : index
    %251 = vector.load %arg2[%c4_227, %c0_228, %c40_229] : memref<5x8x72xbf16, #tpu.memory_space<vmem>>, vector<1x8x8xbf16>
    %252 = vector.shape_cast %251 : vector<1x8x8xbf16> to vector<8x8xbf16>
    %cst_230 = arith.constant dense<0.000000e+00> : vector<8x286xf32>
    %253 = tpu.matmul %252, %250, %cst_230 {dimension_numbers = #tpu.dot_dimension_numbers<[1], [0], [0], [1], [0, 0, 1, 1], [], []>} : vector<8x8xbf16>, vector<8x286xbf16>, vector<8x286xf32> -> vector<8x286xf32>
    %254 = arith.addf %248, %253 : vector<8x286xf32>
    %c0_231 = arith.constant 0 : index
    %c145_232 = arith.constant 145 : index
    %255 = vector.load %arg7[%c0_231, %c145_232] : memref<8x512xf32, #tpu.memory_space<vmem>>, vector<8x286xf32>
    %256 = arith.truncf %255 : vector<8x286xf32> to vector<8x286xbf16>
    %c4_233 = arith.constant 4 : index
    %c0_234 = arith.constant 0 : index
    %c48_235 = arith.constant 48 : index
    %257 = vector.load %arg2[%c4_233, %c0_234, %c48_235] : memref<5x8x72xbf16, #tpu.memory_space<vmem>>, vector<1x8x8xbf16>
    %258 = vector.shape_cast %257 : vector<1x8x8xbf16> to vector<8x8xbf16>
    %cst_236 = arith.constant dense<0.000000e+00> : vector<8x286xf32>
    %259 = tpu.matmul %258, %256, %cst_236 {dimension_numbers = #tpu.dot_dimension_numbers<[1], [0], [0], [1], [0, 0, 1, 1], [], []>} : vector<8x8xbf16>, vector<8x286xbf16>, vector<8x286xf32> -> vector<8x286xf32>
    %260 = arith.addf %254, %259 : vector<8x286xf32>
    %c0_237 = arith.constant 0 : index
    %c146_238 = arith.constant 146 : index
    %261 = vector.load %arg7[%c0_237, %c146_238] : memref<8x512xf32, #tpu.memory_space<vmem>>, vector<8x286xf32>
    %262 = arith.truncf %261 : vector<8x286xf32> to vector<8x286xbf16>
    %c4_239 = arith.constant 4 : index
    %c0_240 = arith.constant 0 : index
    %c56_241 = arith.constant 56 : index
    %263 = vector.load %arg2[%c4_239, %c0_240, %c56_241] : memref<5x8x72xbf16, #tpu.memory_space<vmem>>, vector<1x8x8xbf16>
    %264 = vector.shape_cast %263 : vector<1x8x8xbf16> to vector<8x8xbf16>
    %cst_242 = arith.constant dense<0.000000e+00> : vector<8x286xf32>
    %265 = tpu.matmul %264, %262, %cst_242 {dimension_numbers = #tpu.dot_dimension_numbers<[1], [0], [0], [1], [0, 0, 1, 1], [], []>} : vector<8x8xbf16>, vector<8x286xbf16>, vector<8x286xf32> -> vector<8x286xf32>
    %266 = arith.addf %260, %265 : vector<8x286xf32>
    %c0_243 = arith.constant 0 : index
    %c147_244 = arith.constant 147 : index
    %267 = vector.load %arg7[%c0_243, %c147_244] : memref<8x512xf32, #tpu.memory_space<vmem>>, vector<8x286xf32>
    %268 = arith.truncf %267 : vector<8x286xf32> to vector<8x286xbf16>
    %c4_245 = arith.constant 4 : index
    %c0_246 = arith.constant 0 : index
    %c64_247 = arith.constant 64 : index
    %269 = vector.load %arg2[%c4_245, %c0_246, %c64_247] : memref<5x8x72xbf16, #tpu.memory_space<vmem>>, vector<1x8x8xbf16>
    %270 = vector.shape_cast %269 : vector<1x8x8xbf16> to vector<8x8xbf16>
    %cst_248 = arith.constant dense<0.000000e+00> : vector<8x286xf32>
    %271 = tpu.matmul %270, %268, %cst_248 {dimension_numbers = #tpu.dot_dimension_numbers<[1], [0], [0], [1], [0, 0, 1, 1], [], []>} : vector<8x8xbf16>, vector<8x286xbf16>, vector<8x286xf32> -> vector<8x286xf32>
    %272 = arith.addf %266, %271 : vector<8x286xf32>
    %c4_249 = arith.constant 4 : index
    %c0_250 = arith.constant 0 : index
    %c0_251 = arith.constant 0 : index
    %273 = vector.load %arg3[%c4_249, %c0_250, %c0_251] : memref<5x8x1xf32, #tpu.memory_space<vmem>>, vector<1x8x1xf32>
    %274 = vector.shape_cast %273 : vector<1x8x1xf32> to vector<8x1xf32>
    %275 = vector.broadcast %274 : vector<8x1xf32> to vector<8x286xf32>
    %276 = arith.addf %272, %275 : vector<8x286xf32>
    %277 = arith.addf %276, %219 : vector<8x286xf32>
    %cst_252 = arith.constant 0.000000e+00 : f32
    %278 = vector.broadcast %cst_252 : f32 to vector<8x286xf32>
    %279 = arith.maximumf %277, %278 : vector<8x286xf32>
    %280 = vector.broadcast %8 : vector<1x286xf32> to vector<8x286xf32>
    %281 = arith.mulf %279, %280 : vector<8x286xf32>
    %c0_253 = arith.constant 0 : index
    %c128_254 = arith.constant 128 : index
    %282 = vector.load %arg9[%c0_253, %c128_254] : memref<8x512xf32, #tpu.memory_space<vmem>>, vector<8x286xf32>
    tpu.vector_store %arg9[%c0_253, %c128_254], %281 {strides = array<i32>} : memref<8x512xf32, #tpu.memory_space<vmem>>, vector<8x286xf32>,
    %c0_255 = arith.constant 0 : index
    %c0_256 = arith.constant 0 : index
    %283 = vector.load %arg9[%c0_255, %c0_256] : memref<8x512xf32, #tpu.memory_space<vmem>>, vector<8x512xf32>
    %c0_257 = arith.constant 0 : index
    %c0_258 = arith.constant 0 : index
    %c0_259 = arith.constant 0 : index
    %284 = vector.load %arg6[%c0_257, %c0_258, %c0_259] : memref<1x8x512xf32, #tpu.memory_space<vmem>>, vector<1x8x512xf32>
    %285 = vector.shape_cast %284 : vector<1x8x512xf32> to vector<8x512xf32>
    %286 = vector.shape_cast %283 : vector<8x512xf32> to vector<1x8x512xf32>
    tpu.vector_store %arg6[%c0_257, %c0_258, %c0_259], %286 {strides = array<i32>} : memref<1x8x512xf32, #tpu.memory_space<vmem>>, vector<1x8x512xf32>,
    return
  }
  func.func @transform_0(%arg0: i32) -> (i32, i32, i32) {
    %c0_i32 = arith.constant 0 : i32
    %c0_i32_0 = arith.constant 0 : i32
    %c0_i32_1 = arith.constant 0 : i32
    return %arg0, %c0_i32, %c0_i32_0 : i32, i32, i32
  }
  func.func @transform_1(%arg0: i32) -> (i32, i32, i32) {
    %c0_i32 = arith.constant 0 : i32
    %c0_i32_0 = arith.constant 0 : i32
    %c0_i32_1 = arith.constant 0 : i32
    %c0_i32_2 = arith.constant 0 : i32
    return %c0_i32, %c0_i32_0, %c0_i32_1 : i32, i32, i32
  }
  func.func @transform_2(%arg0: i32) -> (i32, i32, i32) {
    %c0_i32 = arith.constant 0 : i32
    %c0_i32_0 = arith.constant 0 : i32
    %c0_i32_1 = arith.constant 0 : i32
    %c0_i32_2 = arith.constant 0 : i32
    return %c0_i32, %c0_i32_0, %c0_i32_1 : i32, i32, i32
  }
  func.func @transform_3(%arg0: i32) -> (i32, i32) {
    %c0_i32 = arith.constant 0 : i32
    %c0_i32_0 = arith.constant 0 : i32
    %c0_i32_1 = arith.constant 0 : i32
    return %c0_i32, %c0_i32_0 : i32, i32
  }
  func.func @transform_4(%arg0: i32) -> (i32, i32, i32) {
    %c0_i32 = arith.constant 0 : i32
    %c0_i32_0 = arith.constant 0 : i32
    %c0_i32_1 = arith.constant 0 : i32
    return %arg0, %c0_i32, %c0_i32_0 : i32, i32, i32
  }
  func.func @transform_5(%arg0: i32) -> (i32, i32, i32) {
    %c0_i32 = arith.constant 0 : i32
    %c0_i32_0 = arith.constant 0 : i32
    %c0_i32_1 = arith.constant 0 : i32
    return %arg0, %c0_i32, %c0_i32_0 : i32, i32, i32
  }
}

</mosaic_0001>

<bundles_post_ra>
// kernel: tpu_custom_call.1
= control target key start
LH: loop header
LB: loop body
LE: loop exit
PB: predicated region body
PF: predicated region fallthrough
CT: control target
= control target key end

     0   :  { %11 = vsyncpa [#allocation6], 0  ;;  %s4410_s0 = inlined_call_operand.vmem [shape: f32[2,4,512], index: 0, kind: input, shape index: {}]   ;;  %s4411_s1 = inlined_call_operand.hbm [shape: bf16[5,8,72], index: 1, kind: input, shape index: {}]   ;;  %s4412_s2 = inlined_call_operand.vmem [shape: f32[5,8,1], index: 2, kind: input, shape index: {}]   ;;  %s4413_s3 = inlined_call_operand.vmem [shape: f32[1,512], index: 3, kind: input, shape index: {}]   ;;  %s4414_s4 = inlined_call_operand.hbm [shape: f32[2,8,512], index: 4, kind: output, shape index: {0}]   ;;  %s4415_s5 = inlined_call_operand.hbm [shape: f32[2,8,512], index: 5, kind: output, shape index: {1}]  }
   0x1   :  { %12 = vsyncpa [#allocation7], 0 }
   0x2   :  { %14 = vsyncpa [#allocation7 + $0x1], 0 }
   0x3   :  { %15 = vsyncpa [#allocation10], 0 }
   0x4   :  { %17 = vsyncpa [#allocation10 + $0x1], 0  ;;  %s3558_s18 = smov 0   ;;  %s3560_s19 = smov 0  }
   0x5   :  { %s3562_s20 = smov 0   ;;  %s3564_s21 = smov 0  }
   0x6 LB: > { %s3579_s22 = sadd.s32 4294967295, %s3500_s21   ;;  %s3153_s23 = sadd.s32 4294967294, %s3500_s21   ;;  %s3500_s21 = sphi %s3564_s21, %s4445_s21   ;;  %s3496_s20 = sphi %s3562_s20, %s4444_s20   ;;  %s3492_s19 = sphi %s3560_s19, %s4443_s19   ;;  %s3488_s18 = sphi %s3558_s18, %s4442_s18  }
   0x7   : > { %s3583_s24 = sadd.s32 1, %s3500_s21   ;;  %s119_s25 = sadd.s32 1, %s3496_s20 }
   0x8   : > { %s116_s26 = ssub.s32 %s3500_s21, %s3583_s24  ;;  %p129_p0 = scmp.ne.s32.totalorder %s3496_s20, %s3492_s19 }
   0x9   : > { %p117_p1 = scmp.eq.s32.totalorder %s116_s26, 0  ;;  %p130_p2 = scmp.eq.s32.totalorder %s3579_s22, 1 }
   0xa   : > { %p135_p3 = scmp.ne.s32.totalorder %s3492_s19, %s3488_s18  ;;  %p136_p4 = scmp.eq.s32.totalorder %s3153_s23, 1 }
   0xb   : > { %s3594_s27 = scalar_select %p117_p1, %s3496_s20, %s119_s25  }
   0xc   : > { %p3596_p5 = por %p130_p2, %p129_p0  ;;  %p3600_p6 = por %p136_p4, %p135_p3 }
   0xd   : > { %p3154_p7 = scmp.ge.s32.totalorder %s3500_s21, 1  ;;  %p169_p8 = scmp.lt.s32.totalorder %s3500_s21, 3 }
   0xe   : > { %p3308_p9 = scmp.eq.s32.totalorder %s3579_s22, 0  ;;  %s180_s7 = sshll.u32 %s4411_s1, 4  ;;  %s181_s7 = int_to_ptr.hbm [resolvable:$true] %s180_s7 }
   0xf   : > { %p170_p10 = pnand %p3154_p7, %p169_p8  ;;  %s3502_s8 = smov [#allocation5]  }
  0x10   : > { %s182_s9 = sshll.u32 %s3502_s8, 4  ;;  %s3503_s10 = smov 64   ;;  %s183_s9 = int_to_ptr.vmem [resolvable:$true] %s182_s9 }
  0x11   : > { %p3297_p11 = pneg %p170_p10  ;;  %s3504_s11 = smov 4  }
  0x12   : > { %212 = sbr.rel (%p170_p10) target bundleno = 1527 (0x5f7), region = 36 }
  0x13   : > { %p3298_p12 = pnand %p3308_p9, %p3297_p11 }
  0x15   : > { %3300 = dma.hbm_to_vmem [thread:$0]  (!%p3298_p12), %s181_s7, 320, %s183_s9, [#allocation6], %s3503_s10, %s3503_s10, %s3504_s11  }
  0x17   : > { %3475 = dma.done.wait (%p3308_p9), [#allocation6], 320  }
  0x18   : > { %3477 = vsyncadd (%p3308_p9), [#allocation6], 4294966976  ;;  %p246_p13 = scmp.lt.s32.totalorder %s3579_s22, 1  ;;  %v299_v6 = vld [vmem:[#allocation5] sm:$0xf]  ;;  %s3505_s17 = smov 124  }
  0x19   : > { %v301_v7 = vunpack.c.l.b16 %v299_v6  ;;  %s3506_s23 = smov 18   ;;  %s3507_s25 = smov 19   ;;  %v460_v31 = vld [vmem:[#allocation5] sm:$0xf]  ;;  %vm317_vm0 = vcmask 146432   ;;  %vm325_vm1 = vcmask 1041408  }
  0x1a   : > { %s247_s12 = scalar_select %p246_p13, %s3579_s22, 1  ;;  %v462_v32 = vunpack.c.l.b16 %v460_v31  ;;  %v555_v47 = vld [vmem:[#allocation5] sm:$0xf]  ;;  %vm321_vm2 = vcmask 31744   ;;  %vm386_vm3 = vcmask 154624   ;;  %vm478_vm4 = vcmask 138240  }
  0x1b   : > { %v302_v8 = vpack.c.b16 %v301_v7, %v301_v7  ;;  %s3508_s26 = smov 120   ;;  %s3509_s30 = smov 17   ;;  %v557_v48 = vunpack.c.l.b16 %v555_v47  ;;  %v647_v50 = vld [vmem:[#allocation5] sm:$0xf]  ;;  %vm573_vm5 = vcmask 7168   ;;  %vm738_vm6 = vcmask 1039360  }
  0x1c   : > { %s3286_s13 = sshll.u32 %s247_s12, 4  ;;  %v463_v35 = vpack.c.b16 %v462_v32, %v462_v32  ;;  %s3510_s6 = smov 1   ;;  %v649_v55 = vunpack.c.l.b16 %v647_v50  ;;  %vm826_vm7 = vcmask 908288   ;;  %vm914_vm8 = vcmask 900096  }
  0x1d   : > { %s3621_s16 = scalar_lea.vmem %s4410_s0, %s3286_s13  ;;  %303 = vrot.lane.b32.xlu2 %v302_v8, %s3505_s17  ;;  %v558_v51 = vpack.c.b16 %v557_v48, %v557_v48  ;;  %s3511_s7 = smov 116   ;;  %vm1002_vm9 = vcmask 891904   ;;  %vm253_vm10 = vcmask 1047792   ;;  %vm1083_vm11 = vcmask 244736  }
  0x1e   : > { %v261_v0 = vld [vmem:[%s3621_s16 + $0x8] sm:$0xff]  ;;  %v260_v1 = vld [vmem:[%s3621_s16] sm:$0xff]  ;;  %v650_v59 = vpack.c.b16 %v649_v55, %v649_v55  ;;  %s3512_s8 = smov 127   ;;  %s3513_s9 = smov 112   ;;  %vm1195_vm12 = vcmask 1043456   ;;  %vm1191_vm13 = vcmask 64512  }
  0x1f   : > { %266 = vst [vmem:[#allocation1 + $0x10] ss:$2 sm:$0xff] %v261_v0  ;;  %v632_v23 = vld [vmem:[%s3621_s16 + $0xc] sm:$0xf]  ;;  %v3632_v25 = vld [vmem:[%s3621_s16 + $0x4] sm:$0xff]  ;;  %s4429_s10 = smov 111  }
  0x20   : > { %264 = vst [vmem:[#allocation1] ss:$2 sm:$0xff] %v260_v1  ;;  %v708_v34 = vld [vmem:[%s3621_s16 + $0xc] sm:$0xf]  ;;  %s3515_s11 = smov 104   ;;  %s3516_s12 = smov 108  }
  0x21   : > { %v796_v46 = vld [vmem:[%s3621_s16 + $0xc] sm:$0xf]  ;;  %s4422_s13 = smov 110   ;;  %s3518_s14 = smov 100  }
  0x22   : > { %v884_v57 = vld [vmem:[%s3621_s16 + $0xc] sm:$0xf]  ;;  %s4427_s15 = smov 109   ;;  %s4425_s17 = smov 96  }
  0x23   : > { %v972_v6 = vld [vmem:[%s3621_s16 + $0xc] sm:$0xf] }
  0x26   : > { %v269_v2 = vld.sshfl [vmem:[#allocation1 + $0x10] sm:$0xff pattern:$0x75316420]  ;;  %v270_v3 = vld.sshfl [vmem:[#allocation1 + $0x18] sm:$0xff pattern:$0x75316420] }
  0x27   : > { %286 = vst [vmem:[#allocation1 + $0x10] ss:$2 sm:$0xff] %v261_v0  ;;  %v267_v4 = vld.sshfl [vmem:[#allocation1] sm:$0xff pattern:$0x75316420]  ;;  %v278_v22 = vpack.c.bf16 %v270_v3, %v270_v3  ;;  %v277_v24 = vpack.c.bf16 %v269_v2, %v269_v2 }
  0x28   : > { %v268_v5 = vld.sshfl [vmem:[#allocation1 + $0x8] sm:$0xff pattern:$0x75316420]  ;;  %v275_v15 = vpack.c.bf16 %v267_v4, %v267_v4 }
  0x29   : > { %284 = vst [vmem:[#allocation1] ss:$2 sm:$0xff] %v260_v1  ;;  %v276_v28 = vpack.c.bf16 %v268_v5, %v268_v5  ;;  %v811_v5 = vld [vmem:[#allocation5] sm:$0xf] }
  0x2a   : > { %378 = vrot.lane.b32.xlu2 %v275_v15, %s3507_s25  ;;  %v813_v7 = vunpack.c.l.b16 %v811_v5 }
  0x2e   : > { %v289_v9 = vld.sshfl [vmem:[#allocation1 + $0x10] sm:$0xff pattern:$0x75316420]  ;;  %v290_v10 = vld.sshfl [vmem:[#allocation1 + $0x18] sm:$0xff pattern:$0x75316420] }
  0x2f   : > { %v297_v11 = vpack.c.bf16 %v289_v9, %v289_v9  ;;  %447 = vst [vmem:[#allocation1 + $0x10] ss:$2 sm:$0xff] %v261_v0  ;;  %v298_v16 = vpack.c.bf16 %v290_v10, %v290_v10  ;;  %v814_v9 = vpack.c.b16 %v813_v7, %v813_v7 }
  0x30   : > { %v287_v12 = vld.sshfl [vmem:[#allocation1] sm:$0xff pattern:$0x75316420]  ;;  %v288_v13 = vld.sshfl [vmem:[#allocation1 + $0x8] sm:$0xff pattern:$0x75316420] }
  0x31   : > { %313 = vrot.lane.b32.xlu1 %v297_v11, %s3506_s23  ;;  %v295_v14 = vpack.c.bf16 %v287_v12, %v287_v12  ;;  %445 = vst [vmem:[#allocation1] ss:$2 sm:$0xff] %v260_v1  ;;  %v296_v19 = vpack.c.bf16 %v288_v13, %v288_v13  ;;  %v899_v13 = vld [vmem:[#allocation5] sm:$0xf] }
  0x32   : > { %384 = vrot.lane.b32.xlu2 %v278_v22, %s3507_s25  ;;  %v901_v15 = vunpack.c.l.b16 %v899_v13 }
  0x33   : > { %309 = vrot.lane.b32.xlu0 %v295_v14, %s3506_s23 }
  0x36   : > { %v451_v17 = vld.sshfl [vmem:[#allocation1 + $0x18] sm:$0xff pattern:$0x75316420]  ;;  %v450_v18 = vld.sshfl [vmem:[#allocation1 + $0x10] sm:$0xff pattern:$0x75316420] }
  0x37   : > { %542 = vst [vmem:[#allocation1 + $0x10] ss:$2 sm:$0xff] %v261_v0  ;;  %v459_v41 = vpack.c.bf16 %v451_v17, %v451_v17  ;;  %v458_v42 = vpack.c.bf16 %v450_v18, %v450_v18 }
  0x38   : > { %v449_v20 = vld.sshfl [vmem:[#allocation1 + $0x8] sm:$0xff pattern:$0x75316420]  ;;  %v448_v21 = vld.sshfl [vmem:[#allocation1] sm:$0xff pattern:$0x75316420] }
  0x39   : > { %315 = vrot.lane.b32.xlu1 %v298_v16, %s3506_s23  ;;  %540 = vst [vmem:[#allocation1] ss:$2 sm:$0xff] %v260_v1  ;;  %v457_v33 = vpack.c.bf16 %v449_v20, %v449_v20  ;;  %v456_v37 = vpack.c.bf16 %v448_v21, %v448_v21  ;;  %v723_v1 = vld [vmem:[#allocation5] sm:$0xf]  ;;  %v902_v16 = vpack.c.b16 %v901_v15, %v901_v15 }
  0x3a   : > { %464 = vrot.lane.b32.xlu2 %v463_v35, %s3508_s26  ;;  %v725_v3 = vunpack.c.l.b16 %v723_v1 }
  0x3b   : > { %311 = vrot.lane.b32.xlu0 %v296_v19, %s3506_s23 }
  0x3c   : > { %v726_v8 = vpack.c.b16 %v725_v3, %v725_v3 }
  0x3e   : > { %v545_v26 = vld.sshfl [vmem:[#allocation1 + $0x10] sm:$0xff pattern:$0x75316420]  ;;  %v3635_v27 = vld.sshfl [vmem:[#allocation1 + $0x18] sm:$0xff pattern:$0x75316420] }
  0x3f   : > { %637 = vst [vmem:[#allocation1 + $0x10] ss:$2 sm:$0xff] %v632_v23  ;;  %v553_v49 = vpack.c.bf16 %v545_v26, %v545_v26  ;;  %v554_v60 = vpack.c.bf16 %v3635_v27, %v3635_v27  ;;  %v987_v26 = vld [vmem:[#allocation5] sm:$0xf] }
  0x40   : > { %v543_v29 = vld.sshfl [vmem:[#allocation1] sm:$0xff pattern:$0x75316420]  ;;  %v544_v30 = vld.sshfl [vmem:[#allocation1 + $0x8] sm:$0xff pattern:$0x75316420]  ;;  %v989_v27 = vunpack.c.l.b16 %v987_v26 }
  0x41   : > { %382 = vrot.lane.b32.xlu1 %v277_v24, %s3507_s25  ;;  %635 = vst [vmem:[#allocation1] ss:$2 sm:$0xff] %v3632_v25  ;;  %v551_v40 = vpack.c.bf16 %v543_v29, %v543_v29  ;;  %v552_v52 = vpack.c.bf16 %v544_v30, %v544_v30 }
  0x43   : > { %380 = vrot.lane.b32.xlu0 %v276_v28, %s3507_s25  ;;  %565 = vrot.lane.b32.xlu2 %v551_v40, %s3510_s6  ;;  %v990_v28 = vpack.c.b16 %v989_v27, %v989_v27 }
  0x46   : > { %v3641_v36 = vld.sshfl [vmem:[#allocation1 + $0x10] sm:$0xff pattern:$0x75316420] }
  0x47   : > { %713 = vst [vmem:[#allocation1 + $0x10] ss:$2 sm:$0xff] %v708_v34  ;;  %v646_v3 = vpack.c.bf16 %v3641_v36, %v3641_v36 }
  0x48   : > { %v3643_v38 = vld.sshfl [vmem:[#allocation1] sm:$0xff pattern:$0x75316420]  ;;  %v3645_v39 = vld.sshfl [vmem:[#allocation1 + $0x8] sm:$0xff pattern:$0x75316420] }
  0x49   : > { %472 = vrot.lane.b32.xlu1 %v457_v33, %s3509_s30  ;;  %711 = vst [vmem:[#allocation1] ss:$2 sm:$0xff] %v3632_v25 }
  0x4b   : > { %470 = vrot.lane.b32.xlu0 %v456_v37, %s3509_s30  ;;  %559 = vrot.lane.b32.xlu2 %v558_v51, %s3511_s7  ;;  %s4416_s7 = smov 72  }
  0x4e   : > { %v716_v43 = vld.sshfl [vmem:[#allocation1 + $0x10] sm:$0xff pattern:$0x75316420] }
  0x4f   : > { %801 = vst [vmem:[#allocation1 + $0x10] ss:$2 sm:$0xff] %v796_v46  ;;  %v722_v0 = vpack.c.bf16 %v716_v43, %v716_v43 }
  0x50   : > { %v714_v44 = vld.sshfl [vmem:[#allocation1] sm:$0xff pattern:$0x75316420]  ;;  %v715_v45 = vld.sshfl [vmem:[#allocation1 + $0x8] sm:$0xff pattern:$0x75316420] }
  0x51   : > { %476 = vrot.lane.b32.xlu1 %v459_v41, %s3509_s30  ;;  %799 = vst [vmem:[#allocation1] ss:$2 sm:$0xff] %v3632_v25  ;;  %v720_v58 = vpack.c.bf16 %v714_v44, %v714_v44  ;;  %v721_v2 = vpack.c.bf16 %v715_v45, %v715_v45 }
  0x53   : > { %474 = vrot.lane.b32.xlu0 %v458_v42, %s3509_s30  ;;  %732 = vrot.lane.b32.xlu2 %v720_v58, %s3512_s8  ;;  %v644_v58 = vpack.c.bf16 %v3643_v38, %v3643_v38  ;;  %v645_v38 = vpack.c.bf16 %v3645_v39, %v3645_v39 }
  0x56   : > { %v804_v56 = vld.sshfl [vmem:[#allocation1 + $0x10] sm:$0xff pattern:$0x75316420] }
  0x57   : > { %889 = vst [vmem:[#allocation1 + $0x10] ss:$2 sm:$0xff] %v884_v57  ;;  %v810_v14 = vpack.c.bf16 %v804_v56, %v804_v56 }
  0x58   : > { %v802_v53 = vld.sshfl [vmem:[#allocation1] sm:$0xff pattern:$0x75316420]  ;;  %v803_v54 = vld.sshfl [vmem:[#allocation1 + $0x8] sm:$0xff pattern:$0x75316420] }
  0x59   : > { %569 = vrot.lane.b32.xlu1 %v553_v49, %s3510_s6  ;;  %887 = vst [vmem:[#allocation1] ss:$2 sm:$0xff] %v3632_v25  ;;  %v808_v63 = vpack.c.bf16 %v802_v53, %v802_v53  ;;  %v809_v10 = vpack.c.bf16 %v803_v54, %v803_v54 }
  0x5b   : > { %567 = vrot.lane.b32.xlu0 %v552_v52, %s3510_s6  ;;  %820 = vrot.lane.b32.xlu2 %v808_v63, %s4429_s10  ;;  %v279_v52 = vld [vmem:[#allocation5] sm:$0xf] }
  0x5e   : > { %v892_v4 = vld.sshfl [vmem:[#allocation1 + $0x10] sm:$0xff pattern:$0x75316420] }
  0x5f   : > { %977 = vst [vmem:[#allocation1 + $0x10] ss:$2 sm:$0xff] %v972_v6  ;;  %v898_v17 = vpack.c.bf16 %v892_v4, %v892_v4 }
  0x60   : > { %v891_v61 = vld.sshfl [vmem:[#allocation1 + $0x8] sm:$0xff pattern:$0x75316420]  ;;  %v890_v62 = vld.sshfl [vmem:[#allocation1] sm:$0xff pattern:$0x75316420] }
  0x61   : > { %651 = vrot.lane.b32.xlu1 %v650_v59, %s3513_s9  ;;  %975 = vst [vmem:[#allocation1] ss:$2 sm:$0xff] %v3632_v25  ;;  %v897_v11 = vpack.c.bf16 %v891_v61, %v891_v61  ;;  %v896_v12 = vpack.c.bf16 %v890_v62, %v890_v62 }
  0x63   : > { %571 = vrot.lane.b32.xlu0 %v554_v60, %s3510_s6  ;;  %815 = vrot.lane.b32.xlu2 %v814_v9, %s3515_s11  ;;  %v660_v9 = vsel %vm325_vm1, %v645_v38, 0 }
  0x66   : > { %v980_v18 = vld.sshfl [vmem:[#allocation1 + $0x10] sm:$0xff pattern:$0x75316420] }
  0x67   : > { %v986_v20 = vpack.c.bf16 %v980_v18, %v980_v18 }
  0x68   : > { %v979_v19 = vld.sshfl [vmem:[#allocation1 + $0x8] sm:$0xff pattern:$0x75316420]  ;;  %v978_v22 = vld.sshfl [vmem:[#allocation1] sm:$0xff pattern:$0x75316420] }
  0x69   : > { %736 = vrot.lane.b32.xlu1 %v722_v0, %s3512_s8  ;;  %v985_v21 = vpack.c.bf16 %v979_v19, %v979_v19  ;;  %v984_v23 = vpack.c.bf16 %v978_v22, %v978_v22  ;;  %1089 = vst [vmem:[#allocation1] ss:$2 sm:$0xff] %v3632_v25  ;;  %v657_v0 = vsel %vm325_vm1, %v644_v58, 0 }
  0x6b   : > { %734 = vrot.lane.b32.xlu0 %v721_v2, %s3512_s8  ;;  %910 = vrot.lane.b32.xlu2 %v897_v11, %s4422_s13 }
  0x71   : > { %727 = vrot.lane.b32.xlu1 %v726_v8, %s3516_s12  ;;  %s4426_s12 = smov 88  }
  0x73   : > { %822 = vrot.lane.b32.xlu0 %v809_v10, %s4429_s10  ;;  %996 = vrot.lane.b32.xlu2 %v984_v23, %s4427_s15  ;;  %v663_v10 = vsel %vm325_vm1, %v646_v3, 0 }
  0x77   : > { %v304_v24 = vpop.permute.xlu2 %303 }
  0x79   : > { %908 = vrot.lane.b32.xlu1 %v896_v12, %s4422_s13 }
  0x7b   : > { %824 = vrot.lane.b32.xlu0 %v810_v14, %s4429_s10  ;;  %991 = vrot.lane.b32.xlu2 %v990_v28, %s4425_s17 }
  0x81   : > { %903 = vrot.lane.b32.xlu1 %v902_v16, %s3518_s14  ;;  %s4418_s14 = smov 80  }
  0x83   : > { %912 = vrot.lane.b32.xlu0 %v898_v17, %s4422_s13 }
  0x84   : > { %v379_v29 = vpop.permute.xlu2 %378 }
  0x89   : > { %1000 = vrot.lane.b32.xlu1 %v986_v20, %s4427_s15 }
  0x8b   : > { %998 = vrot.lane.b32.xlu0 %v985_v21, %s4427_s15 }
  0x8c   : > { %v385_v32 = vpop.permute.xlu2 %384 }
  0x94   : > { %v465_v43 = vpop.permute.xlu2 %464 }
  0x9d   : > { %v566_v53 = vpop.permute.xlu2 %565 }
  0xa3   : > { %v314_v30 = vpop.permute.xlu1 %313 }
  0xa5   : > { %v310_v31 = vpop.permute.xlu0 %309  ;;  %v560_v60 = vpop.permute.xlu2 %559 }
  0xab   : > { %v316_v33 = vpop.permute.xlu1 %315 }
  0xac   : > { %v320_v34 = vsel %vm317_vm0, %v314_v30, %v316_v33 }
  0xad   : > { %v312_v35 = vpop.permute.xlu0 %311  ;;  %v333_v25 = vsel %vm325_vm1, %v320_v34, 0  ;;  %v733_v5 = vpop.permute.xlu2 %732 }
  0xae   : > { %v318_v37 = vsel %vm317_vm0, %v310_v31, %v312_v35  ;;  %v319_v40 = vsel %vm317_vm0, %v312_v35, %v314_v30  ;;  %368 = vmatpush.bf16.msra.mxu2 %v333_v25 }
  0xaf   : > { %v327_v41 = vsel %vm325_vm1, %v318_v37, 0  ;;  %v330_v42 = vsel %vm325_vm1, %v319_v40, 0  ;;  %v1059_v40 = vld [vmem:[%s4412_s2] sm:$0xff] }
  0xb0   : > { %342 = vmatpush.bf16.msra.mxu0 %v327_v41  ;;  %355 = vmatpush.bf16.msra.mxu1 %v330_v42  ;;  %v3521_v42 = vmov 0  }
  0xb1   : > { %3165 = vmatmul.msk.bf16.vlgmr.msra.gmra.mxu2 %vm321_vm2, %v304_v24  ;;  %3368 = vset.pattern.permute.xlu0 %v3521_v42 }
  0xb2   : > { %3369 = vset.pattern.permute.xlu2 %v3521_v42  ;;  %1062 = vperm.xlu0 %3368, %v1059_v40  }
  0xb3   : > { %3163 = vmatmul.msk.bf16.vlgmr.msra.gmra.mxu0 %vm321_vm2, %v304_v24  ;;  %3164 = vmatmul.msk.bf16.vlgmr.msra.gmra.mxu1 %vm321_vm2, %v304_v24  ;;  %v383_v44 = vpop.permute.xlu1 %382 }
  0xb4   : > { %v389_v45 = vsel %vm386_vm3, %v383_v44, %v385_v32  ;;  %3370 = vset.pattern.permute.xlu1 %v3521_v42 }
  0xb5   : > { %v381_v46 = vpop.permute.xlu0 %380  ;;  %v400_v47 = vsel %vm325_vm1, %v389_v45, 0  ;;  %v821_v13 = vpop.permute.xlu2 %820 }
  0xb6   : > { %v388_v48 = vsel %vm386_vm3, %v381_v46, %v383_v44  ;;  %v387_v49 = vsel %vm386_vm3, %v379_v29, %v381_v46  ;;  %435 = vmatpush.bf16.msrb.mxu1 %v400_v47 }
  0xb7   : > { %v397_v50 = vsel %vm325_vm1, %v388_v48, 0  ;;  %v394_v51 = vsel %vm325_vm1, %v387_v49, 0 }
  0xb8   : > { %422 = vmatpush.bf16.msrb.mxu0 %v397_v50  ;;  %409 = vmatpush.bf16.msra.mxu3 %v394_v51 }
  0xbb   : > { %3166 = vmatmul.msk.bf16.vlgmr.msra.gmra.mxu3 %vm321_vm2, %v279_v52  ;;  %v473_v54 = vpop.permute.xlu1 %472 }
  0xbd   : > { %v471_v55 = vpop.permute.xlu0 %470  ;;  %v816_v23 = vpop.permute.xlu2 %815 }
  0xbe   : > { %v479_v56 = vsel %vm478_vm4, %v471_v55, %v473_v54 }
  0xbf   : > { %v486_v57 = vsel %vm325_vm1, %v479_v56, 0 }
  0xc0   : > { %501 = vmatpush.bf16.msrb.mxu2 %v486_v57 }
  0xc3   : > { %3167 = vmatmul.msk.bf16.vlgmr.msrb.gmra.mxu0 %vm321_vm2, %v279_v52  ;;  %3168 = vmatmul.msk.bf16.vlgmr.msrb.gmra.mxu1 %vm321_vm2, %v279_v52  ;;  %v477_v59 = vpop.permute.xlu1 %476 }
  0xc4   : > { %3169 = vmatmul.msk.bf16.vlgmr.msrb.gmra.mxu2 %vm321_vm2, %v465_v43 }
  0xc5   : > { %v475_v61 = vpop.permute.xlu0 %474  ;;  %v911_v29 = vpop.permute.xlu2 %910 }
  0xc6   : > { %v481_v62 = vsel %vm478_vm4, %v475_v61, %v477_v59  ;;  %v480_v63 = vsel %vm478_vm4, %v473_v54, %v475_v61 }
  0xc7   : > { %v492_v1 = vsel %vm325_vm1, %v481_v62, 0  ;;  %v489_v2 = vsel %vm325_vm1, %v480_v63, 0 }
  0xc8   : > { %514 = vmatpush.bf16.msrb.mxu3 %v489_v2  ;;  %527 = vmatpush.bf16.msra.mxu0 %v492_v1 }
  0xcb   : > { %3170 = vmatmul.msk.bf16.vlgmr.msrb.gmra.mxu3 %vm321_vm2, %v465_v43  ;;  %v570_v4 = vpop.permute.xlu1 %569 }
  0xcc   : > { %672 = vmatpush.bf16.msrb.mxu0 %v657_v0 }
  0xcd   : > { %v568_v6 = vpop.permute.xlu0 %567  ;;  %v997_v46 = vpop.permute.xlu2 %996 }
  0xce   : > { %v574_v7 = vsel %vm573_vm5, %v566_v53, %v568_v6  ;;  %v575_v8 = vsel %vm573_vm5, %v568_v6, %v570_v4 }
  0xcf   : > { %v581_v11 = vsel %vm325_vm1, %v574_v7, 0  ;;  %v584_v39 = vsel %vm325_vm1, %v575_v8, 0 }
  0xd0   : > { %596 = vmatpush.bf16.msra.mxu1 %v581_v11  ;;  %609 = vmatpush.bf16.msra.mxu2 %v584_v39 }
  0xd3   : > { %3171 = vmatmul.msk.bf16.vlgmr.msra.gmra.mxu0 %vm321_vm2, %v465_v43  ;;  %3172 = vmatmul.msk.bf16.vlgmr.msra.gmra.mxu1 %vm321_vm2, %v560_v60  ;;  %v652_v36 = vpop.permute.xlu1 %651 }
  0xd4   : > { %685 = vmatpush.bf16.msrb.mxu1 %v660_v9  ;;  %698 = vmatpush.bf16.msrb.mxu2 %v663_v10 }
  0xd5   : > { %3173 = vmatmul.msk.bf16.vlgmr.msra.gmra.mxu2 %vm321_vm2, %v560_v60  ;;  %v572_v12 = vpop.permute.xlu0 %571  ;;  %v992_v54 = vpop.permute.xlu2 %991 }
  0xd6   : > { %v576_v14 = vsel %vm573_vm5, %v570_v4, %v572_v12 }
  0xd7   : > { %v587_v15 = vsel %vm325_vm1, %v576_v14, 0 }
  0xd8   : > { %622 = vmatpush.bf16.msra.mxu3 %v587_v15 }
  0xdb   : > { %3174 = vmatmul.msk.bf16.vlgmr.msra.gmra.mxu3 %vm321_vm2, %v560_v60  ;;  %v737_v16 = vpop.permute.xlu1 %736 }
  0xdc   : > { %v751_v17 = vsel %vm325_vm1, %v737_v16, 0 }
  0xdd   : > { %v735_v18 = vpop.permute.xlu0 %734  ;;  %786 = vmatpush.bf16.msra.mxu1 %v751_v17  ;;  %v3523_v17 = vmov 0.0|0.0  }
  0xde   : > { %v740_v19 = vsel %vm738_vm6, %v735_v18, %v737_v16  ;;  %v739_v20 = vsel %vm738_vm6, %v733_v5, %v735_v18  ;;  %v3522_v16 = vmov 0.0   ;;  %1180 = vrot.lane.b32.xlu1 %v3523_v17, %s3506_s23 }
  0xdf   : > { %v748_v21 = vsel %vm325_vm1, %v740_v19, 0  ;;  %v745_v22 = vsel %vm325_vm1, %v739_v20, 0  ;;  %252 = vst [vmem:[#allocation2] sm:$0xff] %v3522_v16 }
  0xe0   : > { %760 = vmatpush.bf16.msrb.mxu3 %v745_v22  ;;  %773 = vmatpush.bf16.msra.mxu0 %v748_v21  ;;  %254 = vst.msk [vmem:[#allocation2 + $0x18] sm:$0xff] %vm253_vm10, %v3522_v16 }
  0xe1   : > { %258 = vst.msk [vmem:[#allocation4 + $0x18] sm:$0xff] %vm253_vm10, %v3522_v16 }
  0xe3   : > { %3175 = vmatmul.msk.bf16.vlgmr.msrb.gmra.mxu0 %vm321_vm2, %v652_v36  ;;  %3176 = vmatmul.msk.bf16.vlgmr.msrb.gmra.mxu1 %vm321_vm2, %v652_v36  ;;  %v728_v24 = vpop.permute.xlu1 %727 }
  0xe5   : > { %3177 = vmatmul.msk.bf16.vlgmr.msrb.gmra.mxu2 %vm321_vm2, %v652_v36  ;;  %v823_v26 = vpop.permute.xlu0 %822 }
  0xe6   : > { %v827_v27 = vsel %vm826_vm7, %v821_v13, %v823_v26 }
  0xe7   : > { %v833_v28 = vsel %vm325_vm1, %v827_v27, 0 }
  0xe8   : > { %848 = vmatpush.bf16.msra.mxu2 %v833_v28 }
  0xeb   : > { %3178 = vmatmul.msk.bf16.vlgmr.msrb.gmra.mxu3 %vm321_vm2, %v728_v24  ;;  %v909_v30 = vpop.permute.xlu1 %908 }
  0xec   : > { %v915_v31 = vsel %vm914_vm8, %v909_v30, %v911_v29 }
  0xed   : > { %v825_v32 = vpop.permute.xlu0 %824  ;;  %v921_v33 = vsel %vm325_vm1, %v915_v31, 0 }
  0xee   : > { %v828_v34 = vsel %vm826_vm7, %v823_v26, %v825_v32  ;;  %v839_v35 = vsel %vm325_vm1, %v825_v32, 0  ;;  %936 = vmatpush.bf16.msrb.mxu1 %v921_v33 }
  0xef   : > { %v836_v25 = vsel %vm325_vm1, %v828_v34, 0  ;;  %874 = vmatpush.bf16.msrb.mxu0 %v839_v35 }
  0xf0   : > { %861 = vmatpush.bf16.msra.mxu3 %v836_v25 }
  0xf3   : > { %3179 = vmatmul.msk.bf16.vlgmr.msra.gmra.mxu0 %vm321_vm2, %v728_v24  ;;  %3180 = vmatmul.msk.bf16.vlgmr.msra.gmra.mxu1 %vm321_vm2, %v728_v24  ;;  %v904_v37 = vpop.permute.xlu1 %903  ;;  %v3767_v24 = vld [vmem:[#allocation5 + $0x4] sm:$0xf] }
  0xf4   : > { %v1172_v28 = vunpack.c.l.b16 %v3767_v24 }
  0xf5   : > { %3181 = vmatmul.msk.bf16.vlgmr.msra.gmra.mxu2 %vm321_vm2, %v816_v23  ;;  %v913_v41 = vpop.permute.xlu0 %912 }
  0xf6   : > { %v916_v43 = vsel %vm914_vm8, %v911_v29, %v913_v41  ;;  %v927_v44 = vsel %vm325_vm1, %v913_v41, 0  ;;  %v3770_v29 = vpack.c.b16 %v1172_v28, %v1172_v28 }
  0xf7   : > { %v924_v45 = vsel %vm325_vm1, %v916_v43, 0  ;;  %962 = vmatpush.bf16.msrb.mxu3 %v927_v44 }
  0xf8   : > { %949 = vmatpush.bf16.msrb.mxu2 %v924_v45  ;;  %1174 = vrot.lane.b32.xlu2 %v3770_v29, %s3508_s26 }
  0xfb   : > { %3182 = vmatmul.msk.bf16.vlgmr.msra.gmra.mxu3 %vm321_vm2, %v816_v23  ;;  %v1001_v47 = vpop.permute.xlu1 %1000 }
  0xfc   : > { %v1015_v48 = vsel %vm325_vm1, %v1001_v47, 0 }
  0xfd   : > { %v999_v49 = vpop.permute.xlu0 %998  ;;  %1050 = vmatpush.bf16.msra.mxu2 %v1015_v48 }
  0xfe   : > { %v1003_v50 = vsel %vm1002_vm9, %v997_v46, %v999_v49  ;;  %v1004_v51 = vsel %vm1002_vm9, %v999_v49, %v1001_v47 }
  0xff   : > { %v1009_v52 = vsel %vm325_vm1, %v1003_v50, 0  ;;  %v1012_v53 = vsel %vm325_vm1, %v1004_v51, 0 }
 0x100   : > { %1024 = vmatpush.bf16.msra.mxu0 %v1009_v52  ;;  %1037 = vmatpush.bf16.msra.mxu1 %v1012_v53 }
 0x103   : > { %3183 = vmatmul.msk.bf16.vlgmr.msrb.gmra.mxu0 %vm321_vm2, %v816_v23  ;;  %3184 = vmatmul.msk.bf16.vlgmr.msrb.gmra.mxu1 %vm321_vm2, %v904_v37 }
 0x105   : > { %3185 = vmatmul.msk.bf16.vlgmr.msrb.gmra.mxu2 %vm321_vm2, %v904_v37 }
 0x10b   : > { %3186 = vmatmul.msk.bf16.vlgmr.msrb.gmra.mxu3 %vm321_vm2, %v904_v37 }
 0x113   : > { %3187 = vmatmul.msk.bf16.vlgmr.msra.gmra.mxu0 %vm321_vm2, %v992_v54  ;;  %3188 = vmatmul.msk.bf16.vlgmr.msra.gmra.mxu1 %vm321_vm2, %v992_v54 }
 0x115   : > { %3189 = vmatmul.msk.bf16.vlgmr.msra.gmra.mxu2 %vm321_vm2, %v992_v54 }
 0x130   : > { %v344_v55 = vpop.f32.mrf.mxu0  ;;  %v357_v56 = vpop.f32.mrf.mxu1 }
 0x134   : > { %v370_v57 = vpop.f32.mrf.mxu2 }
 0x138   : > { %v346_v58 = vpop.f32.mrf.mxu0  ;;  %v359_v59 = vpop.f32.mrf.mxu1 }
 0x13c   : > { %v372_v60 = vpop.f32.mrf.mxu2 }
 0x13d   : > { %v1063_v60 = vpop.permute.xlu0 %1062 }
 0x13e   : > { %v411_v61 = vpop.f32.mrf.mxu3 }
 0x13f   : > { %v412_v62 = vadd.f32 %v411_v61, %v344_v55 }
 0x140   : > { %v424_v63 = vpop.f32.mrf.mxu0  ;;  %v437_v0 = vpop.f32.mrf.mxu1 }
 0x141   : > { %v425_v1 = vadd.f32 %v424_v63, %v357_v56  ;;  %v438_v2 = vadd.f32 %v437_v0, %v370_v57  ;;  %v259_v0 = vld [vmem:[%s4413_s3 + $0x1] sm:$0x7] }
 0x146   : > { %v413_v38 = vpop.f32.mrf.mxu3 }
 0x147   : > { %v503_v3 = vpop.f32.mrf.mxu2 }
 0x148   : > { %v426_v4 = vpop.f32.mrf.mxu0  ;;  %v439_v5 = vpop.f32.mrf.mxu1  ;;  %v533_v40 = vadd.f32 %v503_v3, %v412_v62 }
 0x149   : > { %v3779_v5 = vperm.slane %v259_v0, 0 }
 0x14e   : > { %v516_v6 = vpop.f32.mrf.mxu3 }
 0x14f   : > { %v505_v7 = vpop.f32.mrf.mxu2  ;;  %v534_v41 = vadd.f32 %v516_v6, %v425_v1  ;;  %v3781_v6 = vperm.slane %v259_v0, 1 }
 0x150   : > { %v529_v8 = vpop.f32.mrf.mxu0  ;;  %v598_v9 = vpop.f32.mrf.mxu1 }
 0x151   : > { %v628_v43 = vadd.f32 %v598_v9, %v533_v40  ;;  %v535_v52 = vadd.f32 %v529_v8, %v438_v2 }
 0x152   : > { %v1175_v40 = vpop.permute.xlu2 %1174 }
 0x156   : > { %v518_v10 = vpop.f32.mrf.mxu3 }
 0x158   : > { %v611_v11 = vpop.f32.mrf.mxu2  ;;  %v531_v39 = vpop.f32.mrf.mxu0 }
 0x159   : > { %v600_v36 = vpop.f32.mrf.mxu1  ;;  %v629_v44 = vadd.f32 %v611_v11, %v534_v41 }
 0x15e   : > { %v624_v12 = vpop.f32.mrf.mxu3 }
 0x15f   : > { %v630_v55 = vadd.f32 %v624_v12, %v535_v52 }
 0x160   : > { %v613_v13 = vpop.f32.mrf.mxu2  ;;  %v674_v14 = vpop.f32.mrf.mxu0 }
 0x161   : > { %v687_v15 = vpop.f32.mrf.mxu1  ;;  %v704_v48 = vadd.f32 %v674_v14, %v628_v43 }
 0x162   : > { %v705_v49 = vadd.f32 %v687_v15, %v629_v44  ;;  %v1181_v44 = vpop.permute.xlu1 %1180 }
 0x166   : > { %v626_v18 = vpop.f32.mrf.mxu3 }
 0x168   : > { %v700_v19 = vpop.f32.mrf.mxu2  ;;  %v676_v20 = vpop.f32.mrf.mxu0 }
 0x169   : > { %v689_v21 = vpop.f32.mrf.mxu1  ;;  %v706_v61 = vadd.f32 %v700_v19, %v630_v55 }
 0x16a   : > { %v3789_v21 = vperm.slane %v259_v0, 2 }
 0x16e   : > { %v762_v22 = vpop.f32.mrf.mxu3 }
 0x16f   : > { %v792_v50 = vadd.f32 %v762_v22, %v704_v48  ;;  %v3221_v48 = vld [vmem:[%s4412_s2 + $0x8] sm:$0xff] }
 0x170   : > { %v702_v23 = vpop.f32.mrf.mxu2  ;;  %v775_v26 = vpop.f32.mrf.mxu0 }
 0x171   : > { %v788_v27 = vpop.f32.mrf.mxu1  ;;  %v793_v51 = vadd.f32 %v775_v26, %v705_v49 }
 0x172   : > { %v794_v3 = vadd.f32 %v788_v27, %v706_v61 }
 0x176   : > { %v764_v30 = vpop.f32.mrf.mxu3 }
 0x177   : > { %v1092_v30 = vld.sshfl [vmem:[#allocation1] sm:$0xff pattern:$0x75316420] }
 0x178   : > { %v850_v31 = vpop.f32.mrf.mxu2  ;;  %v777_v32 = vpop.f32.mrf.mxu0 }
 0x179   : > { %v790_v33 = vpop.f32.mrf.mxu1  ;;  %v880_v53 = vadd.f32 %v850_v31, %v792_v50  ;;  %v1098_v31 = vpack.c.bf16 %v1092_v30, %v1092_v30 }
 0x17a   : > { %v1093_v33 = vld.sshfl [vmem:[#allocation1 + $0x8] sm:$0xff pattern:$0x75316420] }
 0x17b   : > { %v1114_v32 = vsel %vm325_vm1, %v1098_v31, 0 }
 0x17c   : > { %1129 = vmatpush.bf16.msra.mxu3 %v1114_v32 }
 0x17e   : > { %v863_v34 = vpop.f32.mrf.mxu3 }
 0x17f   : > { %v881_v54 = vadd.f32 %v863_v34, %v793_v51  ;;  %v1102_v34 = vld [vmem:[#allocation5 + $0x8] sm:$0xf] }
 0x180   : > { %v852_v35 = vpop.f32.mrf.mxu2  ;;  %v876_v25 = vpop.f32.mrf.mxu0  ;;  %3191 = vmatmul.msk.bf16.vlgmr.msra.gmra.mxu3 %vm321_vm2, %v1102_v34 }
 0x181   : > { %v938_v37 = vpop.f32.mrf.mxu1  ;;  %v882_v7 = vadd.f32 %v876_v25, %v794_v3  ;;  %v1099_v35 = vpack.c.bf16 %v1093_v33, %v1093_v33 }
 0x182   : > { %v968_v57 = vadd.f32 %v938_v37, %v880_v53  ;;  %v1086_v37 = vld [vmem:[%s3621_s16 + $0xc] sm:$0xf]  ;;  %s4420_s16 = smov 64   ;;  %v3190_v53 = vld [vmem:[%s4412_s2 + $0x10] sm:$0xff] }
 0x183   : > { %v1117_v25 = vsel %vm325_vm1, %v1099_v35, 0  ;;  %1091 = vst [vmem:[#allocation1 + $0x10] ss:$2 sm:$0xff] %v1086_v37 }
 0x184   : > { %1142 = vmatpush.bf16.msrb.mxu0 %v1117_v25 }
 0x186   : > { %v865_v42 = vpop.f32.mrf.mxu3 }
 0x187   : > { %3192 = vmatmul.msk.bf16.vlgmr.msrb.gmra.mxu0 %vm321_vm2, %v1102_v34 }
 0x188   : > { %v951_v45 = vpop.f32.mrf.mxu2  ;;  %v878_v46 = vpop.f32.mrf.mxu0 }
 0x189   : > { %v940_v47 = vpop.f32.mrf.mxu1  ;;  %v969_v58 = vadd.f32 %v951_v45, %v881_v54 }
 0x18a   : > { %v1094_v41 = vld.sshfl [vmem:[#allocation1 + $0x10] sm:$0xff pattern:$0x75316420] }
 0x18b   : > { %v1100_v42 = vpack.c.bf16 %v1094_v41, %v1094_v41 }
 0x18d   : > { %v1120_v43 = vsel %vm325_vm1, %v1100_v42, 0 }
 0x18e   : > { %v964_v56 = vpop.f32.mrf.mxu3  ;;  %1155 = vmatpush.bf16.msrb.mxu1 %v1120_v43 }
 0x18f   : > { %v970_v10 = vadd.f32 %v964_v56, %v882_v7 }
 0x190   : > { %v953_v59 = vpop.f32.mrf.mxu2  ;;  %v1026_v62 = vpop.f32.mrf.mxu0 }
 0x191   : > { %v1039_v63 = vpop.f32.mrf.mxu1  ;;  %v1056_v1 = vadd.f32 %v1026_v62, %v968_v57  ;;  %3193 = vmatmul.msk.bf16.vlgmr.msrb.gmra.mxu1 %vm321_vm2, %v1102_v34 }
 0x192   : > { %v1057_v38 = vadd.f32 %v1039_v63, %v969_v58 }
 0x193   : > { %v1065_v4 = vadd.f32 %v1063_v60, %v1056_v1 }
 0x194   : > { %v1066_v2 = vadd.f32 %v1063_v60, %v1057_v38 }
 0x195   : > { %v1068_v8 = vmax.f32 %v1065_v4, 0.0 }
 0x196   : > { %v1069_v9 = vmax.f32 %v1066_v2, 0.0  ;;  %v966_v11 = vpop.f32.mrf.mxu3 }
 0x197   : > { %v1078_v39 = vmul.f32 %v3779_v5, %v1068_v8 }
 0x198   : > { %v1079_v36 = vmul.f32 %v3781_v6, %v1069_v9  ;;  %v1052_v12 = vpop.f32.mrf.mxu2  ;;  %v1028_v14 = vpop.f32.mrf.mxu0 }
 0x199   : > { %v1058_v13 = vadd.f32 %v1052_v12, %v970_v10  ;;  %v1041_v15 = vpop.f32.mrf.mxu1  ;;  %v3785_v18 = vpack.c.bf16 %v1078_v39, %v1078_v39 }
 0x19a   : > { %v3787_v19 = vpack.c.bf16 %v1079_v36, %v1079_v36 }
 0x19b   : > { %v1067_v20 = vadd.f32 %v1063_v60, %v1058_v13  ;;  %1182 = vrot.lane.b32.xlu2 %v3785_v18, %s3506_s23 }
 0x19c   : > { %1184 = vrot.lane.b32.xlu1 %v3787_v19, %s3506_s23 }
 0x19d   : > { %v1070_v22 = vmax.f32 %v1067_v20, 0.0 }
 0x19f   : > { %v1080_v23 = vmul.f32 %v3789_v21, %v1070_v22 }
 0x1a0   : > { %v1054_v26 = vpop.f32.mrf.mxu2 }
 0x1a1   : > { %1084 = vst.msk [vmem:[#allocation2 + $0x18] sm:$0xff] %vm1083_vm11, %v1080_v23 }
 0x1a3   : > { %1308 = vrot.lane.b32.xlu2 %v3523_v17, %s3509_s30 }
 0x1a4   : > { %1244 = vrot.lane.b32.xlu1 %v3523_v17, %s3507_s25 }
 0x1a8   : > { %v1164_v27 = vld [vmem:[#allocation2 + $0x18] sm:$0xff] }
 0x1a9   : > { %v3801_v28 = vpack.c.bf16 %v1164_v27, %v1164_v27 }
 0x1ab   : > { %1186 = vrot.lane.b32.xlu0 %v3801_v28, %s3506_s23  ;;  %1248 = vrot.lane.b32.xlu2 %v3787_v19, %s3507_s25  ;;  %v1452_v31 = vsel %vm1195_vm12, %v3801_v28, 0 }
 0x1ac   : > { %1246 = vrot.lane.b32.xlu1 %v3785_v18, %s3507_s25 }
 0x1b3   : > { %1250 = vrot.lane.b32.xlu0 %v3801_v28, %s3507_s25  ;;  %1312 = vrot.lane.b32.xlu2 %v3787_v19, %s3509_s30 }
 0x1b4   : > { %1306 = vrot.lane.b32.xlu1 %v3770_v29, %s3513_s9 }
 0x1bb   : > { %1310 = vrot.lane.b32.xlu0 %v3785_v18, %s3509_s30  ;;  %1377 = vrot.lane.b32.xlu2 %v3785_v18, %s3510_s6 }
 0x1bc   : > { %1375 = vrot.lane.b32.xlu1 %v3523_v17, %s3510_s6 }
 0x1c3   : > { %1314 = vrot.lane.b32.xlu0 %v3801_v28, %s3509_s30  ;;  %1381 = vrot.lane.b32.xlu2 %v3801_v28, %s3510_s6 }
 0x1c4   : > { %1379 = vrot.lane.b32.xlu1 %v3787_v19, %s3510_s6 }
 0x1cb   : > { %1373 = vrot.lane.b32.xlu0 %v3770_v29, %s3515_s11  ;;  %1502 = vrot.lane.b32.xlu2 %v3801_v28, %s3512_s8 }
 0x1cc   : > { %1500 = vrot.lane.b32.xlu1 %v3787_v19, %s3512_s8 }
 0x1d3   : > { %1440 = vrot.lane.b32.xlu0 %v3770_v29, %s4425_s17  ;;  %1562 = vrot.lane.b32.xlu2 %v3785_v18, %s4429_s10 }
 0x1d4   : > { %1496 = vrot.lane.b32.xlu1 %v3770_v29, %s4426_s12 }
 0x1db   : > { %1498 = vrot.lane.b32.xlu0 %v3785_v18, %s3512_s8  ;;  %1626 = vrot.lane.b32.xlu2 %v3785_v18, %s4422_s13 }
 0x1dc   : > { %1560 = vrot.lane.b32.xlu1 %v3770_v29, %s4418_s14 }
 0x1e3   : > { %1564 = vrot.lane.b32.xlu0 %v3787_v19, %s4429_s10  ;;  %1624 = vrot.lane.b32.xlu2 %v3770_v29, %s4416_s7 }
 0x1e4   : > { %1566 = vrot.lane.b32.xlu1 %v3801_v28, %s4429_s10 }
 0x1eb   : > { %1628 = vrot.lane.b32.xlu0 %v3787_v19, %s4422_s13  ;;  %1692 = vrot.lane.b32.xlu2 %v3787_v19, %s4427_s15 }
 0x1ec   : > { %1690 = vrot.lane.b32.xlu1 %v3785_v18, %s4427_s15 }
 0x1f3   : > { %1630 = vrot.lane.b32.xlu0 %v3801_v28, %s4422_s13  ;;  %1107 = vperm.xlu2 %3369, %v3190_v53   ;;  %s3963_s13 = sand.u32 1, %s3492_s19  }
 0x1f4   : > { %1688 = vrot.lane.b32.xlu1 %v3770_v29, %s4420_s16  ;;  %s4424_s14 = sshll.u32 %s3963_s13, 5  ;;  %s4433_s16 = smov 110  }
 0x1f5   : > { %v1183_v45 = vpop.permute.xlu2 %1182  ;;  %s3968_s7 = scalar_lea.vmem [#allocation8], %s4424_s14  ;;  %s4434_s14 = smov 80  }
 0x1f6   : > { %v1188_v46 = vsel %vm317_vm0, %v1181_v44, %v1183_v45  ;;  %1778 = vst [vmem:[%s3968_s7] sm:$0xff] %v3522_v16 }
 0x1f7   : > { %v1197_v47 = vsel %vm1195_vm12, %v1188_v46, 0 }
 0x1f8   : > { %1212 = vmatpush.bf16.msrb.mxu2 %v1197_v47 }
 0x1fb   : > { %1694 = vrot.lane.b32.xlu0 %v3801_v28, %s4427_s15  ;;  %3194 = vmatmul.msk.bf16.vlgmr.msrb.gmra.mxu2 %vm1191_vm13, %v1175_v40 }
 0x1fd   : > { %v1309_v29 = vpop.permute.xlu2 %1308 }
 0x203   : > { %1756 = vperm.xlu0 %3368, %v3221_v48  }
 0x205   : > { %v1249_v49 = vpop.permute.xlu2 %1248 }
 0x20d   : > { %v1313_v55 = vpop.permute.xlu2 %1312 }
 0x20e   : > { %v1185_v50 = vpop.permute.xlu1 %1184 }
 0x20f   : > { %v1189_v51 = vsel %vm317_vm0, %v1183_v45, %v1185_v50 }
 0x210   : > { %v1200_v52 = vsel %vm1195_vm12, %v1189_v51, 0 }
 0x211   : > { %1225 = vmatpush.bf16.msrb.mxu3 %v1200_v52 }
 0x214   : > { %3195 = vmatmul.msk.bf16.vlgmr.msrb.gmra.mxu3 %vm1191_vm13, %v1175_v40 }
 0x215   : > { %v1378_v0 = vpop.permute.xlu2 %1377 }
 0x216   : > { %v1245_v54 = vpop.permute.xlu1 %1244 }
 0x21d   : > { %v1187_v56 = vpop.permute.xlu0 %1186  ;;  %v1382_v2 = vpop.permute.xlu2 %1381 }
 0x21e   : > { %v1190_v57 = vsel %vm317_vm0, %v1185_v50, %v1187_v56  ;;  %v1247_v58 = vpop.permute.xlu1 %1246 }
 0x21f   : > { %v1203_v59 = vsel %vm1195_vm12, %v1190_v57, 0  ;;  %v1252_v60 = vsel %vm386_vm3, %v1245_v54, %v1247_v58  ;;  %v1253_v61 = vsel %vm386_vm3, %v1247_v58, %v1249_v49 }
 0x220   : > { %1238 = vmatpush.bf16.msra.mxu0 %v1203_v59  ;;  %v1259_v62 = vsel %vm1195_vm12, %v1252_v60, 0  ;;  %v1262_v63 = vsel %vm1195_vm12, %v1253_v61, 0 }
 0x221   : > { %1274 = vmatpush.bf16.msra.mxu1 %v1259_v62  ;;  %1287 = vmatpush.bf16.msra.mxu2 %v1262_v63  ;;  %v3946_v63 = vpop.f32.mrf.mxu0 }
 0x223   : > { %3196 = vmatmul.msk.bf16.vlgmr.msra.gmra.mxu0 %vm1191_vm13, %v1175_v40 }
 0x224   : > { %3197 = vmatmul.msk.bf16.vlgmr.msra.gmra.mxu1 %vm1191_vm13, %v3767_v24  ;;  %3198 = vmatmul.msk.bf16.vlgmr.msra.gmra.mxu2 %vm1191_vm13, %v3767_v24 }
 0x225   : > { %v1251_v1 = vpop.permute.xlu0 %1250  ;;  %v1503_v14 = vpop.permute.xlu2 %1502 }
 0x226   : > { %v1254_v38 = vsel %vm386_vm3, %v1249_v49, %v1251_v1  ;;  %v1307_v3 = vpop.permute.xlu1 %1306  ;;  %v1516_v33 = vsel %vm1195_vm12, %v1503_v14, 0 }
 0x227   : > { %v1265_v4 = vsel %vm1195_vm12, %v1254_v38, 0 }
 0x228   : > { %1300 = vmatpush.bf16.msra.mxu3 %v1265_v4 }
 0x22b   : > { %3199 = vmatmul.msk.bf16.vlgmr.msra.gmra.mxu3 %vm1191_vm13, %v3767_v24  ;;  %v1449_v24 = vsel %vm1195_vm12, %v3787_v19, 0  ;;  %v1446_v19 = vsel %vm1195_vm12, %v3785_v18, 0 }
 0x22d   : > { %v1311_v7 = vpop.permute.xlu0 %1310  ;;  %v1563_v35 = vpop.permute.xlu2 %1562 }
 0x22e   : > { %v1316_v8 = vsel %vm478_vm4, %v1309_v29, %v1311_v7  ;;  %v1317_v9 = vsel %vm478_vm4, %v1311_v7, %v1313_v55  ;;  %v1376_v10 = vpop.permute.xlu1 %1375 }
 0x22f   : > { %v1323_v11 = vsel %vm1195_vm12, %v1316_v8, 0  ;;  %v1326_v39 = vsel %vm1195_vm12, %v1317_v9, 0  ;;  %v1383_v36 = vsel %vm573_vm5, %v1376_v10, %v1378_v0  ;;  %v3955_v8 = vpop.f32.mrf.mxu1 }
 0x230   : > { %1338 = vmatpush.bf16.msrb.mxu0 %v1323_v11  ;;  %1351 = vmatpush.bf16.msrb.mxu1 %v1326_v39  ;;  %v1390_v12 = vsel %vm1195_vm12, %v1383_v36, 0 }
 0x231   : > { %1405 = vmatpush.bf16.msrb.mxu3 %v1390_v12 }
 0x233   : > { %3200 = vmatmul.msk.bf16.vlgmr.msrb.gmra.mxu0 %vm1191_vm13, %v1307_v3 }
 0x234   : > { %3201 = vmatmul.msk.bf16.vlgmr.msrb.gmra.mxu1 %vm1191_vm13, %v1307_v3 }
 0x235   : > { %1474 = vmatpush.bf16.msra.mxu3 %v1449_v24  ;;  %v1315_v13 = vpop.permute.xlu0 %1314  ;;  %v1627_v40 = vpop.permute.xlu2 %1626 }
 0x236   : > { %v1318_v15 = vsel %vm478_vm4, %v1313_v55, %v1315_v13  ;;  %v1380_v20 = vpop.permute.xlu1 %1379 }
 0x237   : > { %v1329_v22 = vsel %vm1195_vm12, %v1318_v15, 0  ;;  %v1384_v23 = vsel %vm573_vm5, %v1378_v0, %v1380_v20  ;;  %v1385_v26 = vsel %vm573_vm5, %v1380_v20, %v1382_v2  ;;  %v3948_v0 = vpop.f32.mrf.mxu3  ;;  %v1146_v2 = vpop.f32.mrf.mxu0 }
 0x238   : > { %1364 = vmatpush.bf16.msrb.mxu2 %v1329_v22  ;;  %v1393_v27 = vsel %vm1195_vm12, %v1384_v23, 0  ;;  %v1396_v30 = vsel %vm1195_vm12, %v1385_v26, 0  ;;  %v1159_v10 = vpop.f32.mrf.mxu1 }
 0x239   : > { %1418 = vmatpush.bf16.msra.mxu0 %v1393_v27  ;;  %1431 = vmatpush.bf16.msra.mxu1 %v1396_v30 }
 0x23b   : > { %3202 = vmatmul.msk.bf16.vlgmr.msrb.gmra.mxu2 %vm1191_vm13, %v1307_v3 }
 0x23c   : > { %1461 = vmatpush.bf16.msra.mxu2 %v1446_v19 }
 0x23d   : > { %1487 = vmatpush.bf16.msrb.mxu0 %v1452_v31  ;;  %v1374_v32 = vpop.permute.xlu0 %1373  ;;  %v1625_v45 = vpop.permute.xlu2 %1624 }
 0x23e   : > { %3203 = vmatmul.msk.bf16.vlgmr.msrb.gmra.mxu3 %vm1191_vm13, %v1374_v32  ;;  %v1501_v34 = vpop.permute.xlu1 %1500 }
 0x23f   : > { %1551 = vmatpush.bf16.msrb.mxu3 %v1516_v33  ;;  %v1505_v18 = vsel %vm738_vm6, %v1501_v34, %v1503_v14  ;;  %v1133_v7 = vpop.f32.mrf.mxu3 }
 0x240   : > { %v1513_v25 = vsel %vm1195_vm12, %v1505_v18, 0 }
 0x241   : > { %1538 = vmatpush.bf16.msrb.mxu2 %v1513_v25 }
 0x243   : > { %3204 = vmatmul.msk.bf16.vlgmr.msra.gmra.mxu0 %vm1191_vm13, %v1374_v32 }
 0x244   : > { %3205 = vmatmul.msk.bf16.vlgmr.msra.gmra.mxu1 %vm1191_vm13, %v1374_v32 }
 0x245   : > { %v1441_v28 = vpop.permute.xlu0 %1440  ;;  %v1693_v53 = vpop.permute.xlu2 %1692 }
 0x246   : > { %v1497_v37 = vpop.permute.xlu1 %1496 }
 0x24b   : > { %3206 = vmatmul.msk.bf16.vlgmr.msra.gmra.mxu2 %vm1191_vm13, %v1441_v28 }
 0x24d   : > { %v1499_v41 = vpop.permute.xlu0 %1498 }
 0x24e   : > { %v1504_v42 = vsel %vm738_vm6, %v1499_v41, %v1501_v34  ;;  %3207 = vmatmul.msk.bf16.vlgmr.msra.gmra.mxu3 %vm1191_vm13, %v1441_v28  ;;  %v1561_v43 = vpop.permute.xlu1 %1560 }
 0x24f   : > { %v1510_v44 = vsel %vm1195_vm12, %v1504_v42, 0 }
 0x250   : > { %1525 = vmatpush.bf16.msrb.mxu1 %v1510_v44 }
 0x253   : > { %3208 = vmatmul.msk.bf16.vlgmr.msrb.gmra.mxu0 %vm1191_vm13, %v1441_v28 }
 0x254   : > { %3209 = vmatmul.msk.bf16.vlgmr.msrb.gmra.mxu1 %vm1191_vm13, %v1497_v37 }
 0x255   : > { %v1565_v46 = vpop.permute.xlu0 %1564 }
 0x256   : > { %v1568_v47 = vsel %vm826_vm7, %v1563_v35, %v1565_v46  ;;  %v1567_v48 = vpop.permute.xlu1 %1566 }
 0x257   : > { %v1574_v29 = vsel %vm1195_vm12, %v1568_v47, 0  ;;  %v1569_v49 = vsel %vm826_vm7, %v1565_v46, %v1567_v48  ;;  %v1580_v50 = vsel %vm1195_vm12, %v1567_v48, 0 }
 0x258   : > { %1589 = vmatpush.bf16.msra.mxu0 %v1574_v29  ;;  %v1577_v51 = vsel %vm1195_vm12, %v1569_v49, 0  ;;  %1615 = vmatpush.bf16.msra.mxu2 %v1580_v50 }
 0x259   : > { %1602 = vmatpush.bf16.msra.mxu1 %v1577_v51 }
 0x25b   : > { %3210 = vmatmul.msk.bf16.vlgmr.msrb.gmra.mxu2 %vm1191_vm13, %v1497_v37 }
 0x25d   : > { %v1629_v52 = vpop.permute.xlu0 %1628 }
 0x25e   : > { %v1632_v54 = vsel %vm914_vm8, %v1627_v40, %v1629_v52  ;;  %3211 = vmatmul.msk.bf16.vlgmr.msrb.gmra.mxu3 %vm1191_vm13, %v1497_v37  ;;  %v1691_v55 = vpop.permute.xlu1 %1690 }
 0x25f   : > { %v1638_v56 = vsel %vm1195_vm12, %v1632_v54, 0  ;;  %v1696_v57 = vsel %vm1002_vm9, %v1691_v55, %v1693_v53 }
 0x260   : > { %1653 = vmatpush.bf16.msra.mxu3 %v1638_v56  ;;  %v1702_v58 = vsel %vm1195_vm12, %v1696_v57, 0 }
 0x261   : > { %1717 = vmatpush.bf16.msrb.mxu2 %v1702_v58 }
 0x263   : > { %3212 = vmatmul.msk.bf16.vlgmr.msra.gmra.mxu0 %vm1191_vm13, %v1561_v43 }
 0x264   : > { %3213 = vmatmul.msk.bf16.vlgmr.msra.gmra.mxu1 %vm1191_vm13, %v1561_v43 }
 0x265   : > { %v1631_v59 = vpop.permute.xlu0 %1630 }
 0x266   : > { %v1633_v60 = vsel %vm914_vm8, %v1629_v52, %v1631_v59  ;;  %v1644_v61 = vsel %vm1195_vm12, %v1631_v59, 0  ;;  %v1689_v9 = vpop.permute.xlu1 %1688 }
 0x267   : > { %v1641_v62 = vsel %vm1195_vm12, %v1633_v60, 0  ;;  %1679 = vmatpush.bf16.msrb.mxu1 %v1644_v61 }
 0x268   : > { %1666 = vmatpush.bf16.msrb.mxu0 %v1641_v62 }
 0x26b   : > { %3214 = vmatmul.msk.bf16.vlgmr.msra.gmra.mxu2 %vm1191_vm13, %v1561_v43 }
 0x26d   : > { %v1695_v1 = vpop.permute.xlu0 %1694 }
 0x26e   : > { %v1697_v38 = vsel %vm1002_vm9, %v1693_v53, %v1695_v1  ;;  %v1708_v3 = vsel %vm1195_vm12, %v1695_v1, 0  ;;  %3215 = vmatmul.msk.bf16.vlgmr.msra.gmra.mxu3 %vm1191_vm13, %v1625_v45 }
 0x26f   : > { %v1705_v4 = vsel %vm1195_vm12, %v1697_v38, 0  ;;  %1743 = vmatpush.bf16.msra.mxu0 %v1708_v3 }
 0x270   : > { %1730 = vmatpush.bf16.msrb.mxu3 %v1705_v4 }
 0x273   : > { %3216 = vmatmul.msk.bf16.vlgmr.msrb.gmra.mxu0 %vm1191_vm13, %v1625_v45 }
 0x274   : > { %3217 = vmatmul.msk.bf16.vlgmr.msrb.gmra.mxu1 %vm1191_vm13, %v1625_v45 }
 0x27b   : > { %3218 = vmatmul.msk.bf16.vlgmr.msrb.gmra.mxu2 %vm1191_vm13, %v1689_v9 }
 0x27e   : > { %3219 = vmatmul.msk.bf16.vlgmr.msrb.gmra.mxu3 %vm1191_vm13, %v1689_v9  ;;  %v1214_v11 = vpop.f32.mrf.mxu2 }
 0x283   : > { %3220 = vmatmul.msk.bf16.vlgmr.msra.gmra.mxu0 %vm1191_vm13, %v1689_v9 }
 0x286   : > { %v1216_v39 = vpop.f32.mrf.mxu2 }
 0x297   : > { %v1227_v36 = vpop.f32.mrf.mxu3 }
 0x29f   : > { %v1229_v12 = vpop.f32.mrf.mxu3 }
 0x2a0   : > { %v1240_v24 = vpop.f32.mrf.mxu0 }
 0x2a1   : > { %v1276_v13 = vpop.f32.mrf.mxu1 }
 0x2a2   : > { %v1277_v14 = vadd.f32 %v1276_v13, %v1214_v11 }
 0x2a7   : > { %v1289_v15 = vpop.f32.mrf.mxu2 }
 0x2a8   : > { %v1242_v20 = vpop.f32.mrf.mxu0  ;;  %v1290_v22 = vadd.f32 %v1289_v15, %v1227_v36 }
 0x2a9   : > { %v1278_v23 = vpop.f32.mrf.mxu1 }
 0x2ae   : > { %v1302_v26 = vpop.f32.mrf.mxu3 }
 0x2af   : > { %v1303_v19 = vadd.f32 %v1302_v26, %v1240_v24  ;;  %v1291_v27 = vpop.f32.mrf.mxu2  ;;  %v1108_v26 = vpop.permute.xlu2 %1107 }
 0x2b0   : > { %v1340_v30 = vpop.f32.mrf.mxu0 }
 0x2b1   : > { %v1370_v31 = vadd.f32 %v1340_v30, %v1277_v14  ;;  %v1353_v32 = vpop.f32.mrf.mxu1  ;;  %v1757_v30 = vpop.permute.xlu0 %1756 }
 0x2b2   : > { %v1371_v33 = vadd.f32 %v1353_v32, %v1290_v22 }
 0x2b6   : > { %v1304_v34 = vpop.f32.mrf.mxu3 }
 0x2b8   : > { %v1342_v18 = vpop.f32.mrf.mxu0 }
 0x2b9   : > { %v1355_v35 = vpop.f32.mrf.mxu1 }
 0x2be   : > { %v1366_v16 = vpop.f32.mrf.mxu2 }
 0x2bf   : > { %v1372_v1 = vadd.f32 %v1366_v16, %v1303_v19 }
 0x2c0   : > { %v1420_v25 = vpop.f32.mrf.mxu0 }
 0x2c1   : > { %v1407_v28 = vpop.f32.mrf.mxu3  ;;  %v1433_v37 = vpop.f32.mrf.mxu1  ;;  %v1438_v7 = vadd.f32 %v1420_v25, %v1371_v33  ;;  %v1132_v33 = vadd.f32 %v3948_v0, %v1108_v26  ;;  %v1158_v25 = vadd.f32 %v3955_v8, %v1108_v26 }
 0x2c2   : > { %v1437_v38 = vadd.f32 %v1407_v28, %v1370_v31  ;;  %v1439_v4 = vadd.f32 %v1433_v37, %v1372_v1 }
 0x2c6   : > { %v1368_v40 = vpop.f32.mrf.mxu2 }
 0x2c7   : > { %v1145_v40 = vadd.f32 %v3946_v63, %v1108_v26 }
 0x2c8   : > { %v1422_v41 = vpop.f32.mrf.mxu0 }
 0x2c9   : > { %v1409_v42 = vpop.f32.mrf.mxu3  ;;  %v1435_v43 = vpop.f32.mrf.mxu1 }
 0x2ce   : > { %v1463_v44 = vpop.f32.mrf.mxu2 }
 0x2cf   : > { %v1493_v2 = vadd.f32 %v1463_v44, %v1437_v38 }
 0x2d0   : > { %v1489_v45 = vpop.f32.mrf.mxu0 }
 0x2d1   : > { %v1476_v46 = vpop.f32.mrf.mxu3  ;;  %v1527_v47 = vpop.f32.mrf.mxu1  ;;  %v1495_v10 = vadd.f32 %v1489_v45, %v1439_v4 }
 0x2d2   : > { %v1557_v11 = vadd.f32 %v1527_v47, %v1493_v2  ;;  %v1494_v12 = vadd.f32 %v1476_v46, %v1438_v7 }
 0x2d6   : > { %v1465_v48 = vpop.f32.mrf.mxu2 }
 0x2d8   : > { %v1491_v29 = vpop.f32.mrf.mxu0 }
 0x2d9   : > { %v1478_v49 = vpop.f32.mrf.mxu3  ;;  %v1529_v50 = vpop.f32.mrf.mxu1  ;;  %v3976_v29 = vld [vmem:[#allocation5 + $0xc] sm:$0xf] }
 0x2de   : > { %v1540_v51 = vpop.f32.mrf.mxu2 }
 0x2df   : > { %v1558_v14 = vadd.f32 %v1540_v51, %v1494_v12  ;;  %v1793_v51 = vunpack.c.l.b16 %v3976_v29 }
 0x2e0   : > { %v1591_v52 = vpop.f32.mrf.mxu0 }
 0x2e1   : > { %v1553_v53 = vpop.f32.mrf.mxu3  ;;  %v1604_v54 = vpop.f32.mrf.mxu1  ;;  %v1621_v13 = vadd.f32 %v1591_v52, %v1557_v11 }
 0x2e2   : > { %v1559_v24 = vadd.f32 %v1553_v53, %v1495_v10  ;;  %v1622_v22 = vadd.f32 %v1604_v54, %v1558_v14  ;;  %v1794_v53 = vpack.c.b16 %v1793_v51, %v1793_v51 }
 0x2e6   : > { %v1542_v55 = vpop.f32.mrf.mxu2 }
 0x2e8   : > { %v1593_v56 = vpop.f32.mrf.mxu0 }
 0x2e9   : > { %v1555_v57 = vpop.f32.mrf.mxu3  ;;  %v1606_v58 = vpop.f32.mrf.mxu1 }
 0x2ee   : > { %v1617_v59 = vpop.f32.mrf.mxu2 }
 0x2ef   : > { %v1623_v15 = vadd.f32 %v1617_v59, %v1559_v24 }
 0x2f0   : > { %v1668_v60 = vpop.f32.mrf.mxu0 }
 0x2f1   : > { %v1655_v61 = vpop.f32.mrf.mxu3  ;;  %v1681_v62 = vpop.f32.mrf.mxu1  ;;  %v1686_v31 = vadd.f32 %v1668_v60, %v1622_v22 }
 0x2f2   : > { %v1685_v20 = vadd.f32 %v1655_v61, %v1621_v13  ;;  %v1687_v19 = vadd.f32 %v1681_v62, %v1623_v15 }
 0x2f6   : > { %v1619_v3 = vpop.f32.mrf.mxu2 }
 0x2f8   : > { %v1670_v9 = vpop.f32.mrf.mxu0 }
 0x2f9   : > { %v1657_v39 = vpop.f32.mrf.mxu3  ;;  %v1683_v36 = vpop.f32.mrf.mxu1 }
 0x2fe   : > { %v1719_v23 = vpop.f32.mrf.mxu2 }
 0x2ff   : > { %v1749_v27 = vadd.f32 %v1719_v23, %v1685_v20 }
 0x300   : > { %v1745_v32 = vpop.f32.mrf.mxu0 }
 0x301   : > { %v1759_v34 = vadd.f32 %v1757_v30, %v1749_v27  ;;  %v1732_v18 = vpop.f32.mrf.mxu3  ;;  %v1751_v35 = vadd.f32 %v1745_v32, %v1687_v19 }
 0x302   : > { %v1750_v16 = vadd.f32 %v1732_v18, %v1686_v31 }
 0x303   : > { %v1762_v28 = vadd.f32 %v1759_v34, %v1132_v33  ;;  %v1761_v37 = vadd.f32 %v1757_v30, %v1751_v35 }
 0x304   : > { %v1760_v41 = vadd.f32 %v1757_v30, %v1750_v16 }
 0x305   : > { %v1765_v42 = vmax.f32 %v1762_v28, 0.0  ;;  %v1764_v43 = vadd.f32 %v1761_v37, %v1158_v25 }
 0x306   : > { %v1763_v44 = vadd.f32 %v1760_v41, %v1145_v40  ;;  %v1721_v45 = vpop.f32.mrf.mxu2 }
 0x307   : > { %v1768_v46 = vmul.f32 %v1765_v42, %v3779_v5  ;;  %v1767_v47 = vmax.f32 %v1764_v43, 0.0 }
 0x308   : > { %v1766_v48 = vmax.f32 %v1763_v44, 0.0  ;;  %v1747_v0 = vpop.f32.mrf.mxu0 }
 0x309   : > { %1771 = vst [vmem:[#allocation4 + $0x8] sm:$0xff] %v1768_v46  ;;  %v1770_v8 = vmul.f32 %v1767_v47, %v3789_v21  ;;  %v1734_v49 = vpop.f32.mrf.mxu3  ;;  %v3979_v50 = vpack.c.bf16 %v1768_v46, %v1768_v46 }
 0x30a   : > { %v1769_v63 = vmul.f32 %v1766_v48, %v3781_v6 }
 0x30b   : > { %1773 = vst.msk [vmem:[#allocation4 + $0x18] sm:$0xff] %vm1083_vm11, %v1770_v8  ;;  %1803 = vrot.lane.b32.xlu1 %v3979_v50, %s3506_s23 }
 0x30c   : > { %1772 = vst [vmem:[#allocation4 + $0x10] sm:$0xff] %v1769_v63  ;;  %v3986_v52 = vpack.c.bf16 %v1769_v63, %v1769_v63 }
 0x30e   : > { %1805 = vrot.lane.b32.xlu2 %v3986_v52, %s3506_s23  ;;  %v2068_v18 = vsel %vm1195_vm12, %v3986_v52, 0 }
 0x310   : > { %v3990_v54 = vld [vmem:[#allocation4 + $0x8] sm:$0xff] }
 0x311   : > { %1779 = vst [vmem:[%s3968_s7 + $0x8] sm:$0xff] %v3990_v54 }
 0x312   : > { %v1785_v55 = vld [vmem:[#allocation4 + $0x18] sm:$0xff] }
 0x313   : > { %v3994_v56 = vld [vmem:[#allocation4 + $0x18] sm:$0xff]  ;;  %v3996_v57 = vpack.c.bf16 %v1785_v55, %v1785_v55  ;;  %1795 = vrot.lane.b32.xlu1 %v1794_v53, %s3508_s26  ;;  %v3999_v58 = vld [vmem:[#allocation4 + $0x10] sm:$0xff] }
 0x314   : > { %1781 = vst [vmem:[%s3968_s7 + $0x18] sm:$0xff] %v3994_v56 }
 0x315   : > { %1780 = vst [vmem:[%s3968_s7 + $0x10] sm:$0xff] %v3999_v58  ;;  %1807 = vrot.lane.b32.xlu0 %v3996_v57, %s3506_s23  ;;  %v2071_v43 = vsel %vm1195_vm12, %v3996_v57, 0 }
 0x316   : > { %1801 = vrot.lane.b32.xlu2 %v3523_v17, %s3506_s23 }
 0x31b   : > { %1869 = vrot.lane.b32.xlu1 %v3996_v57, %s3507_s25 }
 0x31d   : > { %1867 = vrot.lane.b32.xlu0 %v3986_v52, %s3507_s25 }
 0x31e   : > { %1927 = vrot.lane.b32.xlu2 %v3523_v17, %s3509_s30 }
 0x323   : > { %1863 = vrot.lane.b32.xlu1 %v3523_v17, %s3507_s25 }
 0x325   : > { %1929 = vrot.lane.b32.xlu0 %v3979_v50, %s3509_s30 }
 0x326   : > { %1865 = vrot.lane.b32.xlu2 %v3979_v50, %s3507_s25 }
 0x32b   : > { %1994 = vrot.lane.b32.xlu1 %v3523_v17, %s3510_s6 }
 0x32d   : > { %1925 = vrot.lane.b32.xlu0 %v1794_v53, %s3513_s9 }
 0x32e   : > { %1996 = vrot.lane.b32.xlu2 %v3979_v50, %s3510_s6 }
 0x333   : > { %1931 = vrot.lane.b32.xlu1 %v3986_v52, %s3509_s30 }
 0x335   : > { %1998 = vrot.lane.b32.xlu0 %v3986_v52, %s3510_s6 }
 0x336   : > { %1992 = vrot.lane.b32.xlu2 %v1794_v53, %s3515_s11 }
 0x33b   : > { %2000 = vrot.lane.b32.xlu1 %v3996_v57, %s3510_s6 }
 0x33d   : > { %1933 = vrot.lane.b32.xlu0 %v3996_v57, %s3509_s30 }
 0x33e   : > { %2059 = vrot.lane.b32.xlu2 %v1794_v53, %s4425_s17  ;;  %s4435_s17 = smov 72  }
 0x343   : > { %2183 = vrot.lane.b32.xlu1 %v3986_v52, %s4429_s10 }
 0x345   : > { %2181 = vrot.lane.b32.xlu0 %v3979_v50, %s4429_s10 }
 0x346   : > { %2121 = vrot.lane.b32.xlu2 %v3996_v57, %s3512_s8 }
 0x34b   : > { %2119 = vrot.lane.b32.xlu1 %v3986_v52, %s3512_s8 }
 0x34d   : > { %2117 = vrot.lane.b32.xlu0 %v3979_v50, %s3512_s8 }
 0x34e   : > { %2115 = vrot.lane.b32.xlu2 %v1794_v53, %s4426_s12  ;;  %s4436_s12 = smov 64  }
 0x353   : > { %2245 = vrot.lane.b32.xlu1 %v3979_v50, %s4433_s16 }
 0x355   : > { %2179 = vrot.lane.b32.xlu0 %v1794_v53, %s4434_s14 }
 0x356   : > { %2247 = vrot.lane.b32.xlu2 %v3986_v52, %s4433_s16 }
 0x35b   : > { %2185 = vrot.lane.b32.xlu1 %v3996_v57, %s4429_s10  ;;  %s3031_s10 = sshll.u32 %s3968_s7, 4  ;;  %s3032_s10 = int_to_ptr.vmem [resolvable:$true] %s3031_s10 }
 0x35d   : > { %2249 = vrot.lane.b32.xlu0 %v3996_v57, %s4433_s16 }
 0x35e   : > { %2243 = vrot.lane.b32.xlu2 %v1794_v53, %s4435_s17 }
 0x363   : > { %2313 = vrot.lane.b32.xlu1 %v3996_v57, %s4427_s15 }
 0x365   : > { %2311 = vrot.lane.b32.xlu0 %v3986_v52, %s4427_s15 }
 0x366   : > { %2307 = vrot.lane.b32.xlu2 %v1794_v53, %s4436_s12 }
 0x368   : > { %v1806_v17 = vpop.permute.xlu2 %1805 }
 0x36d   : > { %2309 = vrot.lane.b32.xlu0 %v3979_v50, %s4427_s15 }
 0x370   : > { %v1802_v59 = vpop.permute.xlu2 %1801 }
 0x378   : > { %v1928_v60 = vpop.permute.xlu2 %1927 }
 0x37d   : > { %v1804_v61 = vpop.permute.xlu1 %1803 }
 0x37e   : > { %v1809_v62 = vsel %vm317_vm0, %v1802_v59, %v1804_v61  ;;  %v1810_v1 = vsel %vm317_vm0, %v1804_v61, %v1806_v17 }
 0x37f   : > { %v1816_v38 = vsel %vm1195_vm12, %v1809_v62, 0  ;;  %v1819_v3 = vsel %vm1195_vm12, %v1810_v1, 0 }
 0x380   : > { %v1866_v4 = vpop.permute.xlu2 %1865  ;;  %1831 = vmatpush.bf16.msra.mxu1 %v1816_v38  ;;  %1844 = vmatpush.bf16.msra.mxu2 %v1819_v3 }
 0x385   : > { %v1796_v2 = vpop.permute.xlu1 %1795 }
 0x386   : > { %3222 = vmatmul.msk.bf16.vlgmr.msra.gmra.mxu1 %vm1191_vm13, %v1796_v2  ;;  %3223 = vmatmul.msk.bf16.vlgmr.msra.gmra.mxu2 %vm1191_vm13, %v1796_v2 }
 0x387   : > { %v1808_v7 = vpop.permute.xlu0 %1807 }
 0x388   : > { %v1811_v9 = vsel %vm317_vm0, %v1806_v17, %v1808_v7  ;;  %v1997_v10 = vpop.permute.xlu2 %1996 }
 0x389   : > { %v1822_v11 = vsel %vm1195_vm12, %v1811_v9, 0 }
 0x38a   : > { %1857 = vmatpush.bf16.msra.mxu3 %v1822_v11 }
 0x38d   : > { %3224 = vmatmul.msk.bf16.vlgmr.msra.gmra.mxu3 %vm1191_vm13, %v1796_v2  ;;  %v1870_v39 = vpop.permute.xlu1 %1869 }
 0x38f   : > { %v1868_v36 = vpop.permute.xlu0 %1867 }
 0x390   : > { %v1872_v12 = vsel %vm386_vm3, %v1866_v4, %v1868_v36  ;;  %v1873_v24 = vsel %vm386_vm3, %v1868_v36, %v1870_v39  ;;  %v1993_v13 = vpop.permute.xlu2 %1992 }
 0x391   : > { %v1881_v14 = vsel %vm1195_vm12, %v1872_v12, 0  ;;  %v1884_v15 = vsel %vm1195_vm12, %v1873_v24, 0  ;;  %v3249_v24 = vld [vmem:[%s4412_s2 + $0x18] sm:$0xff] }
 0x392   : > { %1906 = vmatpush.bf16.msrb.mxu1 %v1881_v14  ;;  %1919 = vmatpush.bf16.msrb.mxu2 %v1884_v15 }
 0x393   : > { %2375 = vperm.xlu1 %3370, %v3249_v24  }
 0x395   : > { %v1864_v20 = vpop.permute.xlu1 %1863 }
 0x396   : > { %v1871_v22 = vsel %vm386_vm3, %v1864_v20, %v1866_v4  ;;  %3226 = vmatmul.msk.bf16.vlgmr.msrb.gmra.mxu1 %vm1191_vm13, %v3976_v29  ;;  %3227 = vmatmul.msk.bf16.vlgmr.msrb.gmra.mxu2 %vm1191_vm13, %v3976_v29 }
 0x397   : > { %v1930_v23 = vpop.permute.xlu0 %1929  ;;  %v1878_v26 = vsel %vm1195_vm12, %v1871_v22, 0 }
 0x398   : > { %v1935_v19 = vsel %vm478_vm4, %v1928_v60, %v1930_v23  ;;  %1893 = vmatpush.bf16.msrb.mxu0 %v1878_v26  ;;  %v2060_v30 = vpop.permute.xlu2 %2059 }
 0x399   : > { %v1942_v27 = vsel %vm1195_vm12, %v1935_v19, 0 }
 0x39a   : > { %1957 = vmatpush.bf16.msrb.mxu3 %v1942_v27 }
 0x39b   : > { %3225 = vmatmul.msk.bf16.vlgmr.msrb.gmra.mxu0 %vm1191_vm13, %v3976_v29  ;;  %v2065_v29 = vsel %vm1195_vm12, %v3979_v50, 0 }
 0x39d   : > { %v1995_v31 = vpop.permute.xlu1 %1994 }
 0x39e   : > { %v2002_v32 = vsel %vm573_vm5, %v1995_v31, %v1997_v10 }
 0x39f   : > { %v1926_v33 = vpop.permute.xlu0 %1925  ;;  %v2009_v34 = vsel %vm1195_vm12, %v2002_v32, 0 }
 0x3a0   : > { %3228 = vmatmul.msk.bf16.vlgmr.msrb.gmra.mxu3 %vm1191_vm13, %v1926_v33  ;;  %2024 = vmatpush.bf16.msra.mxu2 %v2009_v34  ;;  %v2122_v35 = vpop.permute.xlu2 %2121 }
 0x3a1   : > { %v2135_v25 = vsel %vm1195_vm12, %v2122_v35, 0 }
 0x3a4   : > { %2093 = vmatpush.bf16.msrb.mxu2 %v2068_v18 }
 0x3a5   : > { %v1932_v16 = vpop.permute.xlu1 %1931 }
 0x3a6   : > { %v1936_v28 = vsel %vm478_vm4, %v1930_v23, %v1932_v16  ;;  %3231 = vmatmul.msk.bf16.vlgmr.msra.gmra.mxu2 %vm1191_vm13, %v1993_v13 }
 0x3a7   : > { %v1999_v37 = vpop.permute.xlu0 %1998  ;;  %v1945_v40 = vsel %vm1195_vm12, %v1936_v28, 0 }
 0x3a8   : > { %2170 = vmatpush.bf16.msra.mxu2 %v2135_v25  ;;  %v2003_v41 = vsel %vm573_vm5, %v1997_v10, %v1999_v37  ;;  %1970 = vmatpush.bf16.msra.mxu0 %v1945_v40  ;;  %v2116_v52 = vpop.permute.xlu2 %2115 }
 0x3a9   : > { %v2012_v42 = vsel %vm1195_vm12, %v2003_v41, 0 }
 0x3aa   : > { %2037 = vmatpush.bf16.msra.mxu3 %v2012_v42 }
 0x3ab   : > { %3229 = vmatmul.msk.bf16.vlgmr.msra.gmra.mxu0 %vm1191_vm13, %v1926_v33 }
 0x3ad   : > { %v2001_v44 = vpop.permute.xlu1 %2000 }
 0x3ae   : > { %2106 = vmatpush.bf16.msrb.mxu3 %v2071_v43  ;;  %v2004_v45 = vsel %vm573_vm5, %v1999_v37, %v2001_v44 }
 0x3af   : > { %v1934_v46 = vpop.permute.xlu0 %1933  ;;  %v2015_v47 = vsel %vm1195_vm12, %v2004_v45, 0 }
 0x3b0   : > { %v1937_v48 = vsel %vm478_vm4, %v1932_v16, %v1934_v46  ;;  %3232 = vmatmul.msk.bf16.vlgmr.msra.gmra.mxu3 %vm1191_vm13, %v1993_v13  ;;  %2050 = vmatpush.bf16.msrb.mxu0 %v2015_v47  ;;  %v2248_v60 = vpop.permute.xlu2 %2247 }
 0x3b1   : > { %v1948_v0 = vsel %vm1195_vm12, %v1937_v48, 0 }
 0x3b2   : > { %1983 = vmatpush.bf16.msra.mxu1 %v1948_v0 }
 0x3b5   : > { %3230 = vmatmul.msk.bf16.vlgmr.msra.gmra.mxu1 %vm1191_vm13, %v1926_v33  ;;  %v2184_v8 = vpop.permute.xlu1 %2183 }
 0x3b6   : > { %2080 = vmatpush.bf16.msrb.mxu1 %v2065_v29  ;;  %3235 = vmatmul.msk.bf16.vlgmr.msrb.gmra.mxu2 %vm1191_vm13, %v2060_v30 }
 0x3b7   : > { %v2182_v49 = vpop.permute.xlu0 %2181 }
 0x3b8   : > { %v2187_v63 = vsel %vm826_vm7, %v2182_v49, %v2184_v8  ;;  %v2244_v36 = vpop.permute.xlu2 %2243 }
 0x3b9   : > { %v2193_v51 = vsel %vm1195_vm12, %v2187_v63, 0 }
 0x3ba   : > { %2208 = vmatpush.bf16.msra.mxu3 %v2193_v51 }
 0x3bb   : > { %3233 = vmatmul.msk.bf16.vlgmr.msrb.gmra.mxu0 %vm1191_vm13, %v1993_v13 }
 0x3bd   : > { %v2120_v53 = vpop.permute.xlu1 %2119 }
 0x3be   : > { %v2124_v55 = vsel %vm738_vm6, %v2120_v53, %v2122_v35 }
 0x3bf   : > { %v2118_v57 = vpop.permute.xlu0 %2117  ;;  %v2132_v50 = vsel %vm1195_vm12, %v2124_v55, 0  ;;  %v4147_v55 = vld [vmem:[#allocation5 + $0x10] sm:$0xf] }
 0x3c0   : > { %3236 = vmatmul.msk.bf16.vlgmr.msrb.gmra.mxu3 %vm1191_vm13, %v2060_v30  ;;  %v2123_v17 = vsel %vm738_vm6, %v2118_v57, %v2120_v53  ;;  %2157 = vmatpush.bf16.msra.mxu1 %v2132_v50  ;;  %v2308_v19 = vpop.permute.xlu2 %2307  ;;  %v2404_v50 = vunpack.c.l.b16 %v4147_v55 }
 0x3c1   : > { %v2129_v59 = vsel %vm1195_vm12, %v2123_v17, 0 }
 0x3c2   : > { %2144 = vmatpush.bf16.msra.mxu0 %v2129_v59 }
 0x3c5   : > { %3234 = vmatmul.msk.bf16.vlgmr.msrb.gmra.mxu1 %vm1191_vm13, %v2060_v30  ;;  %v2246_v61 = vpop.permute.xlu1 %2245 }
 0x3c6   : > { %v2251_v62 = vsel %vm914_vm8, %v2246_v61, %v2248_v60  ;;  %3239 = vmatmul.msk.bf16.vlgmr.msra.gmra.mxu2 %vm1191_vm13, %v2116_v52 }
 0x3c7   : > { %v2180_v1 = vpop.permute.xlu0 %2179  ;;  %v2257_v38 = vsel %vm1195_vm12, %v2251_v62, 0 }
 0x3c8   : > { %2272 = vmatpush.bf16.msrb.mxu2 %v2257_v38 }
 0x3cb   : > { %3237 = vmatmul.msk.bf16.vlgmr.msra.gmra.mxu0 %vm1191_vm13, %v2116_v52 }
 0x3cd   : > { %v2186_v3 = vpop.permute.xlu1 %2185 }
 0x3ce   : > { %v2188_v4 = vsel %vm826_vm7, %v2184_v8, %v2186_v3  ;;  %v2199_v2 = vsel %vm1195_vm12, %v2186_v3, 0  ;;  %v4154_v3 = vld [vmem:[#allocation2] sm:$0xff] }
 0x3cf   : > { %v2250_v7 = vpop.permute.xlu0 %2249  ;;  %v2196_v9 = vsel %vm1195_vm12, %v2188_v4, 0  ;;  %2234 = vmatpush.bf16.msrb.mxu1 %v2199_v2  ;;  %v4158_v4 = vpack.c.bf16 %v4154_v3, %v4154_v3 }
 0x3d0   : > { %v2252_v10 = vsel %vm914_vm8, %v2248_v60, %v2250_v7  ;;  %v2263_v11 = vsel %vm1195_vm12, %v2250_v7, 0  ;;  %3240 = vmatmul.msk.bf16.vlgmr.msra.gmra.mxu3 %vm1191_vm13, %v2180_v1  ;;  %2221 = vmatpush.bf16.msrb.mxu0 %v2196_v9  ;;  %v4150_v60 = vpack.c.b16 %v2404_v50, %v2404_v50 }
 0x3d1   : > { %v2260_v39 = vsel %vm1195_vm12, %v2252_v10, 0 }
 0x3d2   : > { %2285 = vmatpush.bf16.msrb.mxu3 %v2260_v39  ;;  %2406 = vrot.lane.b32.xlu1 %v4150_v60, %s3508_s26  ;;  %s4439_s26 = smov 96  }
 0x3d4   : > { %2298 = vmatpush.bf16.msra.mxu0 %v2263_v11 }
 0x3d5   : > { %3238 = vmatmul.msk.bf16.vlgmr.msra.gmra.mxu1 %vm1191_vm13, %v2116_v52  ;;  %v2314_v12 = vpop.permute.xlu1 %2313 }
 0x3d6   : > { %v2327_v13 = vsel %vm1195_vm12, %v2314_v12, 0  ;;  %3243 = vmatmul.msk.bf16.vlgmr.msrb.gmra.mxu2 %vm1191_vm13, %v2244_v36 }
 0x3d7   : > { %v2312_v14 = vpop.permute.xlu0 %2311  ;;  %2362 = vmatpush.bf16.msra.mxu3 %v2327_v13 }
 0x3d8   : > { %v2316_v15 = vsel %vm1002_vm9, %v2312_v14, %v2314_v12 }
 0x3d9   : > { %v2324_v20 = vsel %vm1195_vm12, %v2316_v15, 0 }
 0x3da   : > { %2349 = vmatpush.bf16.msra.mxu2 %v2324_v20  ;;  %2474 = vrot.lane.b32.xlu1 %v4158_v4, %s3507_s25 }
 0x3db   : > { %3241 = vmatmul.msk.bf16.vlgmr.msrb.gmra.mxu0 %vm1191_vm13, %v2180_v1 }
 0x3df   : > { %v2310_v22 = vpop.permute.xlu0 %2309 }
 0x3e0   : > { %v2315_v23 = vsel %vm1002_vm9, %v2310_v22, %v2312_v14  ;;  %3244 = vmatmul.msk.bf16.vlgmr.msrb.gmra.mxu3 %vm1191_vm13, %v2244_v36 }
 0x3e1   : > { %v2321_v26 = vsel %vm1195_vm12, %v2315_v23, 0 }
 0x3e2   : > { %2336 = vmatpush.bf16.msra.mxu1 %v2321_v26 }
 0x3e5   : > { %3242 = vmatmul.msk.bf16.vlgmr.msrb.gmra.mxu1 %vm1191_vm13, %v2180_v1 }
 0x3e6   : > { %3247 = vmatmul.msk.bf16.vlgmr.msra.gmra.mxu2 %vm1191_vm13, %v2308_v19 }
 0x3eb   : > { %3245 = vmatmul.msk.bf16.vlgmr.msra.gmra.mxu0 %vm1191_vm13, %v2244_v36 }
 0x3f0   : > { %3248 = vmatmul.msk.bf16.vlgmr.msra.gmra.mxu3 %vm1191_vm13, %v2308_v19 }
 0x3f5   : > { %3246 = vmatmul.msk.bf16.vlgmr.msra.gmra.mxu1 %vm1191_vm13, %v2308_v19 }
 0x403   : > { %v1833_v27 = vpop.f32.mrf.mxu1 }
 0x409   : > { %v1846_v30 = vpop.f32.mrf.mxu2 }
 0x40b   : > { %v1835_v31 = vpop.f32.mrf.mxu1 }
 0x410   : > { %v1859_v32 = vpop.f32.mrf.mxu3 }
 0x411   : > { %v1848_v33 = vpop.f32.mrf.mxu2 }
 0x413   : > { %v1908_v34 = vpop.f32.mrf.mxu1 }
 0x414   : > { %v1909_v18 = vadd.f32 %v1908_v34, %v1846_v30  ;;  %v2376_v34 = vpop.permute.xlu1 %2375 }
 0x418   : > { %v1861_v35 = vpop.f32.mrf.mxu3  ;;  %v1895_v16 = vpop.f32.mrf.mxu0 }
 0x419   : > { %v1896_v25 = vadd.f32 %v1895_v16, %v1833_v27  ;;  %v1921_v28 = vpop.f32.mrf.mxu2 }
 0x41a   : > { %v1922_v37 = vadd.f32 %v1921_v28, %v1859_v32 }
 0x41b   : > { %v1910_v40 = vpop.f32.mrf.mxu1 }
 0x420   : > { %v1897_v41 = vpop.f32.mrf.mxu0 }
 0x421   : > { %v1923_v42 = vpop.f32.mrf.mxu2 }
 0x423   : > { %v1959_v43 = vpop.f32.mrf.mxu3 }
 0x424   : > { %v1989_v44 = vadd.f32 %v1959_v43, %v1896_v25 }
 0x428   : > { %v1972_v45 = vpop.f32.mrf.mxu0 }
 0x429   : > { %v2026_v46 = vpop.f32.mrf.mxu2  ;;  %v1990_v24 = vadd.f32 %v1972_v45, %v1909_v18 }
 0x42a   : > { %v2056_v32 = vadd.f32 %v2026_v46, %v1989_v44 }
 0x42b   : > { %v1961_v47 = vpop.f32.mrf.mxu3 }
 0x430   : > { %v1974_v48 = vpop.f32.mrf.mxu0 }
 0x431   : > { %v2028_v0 = vpop.f32.mrf.mxu2 }
 0x432   : > { %v1985_v29 = vpop.f32.mrf.mxu1 }
 0x433   : > { %v2039_v8 = vpop.f32.mrf.mxu3  ;;  %v1991_v27 = vadd.f32 %v1985_v29, %v1922_v37 }
 0x434   : > { %v2057_v13 = vadd.f32 %v2039_v8, %v1990_v24 }
 0x438   : > { %v2052_v49 = vpop.f32.mrf.mxu0 }
 0x439   : > { %v2095_v63 = vpop.f32.mrf.mxu2  ;;  %v2058_v35 = vadd.f32 %v2052_v49, %v1991_v27 }
 0x43a   : > { %v1987_v51 = vpop.f32.mrf.mxu1  ;;  %v2113_v20 = vadd.f32 %v2095_v63, %v2057_v13 }
 0x43b   : > { %v2041_v52 = vpop.f32.mrf.mxu3 }
 0x440   : > { %v2054_v53 = vpop.f32.mrf.mxu0 }
 0x441   : > { %v2097_v57 = vpop.f32.mrf.mxu2 }
 0x442   : > { %v2082_v17 = vpop.f32.mrf.mxu1 }
 0x443   : > { %v2108_v59 = vpop.f32.mrf.mxu3  ;;  %v2112_v28 = vadd.f32 %v2082_v17, %v2056_v32 }
 0x444   : > { %v2114_v18 = vadd.f32 %v2108_v59, %v2058_v35 }
 0x448   : > { %v2146_v61 = vpop.f32.mrf.mxu0 }
 0x449   : > { %v2172_v62 = vpop.f32.mrf.mxu2  ;;  %v2176_v42 = vadd.f32 %v2146_v61, %v2112_v28 }
 0x44a   : > { %v2084_v1 = vpop.f32.mrf.mxu1  ;;  %v2178_v43 = vadd.f32 %v2172_v62, %v2114_v18 }
 0x44b   : > { %v2110_v38 = vpop.f32.mrf.mxu3 }
 0x450   : > { %v2148_v2 = vpop.f32.mrf.mxu0 }
 0x451   : > { %v2174_v7 = vpop.f32.mrf.mxu2 }
 0x452   : > { %v2159_v9 = vpop.f32.mrf.mxu1 }
 0x453   : > { %v2210_v10 = vpop.f32.mrf.mxu3  ;;  %v2177_v26 = vadd.f32 %v2159_v9, %v2113_v20  ;;  %v3277_v9 = vld [vmem:[%s4412_s2 + $0x20] sm:$0xff] }
 0x454   : > { %v2240_v47 = vadd.f32 %v2210_v10, %v2176_v42  ;;  %v2407_v10 = vpop.permute.xlu1 %2406 }
 0x458   : > { %v2223_v11 = vpop.f32.mrf.mxu0 }
 0x459   : > { %v2274_v39 = vpop.f32.mrf.mxu2  ;;  %v2241_v19 = vadd.f32 %v2223_v11, %v2177_v26 }
 0x45a   : > { %v2161_v36 = vpop.f32.mrf.mxu1  ;;  %v2304_v29 = vadd.f32 %v2274_v39, %v2240_v47 }
 0x45b   : > { %v2212_v12 = vpop.f32.mrf.mxu3 }
 0x45c   : > { %v2475_v39 = vpop.permute.xlu1 %2474 }
 0x460   : > { %v2225_v14 = vpop.f32.mrf.mxu0 }
 0x461   : > { %v2276_v15 = vpop.f32.mrf.mxu2 }
 0x462   : > { %v2236_v22 = vpop.f32.mrf.mxu1 }
 0x463   : > { %v2287_v23 = vpop.f32.mrf.mxu3  ;;  %v2242_v48 = vadd.f32 %v2236_v22, %v2178_v43 }
 0x464   : > { %v2305_v30 = vadd.f32 %v2287_v23, %v2241_v19 }
 0x468   : > { %v2300_v31 = vpop.f32.mrf.mxu0 }
 0x469   : > { %v2351_v33 = vpop.f32.mrf.mxu2  ;;  %v2306_v44 = vadd.f32 %v2300_v31, %v2242_v48 }
 0x46a   : > { %v2238_v16 = vpop.f32.mrf.mxu1  ;;  %v2369_v25 = vadd.f32 %v2351_v33, %v2305_v30 }
 0x46b   : > { %v2289_v40 = vpop.f32.mrf.mxu3 }
 0x46c   : > { %v2379_v41 = vadd.f32 %v2376_v34, %v2369_v25 }
 0x46e   : > { %v2382_v45 = vmax.f32 %v2379_v41, 0.0 }
 0x470   : > { %v2385_v0 = vmul.f32 %v2382_v45, %v3781_v6  ;;  %v2302_v37 = vpop.f32.mrf.mxu0 }
 0x471   : > { %v2353_v8 = vpop.f32.mrf.mxu2 }
 0x472   : > { %v2338_v46 = vpop.f32.mrf.mxu1  ;;  %v4163_v63 = vpack.c.bf16 %v2385_v0, %v2385_v0 }
 0x473   : > { %v2368_v49 = vadd.f32 %v2338_v46, %v2304_v29  ;;  %v2364_v51 = vpop.f32.mrf.mxu3 }
 0x474   : > { %v2370_v52 = vadd.f32 %v2364_v51, %v2306_v44  ;;  %2416 = vrot.lane.b32.xlu2 %v4163_v63, %s3506_s23 }
 0x475   : > { %v2378_v53 = vadd.f32 %v2376_v34, %v2368_v49 }
 0x476   : > { %v2380_v57 = vadd.f32 %v2376_v34, %v2370_v52 }
 0x477   : > { %v2381_v50 = vmax.f32 %v2378_v53, 0.0 }
 0x478   : > { %v2383_v17 = vmax.f32 %v2380_v57, 0.0 }
 0x479   : > { %v2384_v59 = vmul.f32 %v2381_v50, %v3779_v5 }
 0x47a   : > { %v2386_v61 = vmul.f32 %v2383_v17, %v3789_v21  ;;  %v2340_v62 = vpop.f32.mrf.mxu1 }
 0x47b   : > { %v2366_v1 = vpop.f32.mrf.mxu3  ;;  %v4169_v38 = vpack.c.bf16 %v2384_v59, %v2384_v59 }
 0x47c   : > { %2389 = vst.msk [vmem:[#allocation2 + $0x18] sm:$0xff] %vm1083_vm11, %v2386_v61  ;;  %2412 = vrot.lane.b32.xlu2 %v4158_v4, %s3506_s23 }
 0x47d   : > { %2540 = vrot.lane.b32.xlu1 %v4169_v38, %s3509_s30 }
 0x483   : > { %v2396_v2 = vld [vmem:[#allocation2 + $0x18] sm:$0xff] }
 0x484   : > { %v4176_v7 = vpack.c.bf16 %v2396_v2, %v2396_v2  ;;  %2476 = vrot.lane.b32.xlu2 %v4169_v38, %s3507_s25 }
 0x486   : > { %2418 = vrot.lane.b32.xlu0 %v4176_v7, %s3506_s23  ;;  %2480 = vrot.lane.b32.xlu1 %v4176_v7, %s3507_s25  ;;  %v2682_v62 = vsel %vm1195_vm12, %v4176_v7, 0 }
 0x48c   : > { %2536 = vrot.lane.b32.xlu2 %v4150_v60, %s3513_s9  ;;  %s3287_s9 = sshll.u32 %s3579_s22, 5 }
 0x48e   : > { %2414 = vrot.lane.b32.xlu0 %v4169_v38, %s3506_s23  ;;  %2609 = vrot.lane.b32.xlu1 %v4163_v63, %s3510_s6  ;;  %s4437_s23 = smov 111  }
 0x494   : > { %2542 = vrot.lane.b32.xlu2 %v4163_v63, %s3509_s30 }
 0x496   : > { %2538 = vrot.lane.b32.xlu0 %v4158_v4, %s3509_s30  ;;  %2605 = vrot.lane.b32.xlu1 %v4158_v4, %s3510_s6 }
 0x49c   : > { %2603 = vrot.lane.b32.xlu2 %v4150_v60, %s3515_s11  ;;  %s4441_s11 = sshll.u32 %s3963_s13, 5 }
 0x49d   : > { %s4346_s15 = scalar_lea.vmem [#allocation9], %s4441_s11 }
 0x49e   : > { %2478 = vrot.lane.b32.xlu0 %v4163_v63, %s3507_s25  ;;  %2728 = vrot.lane.b32.xlu1 %v4169_v38, %s3512_s8  ;;  %s4438_s25 = smov 88   ;;  %3008 = vst [vmem:[%s4346_s15] sm:$0xff] %v4154_v3 }
 0x4a4   : > { %2611 = vrot.lane.b32.xlu2 %v4176_v7, %s3510_s6 }
 0x4a6   : > { %2607 = vrot.lane.b32.xlu0 %v4169_v38, %s3510_s6  ;;  %2794 = vrot.lane.b32.xlu1 %v4163_v63, %s4437_s23  ;;  %s4440_s6 = smov 109  }
 0x4ac   : > { %2730 = vrot.lane.b32.xlu2 %v4163_v63, %s3512_s8 }
 0x4ae   : > { %2544 = vrot.lane.b32.xlu0 %v4176_v7, %s3509_s30  ;;  %2732 = vrot.lane.b32.xlu1 %v4176_v7, %s3512_s8  ;;  %s3422_s30 = scalar_lea.hbm %s4414_s4, 64 }
 0x4b4   : > { %2726 = vrot.lane.b32.xlu2 %v4150_v60, %s4438_s25 }
 0x4b6   : > { %2670 = vrot.lane.b32.xlu0 %v4150_v60, %s4439_s26  ;;  %2860 = vrot.lane.b32.xlu1 %v4176_v7, %s4433_s16 }
 0x4bc   : > { %2796 = vrot.lane.b32.xlu2 %v4176_v7, %s4437_s23 }
 0x4be   : > { %2792 = vrot.lane.b32.xlu0 %v4169_v38, %s4437_s23  ;;  %2924 = vrot.lane.b32.xlu1 %v4176_v7, %s4440_s6  ;;  %s3013_s23 = scalar_lea.sflag [#allocation7], %s3963_s13 }
 0x4c4   : > { %2854 = vrot.lane.b32.xlu2 %v4150_v60, %s4435_s17 }
 0x4c6   : > { %2790 = vrot.lane.b32.xlu0 %v4150_v60, %s4434_s14  ;;  %2922 = vrot.lane.b32.xlu1 %v4163_v63, %s4440_s6  ;;  %s3029_s14 = scalar_lea.hbm %s4414_s4, %s3287_s9 }
 0x4cc   : > { %2918 = vrot.lane.b32.xlu2 %v4150_v60, %s4436_s12 }
 0x4ce   : > { %2858 = vrot.lane.b32.xlu0 %v4163_v63, %s4433_s16  ;;  %v2417_v4 = vpop.permute.xlu2 %2416 }
 0x4d4   : > { %2986 = vperm.xlu2 %3369, %v3277_v9  }
 0x4d6   : > { %2856 = vrot.lane.b32.xlu0 %v4169_v38, %s4433_s16  ;;  %v2413_v11 = vpop.permute.xlu2 %2412  ;;  %s3033_s16 = sshll.u32 %s3029_s14, 4  ;;  %s3034_s16 = int_to_ptr.hbm [resolvable:$true] %s3033_s16 }
 0x4d7   : > { %s3416_s25 = sshra.s32 %s3034_s16, 4  ;;  %s3417_s25 = int_to_ptr.hbm [resolvable:$true] %s3416_s25 }
 0x4d8   : > { %s3418_s26 = scalar_lea.hbm %s3417_s25, 32  ;;  %p3423_p3 = scmp.lt.s32.totalorder %s3417_s25, %s4414_s4 }
 0x4d9   : > { %p3419_p0 = scmp.ne.s32.totalorder %s3417_s25, %s3418_s26  ;;  %p3424_p4 = scmp.lt.s32.totalorder %s3422_s30, %s3418_s26 }
 0x4db   : > { %p3420_p1 = pnand %p3419_p0, %p3596_p5  ;;  %p3425_p7 = por %p3424_p4, %p3423_p3 }
 0x4dd   : > { %p3421_p2 = pneg %p3420_p1 }
 0x4de   : > { %2920 = vrot.lane.b32.xlu0 %v4169_v38, %s4440_s6  ;;  %v2477_v36 = vpop.permute.xlu2 %2476 }
 0x4df   : > { %v2482_v60 = vsel %vm386_vm3, %v2475_v39, %v2477_v36  ;;  %p3426_p8 = pnand %p3425_p7, %p3421_p2 }
 0x4e0   : > { %v2489_v12 = vsel %vm1195_vm12, %v2482_v60, 0 }
 0x4e1   : > { %2504 = vmatpush.bf16.msrb.mxu3 %v2489_v12 }
 0x4e4   : > { %3253 = vmatmul.msk.bf16.vlgmr.msrb.gmra.mxu3 %vm1191_vm13, %v4147_v55 }
 0x4e6   : > { %v4247_v24 = vpop.permute.xlu2 %2536 }
 0x4ee   : > { %v4249_v13 = vpop.permute.xlu2 %2542 }
 0x4ef   : > { %v2541_v14 = vpop.permute.xlu1 %2540 }
 0x4f0   : > { %v2547_v15 = vsel %vm478_vm4, %v2541_v14, %v4249_v13 }
 0x4f1   : > { %v2556_v20 = vsel %vm1195_vm12, %v2547_v15, 0 }
 0x4f2   : > { %2581 = vmatpush.bf16.msra.mxu3 %v2556_v20 }
 0x4f5   : > { %3257 = vmatmul.msk.bf16.vlgmr.msra.gmra.mxu3 %vm1191_vm13, %v4247_v24 }
 0x4f6   : > { %v4256_v22 = vpop.permute.xlu2 %2603 }
 0x4f8   : > { %v2419_v23 = vpop.permute.xlu0 %2418  ;;  %v2481_v26 = vpop.permute.xlu1 %2480 }
 0x4f9   : > { %v2422_v19 = vsel %vm317_vm0, %v2417_v4, %v2419_v23 }
 0x4fa   : > { %v2433_v27 = vsel %vm1195_vm12, %v2422_v19, 0 }
 0x4fb   : > { %2468 = vmatpush.bf16.msrb.mxu2 %v2433_v27 }
 0x4fe   : > { %3252 = vmatmul.msk.bf16.vlgmr.msrb.gmra.mxu2 %vm1191_vm13, %v2407_v10  ;;  %v2612_v30 = vpop.permute.xlu2 %2611 }
 0x500   : > { %v2415_v31 = vpop.permute.xlu0 %2414  ;;  %v2610_v32 = vpop.permute.xlu1 %2609 }
 0x501   : > { %v2420_v33 = vsel %vm317_vm0, %v2413_v11, %v2415_v31  ;;  %v2421_v34 = vsel %vm317_vm0, %v2415_v31, %v2417_v4  ;;  %v2615_v35 = vsel %vm573_vm5, %v2610_v32, %v2612_v30 }
 0x502   : > { %v2427_v16 = vsel %vm1195_vm12, %v2420_v33, 0  ;;  %v2430_v25 = vsel %vm1195_vm12, %v2421_v34, 0  ;;  %v2626_v28 = vsel %vm1195_vm12, %v2615_v35, 0 }
 0x503   : > { %2442 = vmatpush.bf16.msrb.mxu0 %v2427_v16  ;;  %2455 = vmatpush.bf16.msrb.mxu1 %v2430_v25 }
 0x504   : > { %2661 = vmatpush.bf16.msrb.mxu3 %v2626_v28 }
 0x506   : > { %3250 = vmatmul.msk.bf16.vlgmr.msrb.gmra.mxu0 %vm1191_vm13, %v2407_v10  ;;  %3251 = vmatmul.msk.bf16.vlgmr.msrb.gmra.mxu1 %vm1191_vm13, %v2407_v10  ;;  %v2731_v40 = vpop.permute.xlu2 %2730 }
 0x507   : > { %3261 = vmatmul.msk.bf16.vlgmr.msrb.gmra.mxu3 %vm1191_vm13, %v4256_v22 }
 0x508   : > { %v2539_v18 = vpop.permute.xlu0 %2538  ;;  %v2606_v41 = vpop.permute.xlu1 %2605 }
 0x509   : > { %v2546_v42 = vsel %vm478_vm4, %v2539_v18, %v2541_v14 }
 0x50a   : > { %v2553_v43 = vsel %vm1195_vm12, %v2546_v42, 0 }
 0x50b   : > { %2568 = vmatpush.bf16.msra.mxu2 %v2553_v43 }
 0x50e   : > { %3256 = vmatmul.msk.bf16.vlgmr.msra.gmra.mxu2 %vm1191_vm13, %v4247_v24  ;;  %v4275_v45 = vpop.permute.xlu2 %2726 }
 0x510   : > { %v2479_v47 = vpop.permute.xlu0 %2478  ;;  %v2729_v48 = vpop.permute.xlu1 %2728 }
 0x511   : > { %v2483_v0 = vsel %vm386_vm3, %v2477_v36, %v2479_v47  ;;  %v2484_v37 = vsel %vm386_vm3, %v2479_v47, %v2481_v26  ;;  %v2734_v29 = vsel %vm738_vm6, %v2729_v48, %v2731_v40 }
 0x512   : > { %v2492_v8 = vsel %vm1195_vm12, %v2483_v0, 0  ;;  %v2495_v44 = vsel %vm1195_vm12, %v2484_v37, 0  ;;  %v2740_v46 = vsel %vm1195_vm12, %v2734_v29, 0 }
 0x513   : > { %2517 = vmatpush.bf16.msra.mxu0 %v2492_v8  ;;  %2530 = vmatpush.bf16.msra.mxu1 %v2495_v44 }
 0x514   : > { %2755 = vmatpush.bf16.msra.mxu3 %v2740_v46 }
 0x516   : > { %3254 = vmatmul.msk.bf16.vlgmr.msra.gmra.mxu0 %vm1191_vm13, %v4147_v55  ;;  %3255 = vmatmul.msk.bf16.vlgmr.msra.gmra.mxu1 %vm1191_vm13, %v4147_v55  ;;  %v2797_v49 = vpop.permute.xlu2 %2796  ;;  %v2679_v55 = vsel %vm1195_vm12, %v4163_v63, 0  ;;  %v2676_v63 = vsel %vm1195_vm12, %v4169_v38, 0 }
 0x517   : > { %3265 = vmatmul.msk.bf16.vlgmr.msra.gmra.mxu3 %vm1191_vm13, %v4275_v45 }
 0x518   : > { %v2608_v51 = vpop.permute.xlu0 %2607  ;;  %v2795_v52 = vpop.permute.xlu1 %2794 }
 0x519   : > { %v2613_v53 = vsel %vm573_vm5, %v2606_v41, %v2608_v51  ;;  %v2614_v57 = vsel %vm573_vm5, %v2608_v51, %v2610_v32  ;;  %v2799_v50 = vsel %vm826_vm7, %v2795_v52, %v2797_v49 }
 0x51a   : > { %v2620_v17 = vsel %vm1195_vm12, %v2613_v53, 0  ;;  %v2623_v59 = vsel %vm1195_vm12, %v2614_v57, 0  ;;  %v2807_v61 = vsel %vm1195_vm12, %v2799_v50, 0 }
 0x51b   : > { %2635 = vmatpush.bf16.msrb.mxu1 %v2620_v17  ;;  %2648 = vmatpush.bf16.msrb.mxu2 %v2623_v59 }
 0x51c   : > { %2832 = vmatpush.bf16.msrb.mxu3 %v2807_v61 }
 0x51e   : > { %3260 = vmatmul.msk.bf16.vlgmr.msrb.gmra.mxu2 %vm1191_vm13, %v4256_v22  ;;  %v2855_v27 = vpop.permute.xlu2 %2854 }
 0x51f   : > { %2704 = vmatpush.bf16.msra.mxu1 %v2679_v55  ;;  %2717 = vmatpush.bf16.msra.mxu2 %v2682_v62 }
 0x520   : > { %v2545_v1 = vpop.permute.xlu0 %2544  ;;  %v2733_v2 = vpop.permute.xlu1 %2732 }
 0x521   : > { %v2548_v4 = vsel %vm478_vm4, %v4249_v13, %v2545_v1  ;;  %v2735_v10 = vsel %vm738_vm6, %v2731_v40, %v2733_v2  ;;  %v2746_v11 = vsel %vm1195_vm12, %v2733_v2, 0  ;;  %v2810_v13 = vsel %vm1195_vm12, %v2797_v49, 0 }
 0x522   : > { %v2559_v9 = vsel %vm1195_vm12, %v2548_v4, 0  ;;  %v2743_v7 = vsel %vm1195_vm12, %v2735_v10, 0 }
 0x523   : > { %2594 = vmatpush.bf16.msrb.mxu0 %v2559_v9 }
 0x526   : > { %3258 = vmatmul.msk.bf16.vlgmr.msrb.gmra.mxu0 %vm1191_vm13, %v4247_v24  ;;  %3259 = vmatmul.msk.bf16.vlgmr.msrb.gmra.mxu1 %vm1191_vm13, %v4256_v22  ;;  %v2919_v28 = vpop.permute.xlu2 %2918 }
 0x527   : > { %2691 = vmatpush.bf16.msra.mxu0 %v2676_v63  ;;  %2781 = vmatpush.bf16.msrb.mxu1 %v2746_v11 }
 0x528   : > { %v2671_v39 = vpop.permute.xlu0 %2670  ;;  %v2861_v36 = vpop.permute.xlu1 %2860 }
 0x529   : > { %v2874_v60 = vsel %vm1195_vm12, %v2861_v36, 0 }
 0x52a   : > { %2909 = vmatpush.bf16.msra.mxu3 %v2874_v60 }
 0x52b   : > { %2768 = vmatpush.bf16.msrb.mxu0 %v2743_v7 }
 0x52e   : > { %3264 = vmatmul.msk.bf16.vlgmr.msra.gmra.mxu2 %vm1191_vm13, %v2671_v39 }
 0x530   : > { %v2793_v38 = vpop.permute.xlu0 %2792  ;;  %v2925_v15 = vpop.permute.xlu1 %2924 }
 0x531   : > { %v2798_v12 = vsel %vm826_vm7, %v2793_v38, %v2795_v52  ;;  %v2938_v26 = vsel %vm1195_vm12, %v2925_v15, 0 }
 0x532   : > { %v2804_v24 = vsel %vm1195_vm12, %v2798_v12, 0 }
 0x533   : > { %2819 = vmatpush.bf16.msrb.mxu2 %v2804_v24 }
 0x536   : > { %3262 = vmatmul.msk.bf16.vlgmr.msra.gmra.mxu0 %vm1191_vm13, %v2671_v39  ;;  %3263 = vmatmul.msk.bf16.vlgmr.msra.gmra.mxu1 %vm1191_vm13, %v2671_v39 }
 0x537   : > { %2845 = vmatpush.bf16.msra.mxu0 %v2810_v13 }
 0x538   : > { %v2791_v14 = vpop.permute.xlu0 %2790  ;;  %v2923_v19 = vpop.permute.xlu1 %2922 }
 0x539   : > { %3269 = vmatmul.msk.bf16.vlgmr.msrb.gmra.mxu3 %vm1191_vm13, %v2791_v14  ;;  %v2927_v30 = vsel %vm1002_vm9, %v2923_v19, %v2925_v15 }
 0x53a   : > { %v2935_v34 = vsel %vm1195_vm12, %v2927_v30, 0 }
 0x53e   : > { %3268 = vmatmul.msk.bf16.vlgmr.msrb.gmra.mxu2 %vm1191_vm13, %v2791_v14 }
 0x540   : > { %v2859_v20 = vpop.permute.xlu0 %2858 }
 0x541   : > { %v2863_v22 = vsel %vm914_vm8, %v2859_v20, %v2861_v36 }
 0x542   : > { %v2871_v23 = vsel %vm1195_vm12, %v2863_v22, 0 }
 0x543   : > { %2896 = vmatpush.bf16.msra.mxu2 %v2871_v23 }
 0x546   : > { %3266 = vmatmul.msk.bf16.vlgmr.msrb.gmra.mxu0 %vm1191_vm13, %v4275_v45  ;;  %3267 = vmatmul.msk.bf16.vlgmr.msrb.gmra.mxu1 %vm1191_vm13, %v4275_v45 }
 0x547   : > { %2973 = vmatpush.bf16.msrb.mxu2 %v2938_v26 }
 0x548   : > { %v2857_v31 = vpop.permute.xlu0 %2856 }
 0x549   : > { %v2862_v32 = vsel %vm914_vm8, %v2857_v31, %v2859_v20  ;;  %3273 = vmatmul.msk.bf16.vlgmr.msra.gmra.mxu3 %vm1191_vm13, %v2855_v27 }
 0x54a   : > { %v2868_v33 = vsel %vm1195_vm12, %v2862_v32, 0 }
 0x54b   : > { %2883 = vmatpush.bf16.msra.mxu1 %v2868_v33 }
 0x54e   : > { %3272 = vmatmul.msk.bf16.vlgmr.msra.gmra.mxu2 %vm1191_vm13, %v2855_v27 }
 0x54f   : > { %2960 = vmatpush.bf16.msrb.mxu1 %v2935_v34 }
 0x550   : > { %v2921_v35 = vpop.permute.xlu0 %2920 }
 0x551   : > { %v2926_v16 = vsel %vm1002_vm9, %v2921_v35, %v2923_v19 }
 0x552   : > { %v2932_v25 = vsel %vm1195_vm12, %v2926_v16, 0 }
 0x553   : > { %2947 = vmatpush.bf16.msrb.mxu0 %v2932_v25 }
 0x556   : > { %3270 = vmatmul.msk.bf16.vlgmr.msra.gmra.mxu0 %vm1191_vm13, %v2791_v14  ;;  %3271 = vmatmul.msk.bf16.vlgmr.msra.gmra.mxu1 %vm1191_vm13, %v2855_v27 }
 0x55e   : > { %3276 = vmatmul.msk.bf16.vlgmr.msrb.gmra.mxu2 %vm1191_vm13, %v2919_v28 }
 0x566   : > { %3274 = vmatmul.msk.bf16.vlgmr.msrb.gmra.mxu0 %vm1191_vm13, %v2919_v28  ;;  %3275 = vmatmul.msk.bf16.vlgmr.msrb.gmra.mxu1 %vm1191_vm13, %v2919_v28 }
 0x567   : > { %v2506_v40 = vpop.f32.mrf.mxu3 }
 0x56f   : > { %v2508_v18 = vpop.f32.mrf.mxu3 }
 0x570   : > { %3429 = shalt.err (!%p3426_p8)
}
 0x571   : > { %3293 = dma.vmem_to_hbm [thread:$0]  (%p3596_p5), %s3032_s10, 512, %s3034_s16, %s3013_s23  }
 0x572   : > { %s3044_s12 = scalar_lea.hbm %s4415_s5, %s3287_s9  ;;  %s3046_s14 = sshll.u32 %s4346_s15, 4  ;;  %s3047_s14 = int_to_ptr.vmem [resolvable:$true] %s3046_s14 }
 0x573   : > { %s3048_s16 = sshll.u32 %s3044_s12, 4  ;;  %s3018_s23 = scalar_lea.sflag [#allocation10], %s3963_s13  ;;  %s3049_s16 = int_to_ptr.hbm [resolvable:$true] %s3048_s16 }
 0x574   : > { %s3444_s25 = sshra.s32 %s3049_s16, 4  ;;  %s3450_s7 = scalar_lea.hbm %s4415_s5, 64  ;;  %s3445_s25 = int_to_ptr.hbm [resolvable:$true] %s3444_s25 }
 0x575   : > { %s3446_s26 = scalar_lea.hbm %s3445_s25, 32  ;;  %p3451_p12 = scmp.lt.s32.totalorder %s3445_s25, %s4415_s5 }
 0x576   : > { %p3447_p9 = scmp.ne.s32.totalorder %s3445_s25, %s3446_s26  ;;  %p3452_p13 = scmp.lt.s32.totalorder %s3450_s7, %s3446_s26 }
 0x578   : > { %v2583_v3 = vpop.f32.mrf.mxu3  ;;  %p3448_p10 = pnand %p3447_p9, %p3596_p5  ;;  %p3453_p0 = por %p3452_p13, %p3451_p12 }
 0x57a   : > { %p3449_p11 = pneg %p3448_p10 }
 0x57c   : > { %p3454_p1 = pnand %p3453_p0, %p3449_p11 }
 0x580   : > { %v2585_v41 = vpop.f32.mrf.mxu3 }
 0x581   : > { %v2470_v42 = vpop.f32.mrf.mxu2 }
 0x583   : > { %v2444_v43 = vpop.f32.mrf.mxu0  ;;  %v2457_v45 = vpop.f32.mrf.mxu1 }
 0x584   : > { %v2507_v47 = vadd.f32 %v2506_v40, %v2444_v43 }
 0x589   : > { %v2472_v48 = vpop.f32.mrf.mxu2 }
 0x58a   : > { %v2663_v0 = vpop.f32.mrf.mxu3 }
 0x58b   : > { %v2446_v37 = vpop.f32.mrf.mxu0  ;;  %v2459_v29 = vpop.f32.mrf.mxu1 }
 0x58c   : > { %v2987_v37 = vpop.permute.xlu2 %2986 }
 0x591   : > { %v2570_v8 = vpop.f32.mrf.mxu2 }
 0x592   : > { %v2600_v44 = vadd.f32 %v2570_v8, %v2507_v47  ;;  %v2665_v46 = vpop.f32.mrf.mxu3 }
 0x593   : > { %v2519_v49 = vpop.f32.mrf.mxu0  ;;  %v2532_v51 = vpop.f32.mrf.mxu1 }
 0x594   : > { %v2520_v52 = vadd.f32 %v2519_v49, %v2457_v45  ;;  %v2533_v53 = vadd.f32 %v2532_v51, %v2470_v42 }
 0x596   : > { %v2601_v57 = vadd.f32 %v2583_v3, %v2520_v52 }
 0x599   : > { %v2572_v50 = vpop.f32.mrf.mxu2 }
 0x59a   : > { %v2757_v17 = vpop.f32.mrf.mxu3 }
 0x59b   : > { %v2521_v59 = vpop.f32.mrf.mxu0  ;;  %v2534_v61 = vpop.f32.mrf.mxu1 }
 0x5a1   : > { %v2650_v55 = vpop.f32.mrf.mxu2 }
 0x5a2   : > { %v2759_v62 = vpop.f32.mrf.mxu3  ;;  %v2668_v16 = vadd.f32 %v2650_v55, %v2601_v57 }
 0x5a3   : > { %v2596_v1 = vpop.f32.mrf.mxu0  ;;  %v2637_v2 = vpop.f32.mrf.mxu1 }
 0x5a4   : > { %v2602_v4 = vadd.f32 %v2596_v1, %v2533_v53  ;;  %v2667_v39 = vadd.f32 %v2637_v2, %v2600_v44 }
 0x5a6   : > { %v2669_v9 = vadd.f32 %v2663_v0, %v2602_v4 }
 0x5a9   : > { %v2652_v63 = vpop.f32.mrf.mxu2 }
 0x5ab   : > { %v2598_v10 = vpop.f32.mrf.mxu0  ;;  %v2639_v7 = vpop.f32.mrf.mxu1 }
 0x5b1   : > { %v2719_v11 = vpop.f32.mrf.mxu2 }
 0x5b2   : > { %v2725_v25 = vadd.f32 %v2719_v11, %v2669_v9 }
 0x5b3   : > { %v2693_v36 = vpop.f32.mrf.mxu0  ;;  %v2706_v60 = vpop.f32.mrf.mxu1 }
 0x5b4   : > { %v2723_v38 = vadd.f32 %v2693_v36, %v2667_v39  ;;  %v2724_v40 = vadd.f32 %v2706_v60, %v2668_v16 }
 0x5b6   : > { %v2787_v12 = vadd.f32 %v2757_v17, %v2723_v38 }
 0x5b9   : > { %v2721_v24 = vpop.f32.mrf.mxu2 }
 0x5bb   : > { %v2695_v13 = vpop.f32.mrf.mxu0  ;;  %v2708_v14 = vpop.f32.mrf.mxu1 }
 0x5bc   : > { %v2834_v15 = vpop.f32.mrf.mxu3 }
 0x5c1   : > { %v2821_v20 = vpop.f32.mrf.mxu2 }
 0x5c2   : > { %v2851_v45 = vadd.f32 %v2821_v20, %v2787_v12 }
 0x5c3   : > { %v2770_v22 = vpop.f32.mrf.mxu0  ;;  %v2783_v23 = vpop.f32.mrf.mxu1 }
 0x5c4   : > { %v2836_v26 = vpop.f32.mrf.mxu3  ;;  %v2789_v18 = vadd.f32 %v2783_v23, %v2725_v25  ;;  %v2788_v42 = vadd.f32 %v2770_v22, %v2724_v40 }
 0x5c6   : > { %v2852_v47 = vadd.f32 %v2834_v15, %v2788_v42 }
 0x5c9   : > { %v2823_v19 = vpop.f32.mrf.mxu2 }
 0x5cb   : > { %v2772_v27 = vpop.f32.mrf.mxu0  ;;  %v2785_v30 = vpop.f32.mrf.mxu1 }
 0x5cc   : > { %v2911_v31 = vpop.f32.mrf.mxu3 }
 0x5d1   : > { %v2898_v32 = vpop.f32.mrf.mxu2 }
 0x5d2   : > { %v2916_v29 = vadd.f32 %v2898_v32, %v2852_v47 }
 0x5d3   : > { %v2847_v33 = vpop.f32.mrf.mxu0  ;;  %v2885_v34 = vpop.f32.mrf.mxu1 }
 0x5d4   : > { %v2913_v35 = vpop.f32.mrf.mxu3  ;;  %v2853_v43 = vadd.f32 %v2847_v33, %v2789_v18  ;;  %v2915_v8 = vadd.f32 %v2885_v34, %v2851_v45 }
 0x5d6   : > { %v2917_v48 = vadd.f32 %v2911_v31, %v2853_v43 }
 0x5d9   : > { %v2900_v28 = vpop.f32.mrf.mxu2 }
 0x5db   : > { %v2849_v3 = vpop.f32.mrf.mxu0  ;;  %v2887_v41 = vpop.f32.mrf.mxu1 }
 0x5e1   : > { %v2975_v0 = vpop.f32.mrf.mxu2 }
 0x5e2   : > { %v2981_v44 = vadd.f32 %v2975_v0, %v2917_v48 }
 0x5e3   : > { %v2949_v46 = vpop.f32.mrf.mxu0  ;;  %v2962_v49 = vpop.f32.mrf.mxu1 }
 0x5e4   : > { %v2991_v51 = vadd.f32 %v2987_v37, %v2981_v44  ;;  %v2979_v52 = vadd.f32 %v2949_v46, %v2915_v8  ;;  %v2980_v53 = vadd.f32 %v2962_v49, %v2916_v29 }
 0x5e6   : > { %v2994_v57 = vadd.f32 %v2991_v51, %v3994_v56  ;;  %v2989_v50 = vadd.f32 %v2987_v37, %v2979_v52  ;;  %v2990_v17 = vadd.f32 %v2987_v37, %v2980_v53 }
 0x5e8   : > { %v2997_v59 = vmax.f32 %v2994_v57, 0.0  ;;  %v2992_v61 = vadd.f32 %v2989_v50, %v3990_v54  ;;  %v2993_v55 = vadd.f32 %v2990_v17, %v3999_v58 }
 0x5e9   : > { %v2977_v62 = vpop.f32.mrf.mxu2 }
 0x5ea   : > { %v3000_v1 = vmul.f32 %v2997_v59, %v3789_v21  ;;  %v2995_v2 = vmax.f32 %v2992_v61, 0.0  ;;  %v2996_v4 = vmax.f32 %v2993_v55, 0.0 }
 0x5eb   : > { %v2951_v9 = vpop.f32.mrf.mxu0  ;;  %v2964_v63 = vpop.f32.mrf.mxu1 }
 0x5ec   : > { %3003 = vst.msk [vmem:[#allocation4 + $0x18] sm:$0xff] %vm1083_vm11, %v3000_v1  ;;  %v2998_v56 = vmul.f32 %v2995_v2, %v3779_v5  ;;  %v2999_v10 = vmul.f32 %v2996_v4, %v3781_v6 }
 0x5ee   : > { %3001 = vst [vmem:[#allocation4 + $0x8] sm:$0xff] %v2998_v56 }
 0x5ef   : > { %3002 = vst [vmem:[#allocation4 + $0x10] sm:$0xff] %v2999_v10 }
 0x5f0   : > { %3009 = vst [vmem:[%s4346_s15 + $0x8] sm:$0xff] %v2998_v56 }
 0x5f1   : > { %3010 = vst [vmem:[%s4346_s15 + $0x10] sm:$0xff] %v2999_v10 }
 0x5f3   : > { %v3007_v21 = vld [vmem:[#allocation4 + $0x18] sm:$0xff] }
 0x5f4   : > { %3011 = vst [vmem:[%s4346_s15 + $0x18] sm:$0xff] %v3007_v21 }
 0x5f5   : > { %3457 = shalt.err (!%p3454_p1)
}
 0x5f6   : > { %3294 = dma.vmem_to_hbm [thread:$0]  (%p3596_p5), %s3047_s14, 512, %s3049_s16, %s3018_s23  }
 0x5f7 PF: > { %p3310_p2 = scmp.ge.s32.totalorder %s3500_s21, 2  ;;  %s3060_s13 = sand.u32 1, %s3488_s18  }
 0x5f8   : > { %s3061_s15 = scalar_lea.sflag [#allocation7], %s3060_s13 }
 0x5f9   : > { %p3302_p3 = pnand %p3310_p2, %p3600_p6 }
 0x5fb   : > { %p3303_p4 = pneg %p3302_p3 }
 0x5fd   : > { %3479 = dma.done.wait (%p3303_p4), %s3061_s15, 512  }
 0x5fe   : > { %3481 = vsyncadd (%p3303_p4), %s3061_s15, 4294966784  ;;  %s3071_s8 = scalar_lea.sflag [#allocation10], %s3060_s13 }
 0x5ff   : > { %3483 = dma.done.wait (%p3303_p4), %s3071_s8, 512  }
 0x600   : > { %3485 = vsyncadd (%p3303_p4), %s3071_s8, 4294966784  ;;  %p20_p5 = scmp.ge.s32.totalorder %s3583_s24, 4   ;;  %s4442_s18 = smov %s3492_s19 }
 0x601   : > { %s4443_s19 = smov %s3496_s20  ;;  %s4444_s20 = smov %s3594_s27 }
 0x602   : > { %s4445_s21 = smov %s3583_s24  ;;  %22 = sbr.rel (!%p20_p5) target bundleno = 6 (0x6), region = 111 }
 0x607   :  { %3077 = vsyncpa [#allocation6], 1 }
 0x608   :  { %3079 = vsyncpa [#allocation6 + $0x1], 1 }
 0x609   :  { %3080 = vsyncpa [#allocation7], 1 }
 0x60a   :  { %3082 = vsyncpa [#allocation7 + $0x1], 1 }
 0x60b   :  { %3083 = vsyncpa [#allocation10], 1 }
 0x60c   :  { %3085 = vsyncpa [#allocation10 + $0x1], 1 }

</bundles_post_ra>
